<compile_context>
chip_gen: v7x
topology: tpu7x:2x2x1
jax: 0.10.0
libtpu: 0.0.40
codegen_flags: <defaults>
</compile_context>

<pallas_src>
from functools import partial

import jax
import jax.numpy as jnp
from jax.experimental import pallas as pl
from jax.experimental.pallas import tpu as pltpu


# --------------------------------------------------------------------------------------
# Kernel
# --------------------------------------------------------------------------------------
def _classifier_kernel(z_ref, w1_ref, shift_ref, w2_ref, b2_ref, o_ref):
    # Linear1 with BN scale pre-folded into w1 columns; (b1 + BN shift) pre-folded into
    # shift_ref.  bf16 MXU matmul with fp32 accumulation.
    h = jnp.dot(z_ref[...], w1_ref[...], preferred_element_type=jnp.float32)
    h = jnp.maximum(h + shift_ref[...], 0.0)                       # ReLU (Dropout = identity in eval)
    # Linear2 output tile: (B, Hp) @ (Hp, TN) + b2 tile.
    o_ref[...] = (jnp.dot(h.astype(jnp.bfloat16), w2_ref[...],
                          preferred_element_type=jnp.float32)
                  + b2_ref[...]).astype(o_ref.dtype)


# --------------------------------------------------------------------------------------
# Packing (run once) and forward (run per call)
# --------------------------------------------------------------------------------------
def _round_up(x, m):
    return ((x + m - 1) // m) * m


def _pick_tile_n():
    """Output-column tile: 512 on 2-TensorCore chips (grid=2, parallel), 1024 on 1-TC chips."""
    try:
        kind = jax.devices()[0].device_kind.lower()
    except Exception:
        return 512
    if ("v7" in kind) or ("v5p" in kind) or ("v4" in kind):
        return 512        # 2 TensorCores: split the output columns across them.
    return 1024           # single TC (v5e / v6e): one big tile, grid=(1,).


def pack_classifier_params(w1, b1, gamma, beta, run_mean, run_var, w2, b2,
                           eps=1e-5, tn=None):
    """Fold BN into Linear1, transpose/pad/cast weights.  Do this ONCE, reuse per call.

    w1: (hidden, dim), w2: (out_dim, hidden) in PyTorch layout."""
    if tn is None:
        tn = _pick_tile_n()
    hidden, dim = w1.shape
    out_dim = w2.shape[0]

    Hp = _round_up(hidden, 128)      # 2000 -> 2048
    Np = _round_up(out_dim, tn)      # 1000 -> 1024

    scale = gamma / jnp.sqrt(run_var + eps)                # (hidden,)
    shift = beta - run_mean * scale                        # (hidden,)
    shift_eff = b1 * scale + shift                         # fold Linear1 bias + BN shift
    w1t_eff = w1.T * scale[None, :]                        # fold BN scale into w1 columns

    w1t_p = jnp.zeros((dim, Hp), jnp.float32).at[:, :hidden].set(w1t_eff)
    w1t_p = w1t_p.astype(jnp.bfloat16)
    shift_p = jnp.zeros((1, Hp), jnp.float32).at[:, :hidden].set(shift_eff)
    w2t_p = jnp.zeros((Hp, Np), jnp.float32).at[:hidden, :out_dim].set(w2.T)
    w2t_p = w2t_p.astype(jnp.bfloat16)
    b2_p = jnp.zeros((1, Np), jnp.float32).at[:, :out_dim].set(b2)

    packed = {"w1t": w1t_p, "shift": shift_p, "w2t": w2t_p, "b2": b2_p}
    packed = {k: jax.block_until_ready(v) for k, v in packed.items()}  # materialize once
    return packed, out_dim, tn


@partial(jax.jit, static_argnames=("out_dim", "tn"))
def _forward_packed(z, w1t_p, shift_p, w2t_p, b2_p, *, out_dim, tn):
    B, dim = z.shape
    Hp = w1t_p.shape[1]
    Np = w2t_p.shape[1]
    z_bf = z.astype(jnp.bfloat16)

    out = pl.pallas_call(
        _classifier_kernel,
        out_shape=jax.ShapeDtypeStruct((B, Np), jnp.float32),
        grid=(Np // tn,),
        in_specs=[
            # z / w1t / shift are resident (constant index_map across the grid; ~140 KiB).
            pl.BlockSpec((B, dim), lambda j: (0, 0)),
            pl.BlockSpec((dim, Hp), lambda j: (0, 0)),
            pl.BlockSpec((1, Hp), lambda j: (0, 0)),
            # w2 column tile is the only real HBM stream (double-buffered by BlockSpec).
            pl.BlockSpec((Hp, tn), lambda j: (0, j)),
            pl.BlockSpec((1, tn), lambda j: (0, j)),
        ],
        out_specs=pl.BlockSpec((B, tn), lambda j: (0, j)),
        compiler_params=pltpu.CompilerParams(
            dimension_semantics=("parallel",),   # 2-TC chips split output columns
        ),
    )(z_bf, w1t_p, shift_p, w2t_p, b2_p)

    # Slice away the 1000 -> 1024 padding (tiny ~32 KB copy; skip if consumer tolerates pad).
    return out[:, :out_dim]


def simple_classifier_forward(z, packed, out_dim, tn):
    return _forward_packed(z, packed["w1t"], packed["shift"], packed["w2t"],
                           packed["b2"], out_dim=out_dim, tn=tn)


# --------------------------------------------------------------------------------------
# Reference + self-check
# --------------------------------------------------------------------------------------
def _reference(z, w1, b1, gamma, beta, run_mean, run_var, w2, b2, eps=1e-5):
    h = z @ w1.T + b1
    h = (h - run_mean) / jnp.sqrt(run_var + eps) * gamma + beta
    h = jnp.maximum(h, 0.0)
    return h @ w2.T + b2


if __name__ == "__main__":
    key = jax.random.PRNGKey(0)
    B, dim, hidden, out_dim = 16, 32, 2000, 1000

    k_z, k_w1, k_b1, k_w2, k_b2 = jax.random.split(key, 5)
    z = jax.random.normal(k_z, (B, dim), dtype=jnp.float32)

    # Deterministic synthetic parameters (PyTorch-layout shapes).
    w1 = jax.random.normal(k_w1, (hidden, dim), dtype=jnp.float32) * 0.05
    b1 = jax.random.normal(k_b1, (hidden,), dtype=jnp.float32) * 0.05
    w2 = jax.random.normal(k_w2, (out_dim, hidden), dtype=jnp.float32) * 0.02
    b2 = jax.random.normal(k_b2, (out_dim,), dtype=jnp.float32) * 0.02
    # BatchNorm1d default-initialized parameters / running stats.
    gamma = jnp.ones((hidden,), jnp.float32)
    beta = jnp.zeros((hidden,), jnp.float32)
    run_mean = jnp.zeros((hidden,), jnp.float32)
    run_var = jnp.ones((hidden,), jnp.float32)

    # Pack once (off the hot path), then run the kernel.
    packed, out_dim_p, tn = pack_classifier_params(
        w1, b1, gamma, beta, run_mean, run_var, w2, b2)
    out = simple_classifier_forward(z, packed, out_dim_p, tn)
    out = jax.block_until_ready(out)

    ref = _reference(z, w1, b1, gamma, beta, run_mean, run_var, w2, b2)
    assert out.shape == (B, out_dim)
    # bf16 weights/activations in the matmuls -> compare vs fp32 reference with
    # bf16-appropriate tolerance.
    assert jnp.allclose(out, ref, atol=2e-2, rtol=2e-2), float(
        jnp.max(jnp.abs(out - ref)))
    print("KERNEL_OK")
</pallas_src>

<mosaic_0001>
module attributes {stable_mosaic.version = 11 : i64} {
  func.func @_classifier_kernel(%arg0: i32, %arg1: memref<16x32xbf16, #tpu.memory_space<vmem>>, %arg2: memref<32x2048xbf16, #tpu.memory_space<vmem>>, %arg3: memref<1x2048xf32, #tpu.memory_space<vmem>>, %arg4: memref<2048x1024xbf16, #tpu.memory_space<vmem>>, %arg5: memref<1x1024xf32, #tpu.memory_space<vmem>>, %arg6: memref<16x1024xf32, #tpu.memory_space<vmem>>) attributes {dimension_semantics = [#tpu.dimension_semantics<parallel>], iteration_bounds = array<i64: 1>, scalar_prefetch = 0 : i64, scratch_operands = 0 : i64, tpu.core_type = #tpu.core_type<tc>, window_params = [{pipeline_mode = #tpu.pipeline_mode<synchronous>, transform_indices = @transform_0, window_bounds = array<i64: 16, 32>}, {pipeline_mode = #tpu.pipeline_mode<synchronous>, transform_indices = @transform_1, window_bounds = array<i64: 32, 2048>}, {pipeline_mode = #tpu.pipeline_mode<synchronous>, transform_indices = @transform_2, window_bounds = array<i64: 1, 2048>}, {transform_indices = @transform_3, window_bounds = array<i64: 2048, 1024>}, {transform_indices = @transform_4, window_bounds = array<i64: 1, 1024>}, {transform_indices = @transform_5, window_bounds = array<i64: 16, 1024>}]} {
    %c0 = arith.constant 0 : index
    %c0_0 = arith.constant 0 : index
    %0 = vector.load %arg1[%c0, %c0_0] : memref<16x32xbf16, #tpu.memory_space<vmem>>, vector<16x32xbf16>
    %c0_1 = arith.constant 0 : index
    %c0_2 = arith.constant 0 : index
    %1 = vector.load %arg2[%c0_1, %c0_2] : memref<32x2048xbf16, #tpu.memory_space<vmem>>, vector<32x2048xbf16>
    %cst = arith.constant dense<0.000000e+00> : vector<16x2048xf32>
    %2 = tpu.matmul %0, %1, %cst {dimension_numbers = #tpu.dot_dimension_numbers<[1], [0], [0], [1], [0, 0, 1, 1], [], []>} : vector<16x32xbf16>, vector<32x2048xbf16>, vector<16x2048xf32> -> vector<16x2048xf32>
    %c0_3 = arith.constant 0 : index
    %c0_4 = arith.constant 0 : index
    %3 = vector.load %arg3[%c0_3, %c0_4] : memref<1x2048xf32, #tpu.memory_space<vmem>>, vector<1x2048xf32>
    %4 = vector.broadcast %3 : vector<1x2048xf32> to vector<16x2048xf32>
    %5 = arith.addf %2, %4 : vector<16x2048xf32>
    %cst_5 = arith.constant 0.000000e+00 : f32
    %6 = vector.broadcast %cst_5 : f32 to vector<16x2048xf32>
    %7 = arith.maximumf %5, %6 : vector<16x2048xf32>
    %8 = arith.truncf %7 : vector<16x2048xf32> to vector<16x2048xbf16>
    %c0_6 = arith.constant 0 : index
    %c0_7 = arith.constant 0 : index
    %9 = vector.load %arg4[%c0_6, %c0_7] : memref<2048x1024xbf16, #tpu.memory_space<vmem>>, vector<2048x1024xbf16>
    %cst_8 = arith.constant dense<0.000000e+00> : vector<16x1024xf32>
    %10 = tpu.matmul %8, %9, %cst_8 {dimension_numbers = #tpu.dot_dimension_numbers<[1], [0], [0], [1], [0, 0, 1, 1], [], []>} : vector<16x2048xbf16>, vector<2048x1024xbf16>, vector<16x1024xf32> -> vector<16x1024xf32>
    %c0_9 = arith.constant 0 : index
    %c0_10 = arith.constant 0 : index
    %11 = vector.load %arg5[%c0_9, %c0_10] : memref<1x1024xf32, #tpu.memory_space<vmem>>, vector<1x1024xf32>
    %12 = vector.broadcast %11 : vector<1x1024xf32> to vector<16x1024xf32>
    %13 = arith.addf %10, %12 : vector<16x1024xf32>
    %c0_11 = arith.constant 0 : index
    %c0_12 = arith.constant 0 : index
    %14 = vector.load %arg6[%c0_11, %c0_12] : memref<16x1024xf32, #tpu.memory_space<vmem>>, vector<16x1024xf32>
    tpu.vector_store %arg6[%c0_11, %c0_12], %13 {strides = array<i32>} : memref<16x1024xf32, #tpu.memory_space<vmem>>, vector<16x1024xf32>,
    return
  }
  func.func @transform_0(%arg0: i32) -> (i32, i32) {
    %c0_i32 = arith.constant 0 : i32
    %c0_i32_0 = arith.constant 0 : i32
    %c0_i32_1 = arith.constant 0 : i32
    return %c0_i32, %c0_i32_0 : i32, i32
  }
  func.func @transform_1(%arg0: i32) -> (i32, i32) {
    %c0_i32 = arith.constant 0 : i32
    %c0_i32_0 = arith.constant 0 : i32
    %c0_i32_1 = arith.constant 0 : i32
    return %c0_i32, %c0_i32_0 : i32, i32
  }
  func.func @transform_2(%arg0: i32) -> (i32, i32) {
    %c0_i32 = arith.constant 0 : i32
    %c0_i32_0 = arith.constant 0 : i32
    %c0_i32_1 = arith.constant 0 : i32
    return %c0_i32, %c0_i32_0 : i32, i32
  }
  func.func @transform_3(%arg0: i32) -> (i32, i32) {
    %c0_i32 = arith.constant 0 : i32
    %c0_i32_0 = arith.constant 0 : i32
    return %c0_i32, %arg0 : i32, i32
  }
  func.func @transform_4(%arg0: i32) -> (i32, i32) {
    %c0_i32 = arith.constant 0 : i32
    %c0_i32_0 = arith.constant 0 : i32
    return %c0_i32, %arg0 : i32, i32
  }
  func.func @transform_5(%arg0: i32) -> (i32, i32) {
    %c0_i32 = arith.constant 0 : i32
    %c0_i32_0 = arith.constant 0 : i32
    return %c0_i32, %arg0 : i32, i32
  }
}

</mosaic_0001>

<bundles_post_ra>
// kernel: _forward_packed.1
= control target key start
LH: loop header
LB: loop body
LE: loop exit
PB: predicated region body
PF: predicated region fallthrough
CT: control target
= control target key end

     0   :  { %10 = vsyncpa [#allocation3], 0  ;;  %s10122_s0 = inlined_call_operand.vmem [shape: bf16[16,32], index: 0, kind: input, shape index: {}]   ;;  %s10123_s1 = inlined_call_operand.hbm [shape: bf16[32,2048], index: 1, kind: input, shape index: {}]   ;;  %s10124_s2 = inlined_call_operand.hbm [shape: f32[1,2048], index: 2, kind: input, shape index: {}]   ;;  %s10125_s3 = inlined_call_operand.hbm [shape: bf16[2048,1024], index: 3, kind: input, shape index: {}]   ;;  %s10126_s4 = inlined_call_operand.hbm [shape: f32[1,1024], index: 4, kind: input, shape index: {}]   ;;  %s10127_s5 = inlined_call_operand.hbm [shape: f32[16,1024], index: 5, kind: output, shape index: {}]  }
   0x1   :  { %11 = vsyncpa [#allocation6], 0 }
   0x2   :  { %12 = vsyncpa [#allocation9], 0 }
   0x3   :  { %13 = vsyncpa [#allocation4], 0  ;;  %s9672_s18 = smov [#allocation5]   ;;  %s9673_s20 = smov [#allocation2]  }
   0x4   :  { %s34_s19 = sshll.u32 %s9672_s18, 4  ;;  %s21_s21 = sshll.u32 %s9673_s20, 4  ;;  %s35_s19 = int_to_ptr.vmem [resolvable:$true] %s34_s19  ;;  %s9712_s21 = int_to_ptr.vmem [resolvable:$true] %s21_s21 }
   0x5   :  { %s9554_s24 = scalar_lea.hbm %s10124_s2, 256 }
   0x6   :  { %p9555_p0 = scmp.ne.s32.totalorder %s10124_s2, %s9554_s24  ;;  %p9558_p1 = scmp.lt.u32.totalorder %s9554_s24, %s10124_s2 }
   0x8   :  { %p9560_p2 = pnand %p9558_p1, %p9555_p0 }
   0xa   :  { %9563 = shalt.err (!%p9560_p2)
}
   0xb   :  { %s9564_s29 = scalar_lea.vmem %s35_s19, 256  ;;  %p9569_p4 = scmp.lt.s32.totalorder %s35_s19, %s35_s19 }
   0xc   :  { %p9565_p3 = scmp.ne.s32.totalorder %s35_s19, %s9564_s29  ;;  %p9570_p5 = scmp.lt.s32.totalorder %s9564_s29, %s9564_s29 }
   0xe   :  { %p9571_p6 = por %p9570_p5, %p9569_p4 }
  0x10   :  { %p9572_p7 = pnand %p9571_p6, %p9565_p3 }
  0x12   :  { %9575 = shalt.err (!%p9572_p7)
}
  0x13   :  { %37 = dma.hbm_to_vmem [thread:$0]  %s10124_s2, 256, %s35_s19, [#allocation6]  }
  0x14   :  { %s9576_s9 = scalar_lea.hbm %s10123_s1, 4096 }
  0x15   :  { %p9577_p8 = scmp.ne.s32.totalorder %s10123_s1, %s9576_s9  ;;  %p9580_p9 = scmp.lt.u32.totalorder %s9576_s9, %s10123_s1 }
  0x17   :  { %p9582_p10 = pnand %p9580_p9, %p9577_p8 }
  0x19   :  { %9585 = shalt.err (!%p9582_p10)
}
  0x1a   :  { %s9586_s14 = scalar_lea.vmem %s9712_s21, 4096  ;;  %p9591_p12 = scmp.lt.s32.totalorder %s9712_s21, %s9712_s21 }
  0x1b   :  { %p9587_p11 = scmp.ne.s32.totalorder %s9712_s21, %s9586_s14  ;;  %p9592_p13 = scmp.lt.s32.totalorder %s9586_s14, %s9586_s14 }
  0x1d   :  { %p9593_p0 = por %p9592_p13, %p9591_p12 }
  0x1f   :  { %p9594_p1 = pnand %p9593_p0, %p9587_p11 }
  0x21   :  { %9597 = shalt.err (!%p9594_p1)
}
  0x22   :  { %s9674_s2 = smov 1024   ;;  %s9675_s15 = smov 64  }
  0x23   :  { %27 = dma.hbm_to_vmem [thread:$0]  %s10123_s1, 4096, %s9712_s21, [#allocation3], %s9674_s2, %s9674_s2, %s9675_s15  }
  0x24   :  { %s9676_s18 = smov [#allocation7]   ;;  %s9598_s23 = scalar_lea.hbm %s10125_s3, 131072 }
  0x25   :  { %s43_s19 = sshll.u32 %s9676_s18, 4  ;;  %p9599_p2 = scmp.ne.s32.totalorder %s10125_s3, %s9598_s23  ;;  %s44_s19 = int_to_ptr.vmem [resolvable:$true] %s43_s19 }
  0x26   :  { %p9602_p3 = scmp.lt.u32.totalorder %s9598_s23, %s10125_s3 }
  0x28   :  { %p9604_p4 = pnand %p9602_p3, %p9599_p2 }
  0x2a   :  { %9607 = shalt.err (!%p9604_p4)
}
  0x2b   :  { %s9608_s28 = scalar_lea.vmem %s44_s19, 131072  ;;  %p9613_p6 = scmp.lt.s32.totalorder %s44_s19, %s44_s19 }
  0x2c   :  { %p9609_p5 = scmp.ne.s32.totalorder %s44_s19, %s9608_s28  ;;  %p9614_p7 = scmp.lt.s32.totalorder %s9608_s28, %s9608_s28 }
  0x2e   :  { %p9615_p8 = por %p9614_p7, %p9613_p6 }
  0x30   :  { %p9616_p9 = pnand %p9615_p8, %p9609_p5 }
  0x32   :  { %9619 = shalt.err (!%p9616_p9)
}
  0x33   :  { %s9677_s1 = smov 512   ;;  %s9678_s21 = smov 32  }
  0x34   :  { %49 = dma.hbm_to_vmem [thread:$0]  %s10125_s3, 131072, %s44_s19, [#allocation6], %s9677_s1, %s9677_s1, %s9678_s21  }
  0x35   :  { %s9679_s6 = smov [#allocation8]   ;;  %s9620_s10 = scalar_lea.hbm %s10126_s4, 128 }
  0x36   :  { %s56_s7 = sshll.u32 %s9679_s6, 4  ;;  %p9621_p10 = scmp.ne.s32.totalorder %s10126_s4, %s9620_s10  ;;  %s57_s7 = int_to_ptr.vmem [resolvable:$true] %s56_s7 }
  0x37   :  { %p9624_p11 = scmp.lt.u32.totalorder %s9620_s10, %s10126_s4 }
  0x39   :  { %p9626_p12 = pnand %p9624_p11, %p9621_p10 }
  0x3b   :  { %9629 = shalt.err (!%p9626_p12)
}
  0x3c   :  { %s9630_s16 = scalar_lea.vmem %s57_s7, 128  ;;  %p9635_p0 = scmp.lt.s32.totalorder %s57_s7, %s57_s7 }
  0x3d   :  { %p9631_p13 = scmp.ne.s32.totalorder %s57_s7, %s9630_s16  ;;  %p9636_p1 = scmp.lt.s32.totalorder %s9630_s16, %s9630_s16 }
  0x3f   :  { %p9637_p2 = por %p9636_p1, %p9635_p0 }
  0x41   :  { %p9638_p3 = pnand %p9637_p2, %p9631_p13 }
  0x43   :  { %9641 = shalt.err (!%p9638_p3)
}
  0x44   :  { %59 = dma.hbm_to_vmem [thread:$0]  %s10126_s4, 128, %s57_s7, [#allocation9]  }
  0x45   :  { %9664 = dma.done.wait [#allocation3], 4096  }
  0x46   :  { %9665 = vsyncadd [#allocation3], 4294963200 }
  0x47   :  { %9666 = dma.done.wait [#allocation6], 131328  }
  0x48   :  { %9667 = vsyncadd [#allocation6], 4294835968 }
  0x49   :  { %9668 = dma.done.wait [#allocation9], 128  }
  0x4a   :  { %9669 = vsyncadd [#allocation9], 4294967168  ;;  %v9680_v0 = vmov 0   ;;  %v75_v1 = vld [vmem:[#allocation2] sm:$0xff]  ;;  %v76_v8 = vld [vmem:[#allocation2 + $0x8] sm:$0xff]  ;;  %vm356_vm0 = vcmask 261120  }
  0x4b   :  { %392 = vmatprep.mubr.bf16.mxu0 %v9680_v0  ;;  %435 = vmatprep.mubr.bf16.mxu1 %v9680_v0  ;;  %v83_v2 = vld [vmem:[#allocation2 + $0x40] sm:$0xff]  ;;  %v84_v9 = vld [vmem:[#allocation2 + $0x48] sm:$0xff]  ;;  %v77_v14 = vld [vmem:[#allocation2 + $0x10] sm:$0xff] }
  0x4c   :  { %v91_v3 = vld [vmem:[#allocation2 + $0x80] sm:$0xff]  ;;  %v8351_v4 = vcombine.high %v75_v1, %v83_v2  ;;  %v8350_v5 = vcombine.low %v75_v1, %v83_v2  ;;  %v8353_v10 = vcombine.high %v76_v8, %v84_v9  ;;  %v8352_v11 = vcombine.low %v76_v8, %v84_v9  ;;  %v92_v12 = vld [vmem:[#allocation2 + $0x88] sm:$0xff]  ;;  %v85_v17 = vld [vmem:[#allocation2 + $0x50] sm:$0xff] }
  0x4d   :  { %v99_v6 = vld [vmem:[#allocation2 + $0xc0] sm:$0xff]  ;;  %v100_v13 = vld [vmem:[#allocation2 + $0xc8] sm:$0xff]  ;;  %v8355_v18 = vcombine.high %v77_v14, %v85_v17  ;;  %v78_v19 = vld [vmem:[#allocation2 + $0x18] sm:$0xff]  ;;  %v8354_v26 = vcombine.low %v77_v14, %v85_v17 }
  0x4e   :  { %v8367_v7 = vcombine.high %v91_v3, %v99_v6  ;;  %360 = vmatprep.subr.bf16.mxu0 %v8351_v4  ;;  %v8366_v15 = vcombine.low %v91_v3, %v99_v6  ;;  %v8369_v16 = vcombine.high %v92_v12, %v100_v13  ;;  %403 = vmatprep.subr.bf16.mxu1 %v8353_v10  ;;  %v86_v20 = vld [vmem:[#allocation2 + $0x58] sm:$0xff]  ;;  %v93_v22 = vld [vmem:[#allocation2 + $0x90] sm:$0xff]  ;;  %v79_v31 = vld [vmem:[#allocation2 + $0x20] sm:$0xff] }
  0x4f   :  { %361 = vmatpush1.bf16.msra.mxu0 %v8350_v5  ;;  %404 = vmatpush1.bf16.msra.mxu1 %v8352_v11  ;;  %v8368_v21 = vcombine.low %v92_v12, %v100_v13  ;;  %v101_v23 = vld [vmem:[#allocation2 + $0xd0] sm:$0xff]  ;;  %v9775_v24 = vld [vmem:[%s10122_s0] sm:$0xff]   ;;  %v8357_v25 = vcombine.high %v78_v19, %v86_v20  ;;  %v8356_v30 = vcombine.low %v78_v19, %v86_v20  ;;  %v87_v32 = vld [vmem:[#allocation2 + $0x60] sm:$0xff]  ;;  %s9681_s0 = smov [#allocation10]  }
  0x50   :  { %362 = vmatprep.subr.bf16.mxu0 %v8367_v7  ;;  %405 = vmatprep.subr.bf16.mxu1 %v8369_v16  ;;  %v94_v27 = vld [vmem:[#allocation2 + $0x98] sm:$0xff]  ;;  %v8371_v29 = vcombine.high %v93_v22, %v101_v23  ;;  %v8370_v34 = vcombine.low %v93_v22, %v101_v23  ;;  %v80_v35 = vld [vmem:[#allocation2 + $0x28] sm:$0xff]  ;;  %v8359_v37 = vcombine.high %v79_v31, %v87_v32  ;;  %v95_v39 = vld [vmem:[#allocation2 + $0xa0] sm:$0xff]  ;;  %s8335_s19 = sshll.u32 %s9681_s0, 4  ;;  %s8336_s19 = int_to_ptr.vmem [resolvable:$true] %s8335_s19 }
  0x51   :  { %v102_v28 = vld [vmem:[#allocation2 + $0xd8] sm:$0xff]  ;;  %v88_v36 = vld [vmem:[#allocation2 + $0x68] sm:$0xff]  ;;  %v103_v40 = vld [vmem:[#allocation2 + $0xe0] sm:$0xff]  ;;  %v8358_v42 = vcombine.low %v79_v31, %v87_v32  ;;  %s9642_s20 = scalar_lea.vmem %s8336_s19, 2048  ;;  %p9647_p5 = scmp.lt.s32.totalorder %s8336_s19, %s8336_s19 }
  0x52   :  { %v8373_v33 = vcombine.high %v94_v27, %v102_v28  ;;  %v8372_v38 = vcombine.low %v94_v27, %v102_v28  ;;  %v8361_v41 = vcombine.high %v80_v35, %v88_v36  ;;  %v96_v43 = vld [vmem:[#allocation2 + $0xa8] sm:$0xff]  ;;  %v8375_v45 = vcombine.high %v95_v39, %v103_v40  ;;  %v81_v47 = vld [vmem:[#allocation2 + $0x30] sm:$0xff]  ;;  %v82_v51 = vld [vmem:[#allocation2 + $0x38] sm:$0xff]  ;;  %p9643_p4 = scmp.ne.s32.totalorder %s8336_s19, %s9642_s20  ;;  %p9648_p6 = scmp.lt.s32.totalorder %s9642_s20, %s9642_s20 }
  0x53   :  { %363 = vmatpush1.bf16.msra.mxu0 %v8366_v15  ;;  %406 = vmatpush1.bf16.msra.mxu1 %v8368_v21  ;;  %v104_v44 = vld [vmem:[#allocation2 + $0xe8] sm:$0xff]  ;;  %v8360_v46 = vcombine.low %v80_v35, %v88_v36  ;;  %v89_v48 = vld [vmem:[#allocation2 + $0x70] sm:$0xff]  ;;  %v8374_v50 = vcombine.low %v95_v39, %v103_v40  ;;  %v90_v52 = vld [vmem:[#allocation2 + $0x78] sm:$0xff] }
  0x54   :  { %446 = vmatprep.subr.bf16.mxu0 %v8355_v18  ;;  %489 = vmatprep.subr.bf16.mxu1 %v8357_v25  ;;  %v8377_v49 = vcombine.high %v96_v43, %v104_v44  ;;  %v8363_v53 = vcombine.high %v81_v47, %v89_v48  ;;  %v8376_v54 = vcombine.low %v96_v43, %v104_v44  ;;  %v97_v55 = vld [vmem:[#allocation2 + $0xb0] sm:$0xff]  ;;  %v98_v59 = vld [vmem:[#allocation2 + $0xb8] sm:$0xff]  ;;  %p9649_p7 = por %p9648_p6, %p9647_p5 }
  0x55   :  { %v105_v56 = vld [vmem:[#allocation2 + $0xf0] sm:$0xff]  ;;  %v8365_v57 = vcombine.high %v82_v51, %v90_v52  ;;  %v8362_v58 = vcombine.low %v81_v47, %v89_v48  ;;  %v106_v60 = vld [vmem:[#allocation2 + $0xf8] sm:$0xff]  ;;  %v8364_v62 = vcombine.low %v82_v51, %v90_v52 }
  0x56   :  { %8382 = vmatmul.mubr.msk.bf16.vlgmr.msra.gmra.mrb[0].mxu0 %vm356_vm0, %v9775_v24  ;;  %8383 = vmatmul.mubr.msk.bf16.vlgmr.msra.gmra.mrb[0].mxu1 %vm356_vm0, %v9775_v24  ;;  %v8379_v61 = vcombine.high %v97_v55, %v105_v56  ;;  %v752_v63 = vld [vmem:[#allocation7] sm:$0xff]  ;;  %v8381_v2 = vcombine.high %v98_v59, %v106_v60  ;;  %v8378_v3 = vcombine.low %v97_v55, %v105_v56  ;;  %v753_v4 = vld [vmem:[#allocation7 + $0x8] sm:$0xff]  ;;  %p9650_p8 = pnand %p9649_p7, %p9643_p4 }
  0x57   :  { %447 = vmatpush1.bf16.msra.mxu0 %v8354_v26  ;;  %478 = vmatprep.mubr.bf16.mxu0 %v9680_v0  ;;  %v756_v1 = vld [vmem:[#allocation7 + $0x20] sm:$0xff]  ;;  %v757_v5 = vld [vmem:[#allocation7 + $0x28] sm:$0xff]  ;;  %v8380_v7 = vcombine.low %v98_v59, %v106_v60 }
  0x58   :  { %448 = vmatprep.subr.bf16.mxu0 %v8371_v29  ;;  %490 = vmatpush1.bf16.msra.mxu1 %v8356_v30  ;;  %v8391_v6 = vcombine.high %v752_v63, %v756_v1  ;;  %v760_v8 = vld [vmem:[#allocation7 + $0x40] sm:$0xff]  ;;  %v8393_v10 = vcombine.high %v753_v4, %v757_v5  ;;  %v8390_v11 = vcombine.low %v752_v63, %v756_v1  ;;  %v761_v12 = vld [vmem:[#allocation7 + $0x48] sm:$0xff] }
  0x59   :  { %521 = vmatprep.mubr.bf16.mxu1 %v9680_v0  ;;  %491 = vmatprep.subr.bf16.mxu1 %v8373_v33  ;;  %v764_v9 = vld [vmem:[#allocation7 + $0x60] sm:$0xff]  ;;  %v765_v13 = vld [vmem:[#allocation7 + $0x68] sm:$0xff]  ;;  %v8392_v15 = vcombine.low %v753_v4, %v757_v5 }
  0x5a   :  { %v8399_v14 = vcombine.high %v760_v8, %v764_v9  ;;  %v768_v16 = vld [vmem:[#allocation7 + $0x80] sm:$0xff]  ;;  %v8401_v18 = vcombine.high %v761_v12, %v765_v13  ;;  %v769_v19 = vld [vmem:[#allocation7 + $0x88] sm:$0xff]  ;;  %v8400_v22 = vcombine.low %v761_v12, %v765_v13 }
  0x5b   :  { %449 = vmatpush1.bf16.msra.mxu0 %v8370_v34  ;;  %v772_v17 = vld [vmem:[#allocation7 + $0xa0] sm:$0xff]  ;;  %v773_v20 = vld [vmem:[#allocation7 + $0xa8] sm:$0xff] }
  0x5c   :  { %532 = vmatprep.subr.bf16.mxu0 %v8359_v37  ;;  %492 = vmatpush1.bf16.msra.mxu1 %v8372_v38  ;;  %v8407_v21 = vcombine.high %v768_v16, %v772_v17  ;;  %v776_v23 = vld [vmem:[#allocation7 + $0xc0] sm:$0xff]  ;;  %v8409_v26 = vcombine.high %v769_v19, %v773_v20  ;;  %v8406_v27 = vcombine.low %v768_v16, %v772_v17  ;;  %v777_v28 = vld [vmem:[#allocation7 + $0xc8] sm:$0xff] }
  0x5d   :  { %575 = vmatprep.subr.bf16.mxu1 %v8361_v41  ;;  %v780_v25 = vld [vmem:[#allocation7 + $0xe0] sm:$0xff]  ;;  %v781_v29 = vld [vmem:[#allocation7 + $0xe8] sm:$0xff]  ;;  %v8408_v31 = vcombine.low %v769_v19, %v773_v20 }
  0x5e   :  { %8384 = vmatmul.mubr.msk.bf16.vlgmr.msra.gmra.mrb[4].mxu0 %vm356_vm0, %v9775_v24  ;;  %v8415_v30 = vcombine.high %v776_v23, %v780_v25  ;;  %v784_v32 = vld [vmem:[#allocation7 + $0x100] sm:$0xff]  ;;  %v8414_v34 = vcombine.low %v776_v23, %v780_v25  ;;  %v785_v35 = vld [vmem:[#allocation7 + $0x108] sm:$0xff]  ;;  %v8416_v38 = vcombine.low %v777_v28, %v781_v29 }
  0x5f   :  { %533 = vmatpush1.bf16.msra.mxu0 %v8358_v42  ;;  %564 = vmatprep.mubr.bf16.mxu0 %v9680_v0  ;;  %v788_v33 = vld [vmem:[#allocation7 + $0x120] sm:$0xff]  ;;  %v789_v36 = vld [vmem:[#allocation7 + $0x128] sm:$0xff] }
  0x60   :  { %8385 = vmatmul.mubr.msk.bf16.vlgmr.msra.gmra.mrb[4].mxu1 %vm356_vm0, %v9775_v24  ;;  %534 = vmatprep.subr.bf16.mxu0 %v8375_v45  ;;  %v8423_v37 = vcombine.high %v784_v32, %v788_v33  ;;  %v792_v39 = vld [vmem:[#allocation7 + $0x140] sm:$0xff]  ;;  %v8425_v41 = vcombine.high %v785_v35, %v789_v36  ;;  %v8422_v42 = vcombine.low %v784_v32, %v788_v33  ;;  %v793_v43 = vld [vmem:[#allocation7 + $0x148] sm:$0xff] }
  0x61   :  { %576 = vmatpush1.bf16.msra.mxu1 %v8360_v46  ;;  %607 = vmatprep.mubr.bf16.mxu1 %v9680_v0  ;;  %v796_v40 = vld [vmem:[#allocation7 + $0x160] sm:$0xff]  ;;  %v797_v44 = vld [vmem:[#allocation7 + $0x168] sm:$0xff]  ;;  %v8424_v46 = vcombine.low %v785_v35, %v789_v36 }
  0x62   :  { %577 = vmatprep.subr.bf16.mxu1 %v8377_v49  ;;  %v8431_v45 = vcombine.high %v792_v39, %v796_v40  ;;  %v800_v47 = vld [vmem:[#allocation7 + $0x180] sm:$0xff]  ;;  %v8433_v49 = vcombine.high %v793_v43, %v797_v44  ;;  %v801_v51 = vld [vmem:[#allocation7 + $0x188] sm:$0xff] }
  0x63   :  { %535 = vmatpush1.bf16.msra.mxu0 %v8374_v50  ;;  %v804_v48 = vld [vmem:[#allocation7 + $0x1a0] sm:$0xff]  ;;  %v8430_v50 = vcombine.low %v792_v39, %v796_v40  ;;  %v805_v52 = vld [vmem:[#allocation7 + $0x1a8] sm:$0xff] }
  0x64   :  { %618 = vmatprep.subr.bf16.mxu0 %v8363_v53  ;;  %v8439_v53 = vcombine.high %v800_v47, %v804_v48  ;;  %v808_v55 = vld [vmem:[#allocation7 + $0x1c0] sm:$0xff]  ;;  %v809_v59 = vld [vmem:[#allocation7 + $0x1c8] sm:$0xff] }
  0x65   :  { %578 = vmatpush1.bf16.msra.mxu1 %v8376_v54  ;;  %v8432_v54 = vcombine.low %v793_v43, %v797_v44  ;;  %v812_v56 = vld [vmem:[#allocation7 + $0x1e0] sm:$0xff]  ;;  %v813_v60 = vld [vmem:[#allocation7 + $0x1e8] sm:$0xff] }
  0x66   :  { %8386 = vmatmul.mubr.msk.bf16.vlgmr.msra.gmra.mrb[8].mxu0 %vm356_vm0, %v9775_v24  ;;  %661 = vmatprep.subr.bf16.mxu1 %v8365_v57  ;;  %v8441_v57 = vcombine.high %v801_v51, %v805_v52  ;;  %v816_v63 = vld [vmem:[#allocation7 + $0x200] sm:$0xff]  ;;  %v817_v4 = vld [vmem:[#allocation7 + $0x208] sm:$0xff] }
  0x67   :  { %619 = vmatpush1.bf16.msra.mxu0 %v8362_v58  ;;  %650 = vmatprep.mubr.bf16.mxu0 %v9680_v0  ;;  %v8438_v58 = vcombine.low %v800_v47, %v804_v48  ;;  %v820_v1 = vld [vmem:[#allocation7 + $0x220] sm:$0xff]  ;;  %v821_v5 = vld [vmem:[#allocation7 + $0x228] sm:$0xff] }
  0x68   :  { %8387 = vmatmul.mubr.msk.bf16.vlgmr.msra.gmra.mrb[8].mxu1 %vm356_vm0, %v9775_v24  ;;  %620 = vmatprep.subr.bf16.mxu0 %v8379_v61  ;;  %v8447_v61 = vcombine.high %v808_v55, %v812_v56  ;;  %v825_v12 = vld [vmem:[#allocation7 + $0x248] sm:$0xff]  ;;  %v832_v16 = vld [vmem:[#allocation7 + $0x280] sm:$0xff] }
  0x69   :  { %662 = vmatpush1.bf16.msra.mxu1 %v8364_v62  ;;  %693 = vmatprep.mubr.bf16.mxu1 %v9680_v0  ;;  %v8398_v0 = vcombine.low %v760_v8, %v764_v9  ;;  %v8440_v62 = vcombine.low %v801_v51, %v805_v52  ;;  %v824_v8 = vld [vmem:[#allocation7 + $0x240] sm:$0xff]  ;;  %v829_v13 = vld [vmem:[#allocation7 + $0x268] sm:$0xff] }
  0x6a   :  { %663 = vmatprep.subr.bf16.mxu1 %v8381_v2  ;;  %v8449_v2 = vcombine.high %v809_v59, %v813_v60  ;;  %v828_v9 = vld [vmem:[#allocation7 + $0x260] sm:$0xff]  ;;  %v833_v19 = vld [vmem:[#allocation7 + $0x288] sm:$0xff] }
  0x6b   :  { %621 = vmatpush1.bf16.msra.mxu0 %v8378_v3  ;;  %v8446_v3 = vcombine.low %v808_v55, %v812_v56  ;;  %v836_v17 = vld [vmem:[#allocation7 + $0x2a0] sm:$0xff]  ;;  %v837_v20 = vld [vmem:[#allocation7 + $0x2a8] sm:$0xff] }
  0x6c   :  { %6938 = vmatprep.subr.bf16.mxu0 %v8391_v6  ;;  %v8455_v6 = vcombine.high %v816_v63, %v820_v1  ;;  %v840_v23 = vld [vmem:[#allocation7 + $0x2c0] sm:$0xff]  ;;  %v849_v35 = vld [vmem:[#allocation7 + $0x308] sm:$0xff] }
  0x6d   :  { %664 = vmatpush1.bf16.msra.mxu1 %v8380_v7  ;;  %v8448_v7 = vcombine.low %v809_v59, %v813_v60  ;;  %v844_v25 = vld [vmem:[#allocation7 + $0x2e0] sm:$0xff]  ;;  %v853_v36 = vld [vmem:[#allocation7 + $0x328] sm:$0xff] }
  0x6e   :  { %8388 = vmatmul.mubr.msk.bf16.vlgmr.msra.gmra.mrb[12].mxu0 %vm356_vm0, %v9775_v24  ;;  %7282 = vmatprep.subr.bf16.mxu1 %v8393_v10  ;;  %v8457_v10 = vcombine.high %v817_v4, %v821_v5  ;;  %v848_v32 = vld [vmem:[#allocation7 + $0x300] sm:$0xff]  ;;  %v857_v43 = vld [vmem:[#allocation7 + $0x348] sm:$0xff] }
  0x6f   :  { %6939 = vmatpush1.bf16.msra.mxu0 %v8390_v11  ;;  %v8454_v11 = vcombine.low %v816_v63, %v820_v1  ;;  %v852_v33 = vld [vmem:[#allocation7 + $0x320] sm:$0xff]  ;;  %v861_v44 = vld [vmem:[#allocation7 + $0x368] sm:$0xff] }
  0x70   :  { %8389 = vmatmul.mubr.msk.bf16.vlgmr.msra.gmra.mrb[12].mxu1 %vm356_vm0, %v9775_v24  ;;  %6940 = vmatprep.subr.bf16.mxu0 %v8399_v14  ;;  %v8417_v24 = vcombine.high %v777_v28, %v781_v29  ;;  %v8463_v14 = vcombine.high %v824_v8, %v828_v9  ;;  %v841_v28 = vld [vmem:[#allocation7 + $0x2c8] sm:$0xff]  ;;  %v856_v39 = vld [vmem:[#allocation7 + $0x340] sm:$0xff]  ;;  %v8497_v47 = vcombine.high %v857_v43, %v861_v44 }
  0x71   :  { %7283 = vmatpush1.bf16.msra.mxu1 %v8392_v15  ;;  %v8456_v15 = vcombine.low %v817_v4, %v821_v5  ;;  %v845_v29 = vld [vmem:[#allocation7 + $0x2e8] sm:$0xff]  ;;  %v860_v40 = vld [vmem:[#allocation7 + $0x360] sm:$0xff] }
  0x72   :  { %7284 = vmatprep.subr.bf16.mxu1 %v8401_v18  ;;  %v8465_v18 = vcombine.high %v825_v12, %v829_v13  ;;  %v8494_v48 = vcombine.low %v856_v39, %v860_v40  ;;  %v868_v51 = vld [vmem:[#allocation7 + $0x3a0] sm:$0xff]  ;;  %v865_v52 = vld [vmem:[#allocation7 + $0x388] sm:$0xff] }
  0x73   :  { %6941 = vmatpush1.bf16.msra.mxu0 %v8398_v0  ;;  %v8462_v0 = vcombine.low %v824_v8, %v828_v9  ;;  %v876_v59 = vld [vmem:[#allocation7 + $0x3e0] sm:$0xff]  ;;  %v873_v60 = vld [vmem:[#allocation7 + $0x3c8] sm:$0xff] }
  0x74   :  { %6942 = vmatprep.subr.bf16.mxu0 %v8407_v21  ;;  %v8471_v21 = vcombine.high %v832_v16, %v836_v17  ;;  %v9801_v4 = vld [vmem:[#allocation7 + $0x420] sm:$0xff]  ;;  %v9803_v5 = vld [vmem:[#allocation7 + $0x408] sm:$0xff] }
  0x75   :  { %7285 = vmatpush1.bf16.msra.mxu1 %v8400_v22  ;;  %v8464_v22 = vcombine.low %v825_v12, %v829_v13 }
  0x76   :  { %7286 = vmatprep.subr.bf16.mxu1 %v8409_v26  ;;  %v8473_v26 = vcombine.high %v833_v19, %v837_v20 }
  0x77   :  { %6943 = vmatpush1.bf16.msra.mxu0 %v8406_v27  ;;  %v8470_v27 = vcombine.low %v832_v16, %v836_v17 }
  0x78   :  { %6944 = vmatprep.subr.bf16.mxu0 %v8415_v30  ;;  %v8479_v30 = vcombine.high %v840_v23, %v844_v25 }
  0x79   :  { %7287 = vmatpush1.bf16.msra.mxu1 %v8408_v31  ;;  %v8472_v31 = vcombine.low %v833_v19, %v837_v20 }
  0x7a   :  { %7288 = vmatprep.subr.bf16.mxu1 %v8417_v24  ;;  %v8481_v24 = vcombine.high %v841_v28, %v845_v29 }
  0x7b   :  { %6945 = vmatpush1.bf16.msra.mxu0 %v8414_v34  ;;  %v8478_v34 = vcombine.low %v840_v23, %v844_v25 }
  0x7c   :  { %6946 = vmatprep.subr.bf16.mxu0 %v8423_v37  ;;  %v8487_v37 = vcombine.high %v848_v32, %v852_v33 }
  0x7d   :  { %7289 = vmatpush1.bf16.msra.mxu1 %v8416_v38  ;;  %v8480_v38 = vcombine.low %v841_v28, %v845_v29 }
  0x7e   :  { %7290 = vmatprep.subr.bf16.mxu1 %v8425_v41  ;;  %v8489_v41 = vcombine.high %v849_v35, %v853_v36 }
  0x7f   :  { %6947 = vmatpush1.bf16.msra.mxu0 %v8422_v42  ;;  %v8486_v42 = vcombine.low %v848_v32, %v852_v33 }
  0x80   :  { %6948 = vmatprep.subr.bf16.mxu0 %v8431_v45  ;;  %v8495_v45 = vcombine.high %v856_v39, %v860_v40  ;;  %v9849_v40 = vld [vmem:[#allocation7 + $0x440] sm:$0xff] }
  0x81   :  { %7291 = vmatpush1.bf16.msra.mxu1 %v8424_v46  ;;  %v8488_v46 = vcombine.low %v849_v35, %v853_v36 }
  0x82   :  { %7292 = vmatprep.subr.bf16.mxu1 %v8433_v49  ;;  %v8496_v49 = vcombine.low %v857_v43, %v861_v44 }
  0x83   :  { %6949 = vmatpush1.bf16.msra.mxu0 %v8430_v50  ;;  %v864_v50 = vld [vmem:[#allocation7 + $0x380] sm:$0xff] }
  0x84   :  { %6950 = vmatprep.subr.bf16.mxu0 %v8439_v53  ;;  %v8503_v53 = vcombine.high %v864_v50, %v868_v51  ;;  %v8502_v55 = vcombine.low %v864_v50, %v868_v51 }
  0x85   :  { %7293 = vmatpush1.bf16.msra.mxu1 %v8432_v54  ;;  %v869_v54 = vld [vmem:[#allocation7 + $0x3a8] sm:$0xff] }
  0x86   :  { %7294 = vmatprep.subr.bf16.mxu1 %v8441_v57  ;;  %v8504_v56 = vcombine.low %v865_v52, %v869_v54  ;;  %v8505_v57 = vcombine.high %v865_v52, %v869_v54 }
  0x87   :  { %6951 = vmatpush1.bf16.msra.mxu0 %v8438_v58  ;;  %v872_v58 = vld [vmem:[#allocation7 + $0x3c0] sm:$0xff] }
  0x88   :  { %6952 = vmatprep.subr.bf16.mxu0 %v8447_v61  ;;  %v8511_v61 = vcombine.high %v872_v58, %v876_v59  ;;  %v8510_v63 = vcombine.low %v872_v58, %v876_v59 }
  0x89   :  { %7295 = vmatpush1.bf16.msra.mxu1 %v8440_v62  ;;  %v877_v62 = vld [vmem:[#allocation7 + $0x3e8] sm:$0xff] }
  0x8a   :  { %7296 = vmatprep.subr.bf16.mxu1 %v8449_v2  ;;  %v8512_v1 = vcombine.low %v873_v60, %v877_v62  ;;  %v8513_v2 = vcombine.high %v873_v60, %v877_v62 }
  0x8b   :  { %6953 = vmatpush1.bf16.msra.mxu0 %v8446_v3  ;;  %v9799_v3 = vld [vmem:[#allocation7 + $0x400] sm:$0xff] }
  0x8c   :  { %6954 = vmatprep.subr.bf16.mxu0 %v8455_v6  ;;  %v8519_v6 = vcombine.high %v9799_v3, %v9801_v4  ;;  %v8518_v8 = vcombine.low %v9799_v3, %v9801_v4 }
  0x8d   :  { %7297 = vmatpush1.bf16.msra.mxu1 %v8448_v7  ;;  %v9807_v7 = vld [vmem:[#allocation7 + $0x428] sm:$0xff] }
  0x8e   :  { %7298 = vmatprep.subr.bf16.mxu1 %v8457_v10  ;;  %v8520_v9 = vcombine.low %v9803_v5, %v9807_v7  ;;  %v8521_v10 = vcombine.high %v9803_v5, %v9807_v7 }
  0x8f   :  { %6955 = vmatpush1.bf16.msra.mxu0 %v8454_v11  ;;  %v111_v11 = vlaneseq }
  0x90   :  { %6956 = vmatprep.subr.bf16.mxu0 %v8463_v14  ;;  %v9820_v14 = vld [vmem:[#allocation5] sm:$0xff] }
  0x91   :  { %7299 = vmatpush1.bf16.msra.mxu1 %v8456_v15  ;;  %v9815_v12 = vshrl.u32 %v111_v11, 7  ;;  %v9883_v11 = vld [vmem:[#allocation7 + $0x4e0] sm:$0xff] }
  0x92   :  { %7300 = vmatprep.subr.bf16.mxu1 %v8465_v18 }
  0x93   :  { %6957 = vmatpush1.bf16.msra.mxu0 %v8462_v0  ;;  %v9818_v13 = vsub.s32 0, %v9815_v12  ;;  %v9823_v15 = vsub.s32 1, %v9815_v12  ;;  %v9826_v16 = vsub.s32 2, %v9815_v12  ;;  %v9829_v17 = vsub.s32 3, %v9815_v12 }
  0x94   :  { %6958 = vmatprep.subr.bf16.mxu0 %v8471_v21  ;;  %v9843_v23 = vsub.s32 5, %v9815_v12 }
  0x95   :  { %7301 = vmatpush1.bf16.msra.mxu1 %v8464_v22  ;;  %v114_v18 = vrot.slane %v9820_v14, %v9818_v13  ;;  %v118_v0 = vrot.slane %v9820_v14, %v9823_v15  ;;  %v122_v19 = vrot.slane %v9820_v14, %v9826_v16  ;;  %v126_v21 = vrot.slane %v9820_v14, %v9829_v17 }
  0x96   :  { %7302 = vmatprep.subr.bf16.mxu1 %v8473_v26  ;;  %v9840_v22 = vsub.s32 4, %v9815_v12 }
  0x97   :  { %6959 = vmatpush1.bf16.msra.mxu0 %v8470_v27 }
  0x98   :  { %6960 = vmatprep.subr.bf16.mxu0 %v8479_v30  ;;  %v130_v36 = vrot.slane %v9820_v14, %v9840_v22 }
  0x99   :  { %7303 = vmatpush1.bf16.msra.mxu1 %v8472_v31 }
  0x9a   :  { %7304 = vmatprep.subr.bf16.mxu1 %v8481_v24 }
  0x9b   :  { %6961 = vmatpush1.bf16.msra.mxu0 %v8478_v34 }
  0x9c   :  { %6962 = vmatprep.subr.bf16.mxu0 %v8487_v37  ;;  %v134_v37 = vrot.slane %v9820_v14, %v9843_v23 }
  0x9d   :  { %7305 = vmatpush1.bf16.msra.mxu1 %v8480_v38 }
  0x9e   :  { %7306 = vmatprep.subr.bf16.mxu1 %v8489_v41  ;;  %v9851_v41 = vld [vmem:[#allocation7 + $0x460] sm:$0xff] }
  0x9f   :  { %6963 = vmatpush1.bf16.msra.mxu0 %v8486_v42  ;;  %v8526_v54 = vcombine.low %v9849_v40, %v9851_v41  ;;  %v8527_v59 = vcombine.high %v9849_v40, %v9851_v41 }
  0xa0   :  { %6964 = vmatprep.subr.bf16.mxu0 %v8495_v45 }
  0xa1   :  { %7307 = vmatpush1.bf16.msra.mxu1 %v8488_v46 }
  0xa2   :  { %7308 = vmatprep.subr.bf16.mxu1 %v8497_v47  ;;  %v9853_v47 = vld [vmem:[#allocation7 + $0x448] sm:$0xff] }
  0xa3   :  { %6965 = vmatpush1.bf16.msra.mxu0 %v8494_v48  ;;  %v9855_v48 = vld [vmem:[#allocation7 + $0x468] sm:$0xff] }
  0xa4   :  { %6966 = vmatprep.subr.bf16.mxu0 %v8503_v53  ;;  %v8529_v60 = vcombine.high %v9853_v47, %v9855_v48 }
  0xa5   :  { %7309 = vmatpush1.bf16.msra.mxu1 %v8496_v49 }
  0xa6   :  { %7310 = vmatprep.subr.bf16.mxu1 %v8505_v57 }
  0xa7   :  { %6967 = vmatpush1.bf16.msra.mxu0 %v8502_v55  ;;  %v9863_v55 = vld [vmem:[#allocation7 + $0x480] sm:$0xff] }
  0xa8   :  { %6968 = vmatprep.subr.bf16.mxu0 %v8511_v61  ;;  %v9871_v61 = vld [vmem:[#allocation7 + $0x488] sm:$0xff] }
  0xa9   :  { %7311 = vmatpush1.bf16.msra.mxu1 %v8504_v56  ;;  %v9865_v56 = vld [vmem:[#allocation7 + $0x4a0] sm:$0xff] }
  0xaa   :  { %7312 = vmatprep.subr.bf16.mxu1 %v8513_v2  ;;  %v8528_v2 = vcombine.low %v9853_v47, %v9855_v48 }
  0xab   :  { %6969 = vmatpush1.bf16.msra.mxu0 %v8510_v63 }
  0xac   :  { %6981 = vmatprep.subr.bf16.mxu0 %v8519_v6  ;;  %v9879_v6 = vld [vmem:[#allocation7 + $0x4a8] sm:$0xff] }
  0xad   :  { %7313 = vmatpush1.bf16.msra.mxu1 %v8512_v1  ;;  %v8536_v3 = vcombine.low %v9871_v61, %v9879_v6  ;;  %v8537_v4 = vcombine.high %v9871_v61, %v9879_v6 }
  0xae   :  { %7325 = vmatprep.subr.bf16.mxu1 %v8521_v10  ;;  %v9881_v10 = vld [vmem:[#allocation7 + $0x4c0] sm:$0xff] }
  0xaf   :  { %v8542_v5 = vcombine.low %v9881_v10, %v9883_v11 }
 0x129   :  { %v394_v20 = vpop.f32.mrb[0].mxu0  ;;  %v437_v29 = vpop.f32.mrb[0].mxu1 }
 0x12a   :  { %v395_v25 = vadd.f32 %v394_v20, %v114_v18  ;;  %v396_v26 = vpop.f32.mrb[1].mxu0  ;;  %v438_v32 = vadd.f32 %v437_v29, %v122_v19  ;;  %v439_v33 = vpop.f32.mrb[1].mxu1  ;;  %v8534_v20 = vcombine.low %v9863_v55, %v9865_v56 }
 0x12b   :  { %v397_v27 = vadd.f32 %v396_v26, %v118_v0  ;;  %v398_v28 = vpop.f32.mrb[2].mxu0  ;;  %v440_v34 = vadd.f32 %v439_v33, %v126_v21  ;;  %v441_v35 = vpop.f32.mrb[2].mxu1  ;;  %v9895_v26 = vld [vmem:[#allocation7 + $0x4e8] sm:$0xff] }
 0x12c   :  { %v399_v30 = vadd.f32 %v398_v28, %v114_v18  ;;  %v400_v31 = vpop.f32.mrb[3].mxu0  ;;  %v704_v38 = vmax.f32 %v395_v25, 0.0  ;;  %v706_v42 = vmax.f32 %v438_v32, 0.0  ;;  %v442_v43 = vadd.f32 %v441_v35, %v122_v19  ;;  %v443_v44 = vpop.f32.mrb[3].mxu1  ;;  %v9893_v25 = vld [vmem:[#allocation7 + $0x4c8] sm:$0xff]  ;;  %v9905_v32 = vld [vmem:[#allocation7 + $0x520] sm:$0xff] }
 0x12d   :  { %v401_v24 = vadd.f32 %v400_v31, %v118_v0  ;;  %v705_v45 = vmax.f32 %v397_v27, 0.0  ;;  %v707_v49 = vmax.f32 %v440_v34, 0.0  ;;  %v444_v50 = vadd.f32 %v443_v44, %v126_v21  ;;  %v9903_v31 = vld [vmem:[#allocation7 + $0x500] sm:$0xff]  ;;  %v9935_v44 = vld [vmem:[#allocation7 + $0x528] sm:$0xff] }
 0x12e   :  { %v720_v39 = vmax.f32 %v399_v30, 0.0  ;;  %v722_v52 = vmax.f32 %v442_v43, 0.0  ;;  %v8535_v21 = vcombine.high %v9863_v55, %v9865_v56  ;;  %v9908_v34 = vsub.s32 6, %v9815_v12  ;;  %v9933_v43 = vld [vmem:[#allocation7 + $0x508] sm:$0xff]  ;;  %v9947_v56 = vld [vmem:[#allocation5 + $0x8] sm:$0xff] }
 0x12f   :  { %v721_v46 = vmax.f32 %v401_v24, 0.0  ;;  %v723_v57 = vmax.f32 %v444_v50, 0.0  ;;  %v9911_v35 = vsub.s32 7, %v9815_v12  ;;  %v8544_v40 = vcombine.low %v9893_v25, %v9895_v26 }
 0x130   :  { %v9857_v51 = vpack.c.bf16 %v720_v39, %v704_v38  ;;  %v9873_v62 = vpack.c.bf16 %v722_v52, %v706_v42  ;;  %v8545_v41 = vcombine.high %v9893_v25, %v9895_v26  ;;  %v8550_v42 = vcombine.low %v9903_v31, %v9905_v32 }
 0x131   :  { %v9859_v53 = vpack.c.bf16 %v721_v46, %v705_v45  ;;  %v480_v58 = vpop.f32.mrb[4].mxu0  ;;  %v9885_v18 = vpack.c.bf16 %v723_v57, %v707_v49  ;;  %v142_v38 = vrot.slane %v9820_v14, %v9911_v35  ;;  %v9939_v46 = vld [vmem:[#allocation7 + $0x540] sm:$0xff]  ;;  %v8551_v50 = vcombine.high %v9903_v31, %v9905_v32 }
 0x132   :  { %v481_v63 = vadd.f32 %v480_v58, %v130_v36  ;;  %v482_v1 = vpop.f32.mrb[5].mxu0  ;;  %v8553_v58 = vcombine.high %v9933_v43, %v9935_v44  ;;  %v146_v6 = vrot.slane %v9947_v56, %v9818_v13  ;;  %v158_v25 = vrot.slane %v9947_v56, %v9829_v17 }
 0x133   :  { %6970 = vmatprep.mubr.bf16.mxu0 %v9859_v53  ;;  %7314 = vmatprep.mubr.bf16.mxu1 %v9859_v53  ;;  %v483_v0 = vadd.f32 %v482_v1, %v134_v37  ;;  %v484_v19 = vpop.f32.mrb[6].mxu0  ;;  %v523_v30 = vpop.f32.mrb[4].mxu1  ;;  %v162_v31 = vrot.slane %v9947_v56, %v9840_v22  ;;  %v170_v32 = vrot.slane %v9947_v56, %v9908_v34 }
 0x134   :  { %6971 = vmatmul.mubr.bf16.vlgmr.msra.gmra.mrb[16].mxu0 %v9857_v51  ;;  %7315 = vmatmul.mubr.bf16.vlgmr.msra.gmra.mrb[16].mxu1 %v9857_v51  ;;  %v708_v27 = vmax.f32 %v481_v63, 0.0  ;;  %v485_v28 = vadd.f32 %v484_v19, %v130_v36  ;;  %v486_v29 = vpop.f32.mrb[7].mxu0  ;;  %v525_v36 = vpop.f32.mrb[5].mxu1  ;;  %v150_v19 = vrot.slane %v9947_v56, %v9823_v15 }
 0x135   :  { %6982 = vmatpush1.bf16.msra.mxu0 %v8518_v8  ;;  %7326 = vmatpush1.bf16.msra.mxu1 %v8520_v9  ;;  %v709_v33 = vmax.f32 %v483_v0, 0.0  ;;  %v487_v24 = vadd.f32 %v486_v29, %v134_v37  ;;  %v527_v8 = vpop.f32.mrb[6].mxu1  ;;  %v8543_v9 = vcombine.high %v9881_v10, %v9883_v11  ;;  %v138_v37 = vrot.slane %v9820_v14, %v9908_v34  ;;  %v9941_v14 = vld [vmem:[#allocation7 + $0x560] sm:$0xff] }
 0x136   :  { %6983 = vmatprep.subr.bf16.mxu0 %v8527_v59  ;;  %7327 = vmatprep.subr.bf16.mxu1 %v8529_v60  ;;  %v724_v7 = vmax.f32 %v485_v28, 0.0  ;;  %v529_v39 = vpop.f32.mrb[7].mxu1  ;;  %v526_v49 = vadd.f32 %v525_v36, %v142_v38  ;;  %v8559_v63 = vcombine.high %v9939_v46, %v9941_v14  ;;  %v154_v0 = vrot.slane %v9947_v56, %v9826_v16 }
 0x137   :  { %7013 = vmatprep.mubr.bf16.mxu0 %v9885_v18  ;;  %7357 = vmatprep.mubr.bf16.mxu1 %v9885_v18  ;;  %v725_v12 = vmax.f32 %v487_v24, 0.0  ;;  %v524_v48 = vadd.f32 %v523_v30, %v138_v37  ;;  %v528_v52 = vadd.f32 %v527_v8, %v138_v37  ;;  %v530_v55 = vadd.f32 %v529_v39, %v142_v38  ;;  %v9969_v24 = vld [vmem:[#allocation7 + $0x568] sm:$0xff] }
 0x138   :  { %v9937_v45 = vpack.c.bf16 %v724_v7, %v708_v27  ;;  %v711_v60 = vmax.f32 %v526_v49, 0.0 }
 0x139   :  { %6984 = vmatpush1.bf16.msra.mxu0 %v8526_v54  ;;  %7328 = vmatpush1.bf16.msra.mxu1 %v8528_v2  ;;  %v9943_v47 = vpack.c.bf16 %v725_v12, %v709_v33  ;;  %v566_v57 = vpop.f32.mrb[8].mxu0  ;;  %v8552_v54 = vcombine.low %v9933_v43, %v9935_v44  ;;  %v710_v59 = vmax.f32 %v524_v48, 0.0  ;;  %v726_v1 = vmax.f32 %v528_v52, 0.0  ;;  %v9967_v33 = vld [vmem:[#allocation7 + $0x548] sm:$0xff]  ;;  %v9976_v48 = vld [vmem:[#allocation7 + $0x5a0] sm:$0xff] }
 0x13a   :  { %6985 = vmatprep.subr.bf16.mxu0 %v8535_v21  ;;  %7329 = vmatprep.subr.bf16.mxu1 %v8537_v4  ;;  %v727_v2 = vmax.f32 %v530_v55, 0.0  ;;  %v568_v21 = vpop.f32.mrb[9].mxu0  ;;  %v567_v29 = vadd.f32 %v566_v57, %v146_v6 }
 0x13b   :  { %v609_v61 = vpop.f32.mrb[8].mxu1  ;;  %v9963_v27 = vpack.c.bf16 %v726_v1, %v710_v59  ;;  %v8561_v59 = vcombine.high %v9967_v33, %v9969_v24 }
 0x13c   :  { %v611_v26 = vpop.f32.mrb[9].mxu1  ;;  %v9965_v28 = vpack.c.bf16 %v727_v2, %v711_v60  ;;  %v610_v36 = vadd.f32 %v609_v61, %v154_v0  ;;  %v712_v37 = vmax.f32 %v567_v29, 0.0  ;;  %v9980_v60 = vld [vmem:[#allocation7 + $0x588] sm:$0xff]  ;;  %v9984_v2 = vld [vmem:[#allocation7 + $0x5c0] sm:$0xff] }
 0x13d   :  { %6986 = vmatpush1.bf16.msra.mxu0 %v8534_v20  ;;  %7330 = vmatpush1.bf16.msra.mxu1 %v8536_v3  ;;  %v570_v20 = vpop.f32.mrb[10].mxu0  ;;  %v613_v30 = vpop.f32.mrb[10].mxu1  ;;  %v569_v3 = vadd.f32 %v568_v21, %v150_v19  ;;  %v612_v4 = vadd.f32 %v611_v26, %v158_v25  ;;  %v933_v61 = vld [vmem:[#allocation7 + $0x5a8] sm:$0xff] }
 0x13e   :  { %6987 = vmatprep.subr.bf16.mxu0 %v8543_v9  ;;  %7331 = vmatprep.subr.bf16.mxu1 %v8545_v41  ;;  %v571_v7 = vadd.f32 %v570_v20, %v146_v6  ;;  %v572_v8 = vpop.f32.mrb[11].mxu0  ;;  %v615_v12 = vpop.f32.mrb[11].mxu1  ;;  %v614_v9 = vadd.f32 %v613_v30, %v154_v0  ;;  %v9974_v41 = vld [vmem:[#allocation7 + $0x580] sm:$0xff]  ;;  %v714_v49 = vmax.f32 %v610_v36, 0.0  ;;  %v9994_v21 = vld [vmem:[#allocation7 + $0x5e8] sm:$0xff] }
 0x13f   :  { %v573_v38 = vadd.f32 %v572_v8, %v150_v19  ;;  %v616_v39 = vadd.f32 %v615_v12, %v158_v25  ;;  %v713_v52 = vmax.f32 %v569_v3, 0.0  ;;  %v715_v55 = vmax.f32 %v612_v4, 0.0  ;;  %v9992_v19 = vld [vmem:[#allocation7 + $0x5c8] sm:$0xff] }
 0x140   :  { %v728_v57 = vmax.f32 %v571_v7, 0.0  ;;  %v730_v1 = vmax.f32 %v614_v9, 0.0  ;;  %v8566_v20 = vcombine.low %v9974_v41, %v9976_v48  ;;  %v8567_v30 = vcombine.high %v9974_v41, %v9976_v48  ;;  %v944_v41 = vld [vmem:[#allocation7 + $0x600] sm:$0xff] }
 0x141   :  { %6988 = vmatpush1.bf16.msra.mxu0 %v8542_v5  ;;  %7332 = vmatpush1.bf16.msra.mxu1 %v8544_v40  ;;  %v729_v10 = vmax.f32 %v573_v38, 0.0  ;;  %v731_v11 = vmax.f32 %v616_v39, 0.0  ;;  %v652_v5 = vpop.f32.mrb[12].mxu0  ;;  %v8558_v40 = vcombine.low %v9939_v46, %v9941_v14  ;;  %v8577_v46 = vcombine.high %v9992_v19, %v9994_v21 }
 0x142   :  { %6989 = vmatprep.subr.bf16.mxu0 %v8551_v50  ;;  %7333 = vmatprep.subr.bf16.mxu1 %v8553_v58  ;;  %v9986_v6 = vpack.c.bf16 %v728_v57, %v712_v37  ;;  %v8560_v50 = vcombine.low %v9967_v33, %v9969_v24  ;;  %v9990_v58 = vld [vmem:[#allocation7 + $0x5e0] sm:$0xff]  ;;  %v9996_v25 = vpack.c.bf16 %v730_v1, %v714_v49  ;;  %v654_v24 = vpop.f32.mrb[13].mxu0 }
 0x143   :  { %v695_v0 = vpop.f32.mrb[12].mxu1  ;;  %v9998_v26 = vpack.c.bf16 %v729_v10, %v713_v52  ;;  %v10000_v29 = vpack.c.bf16 %v731_v11, %v715_v55  ;;  %v8569_v33 = vcombine.high %v9980_v60, %v933_v61  ;;  %v656_v43 = vpop.f32.mrb[14].mxu0  ;;  %v8575_v3 = vcombine.high %v9984_v2, %v9990_v58  ;;  %v948_v57 = vld [vmem:[#allocation7 + $0x620] sm:$0xff] }
 0x144   :  { %v697_v36 = vpop.f32.mrb[13].mxu1  ;;  %v174_v14 = vrot.slane %v9947_v56, %v9911_v35  ;;  %v653_v7 = vadd.f32 %v652_v5, %v162_v31  ;;  %v696_v8 = vadd.f32 %v695_v0, %v170_v32  ;;  %v657_v37 = vadd.f32 %v656_v43, %v162_v31  ;;  %v956_v31 = vld [vmem:[#allocation7 + $0x660] sm:$0xff] }
 0x145   :  { %6990 = vmatpush1.bf16.msra.mxu0 %v8550_v42  ;;  %7334 = vmatpush1.bf16.msra.mxu1 %v8552_v54  ;;  %v166_v42 = vrot.slane %v9947_v56, %v9843_v23  ;;  %v699_v44 = vpop.f32.mrb[14].mxu1  ;;  %v8568_v54 = vcombine.low %v9980_v60, %v933_v61  ;;  %v945_v56 = vld [vmem:[#allocation7 + $0x608] sm:$0xff]  ;;  %v8574_v11 = vcombine.low %v9984_v2, %v9990_v58  ;;  %v960_v43 = vld [vmem:[#allocation7 + $0x680] sm:$0xff] }
 0x146   :  { %6991 = vmatprep.subr.bf16.mxu0 %v8559_v63  ;;  %7335 = vmatprep.subr.bf16.mxu1 %v8561_v59  ;;  %v658_v63 = vpop.f32.mrb[15].mxu0  ;;  %v701_v4 = vpop.f32.mrb[15].mxu1  ;;  %v698_v9 = vadd.f32 %v697_v36, %v174_v14  ;;  %v700_v38 = vadd.f32 %v699_v44, %v170_v32  ;;  %v716_v48 = vmax.f32 %v653_v7, 0.0  ;;  %v718_v49 = vmax.f32 %v696_v8, 0.0  ;;  %v949_v59 = vld [vmem:[#allocation7 + $0x628] sm:$0xff]  ;;  %v952_v36 = vld [vmem:[#allocation7 + $0x640] sm:$0xff] }
 0x147   :  { %v655_v12 = vadd.f32 %v654_v24, %v166_v42  ;;  %v659_v39 = vadd.f32 %v658_v63, %v166_v42  ;;  %v732_v55 = vmax.f32 %v657_v37, 0.0  ;;  %v702_v10 = vadd.f32 %v701_v4, %v174_v14  ;;  %v953_v32 = vld [vmem:[#allocation7 + $0x648] sm:$0xff]  ;;  %v964_v44 = vld [vmem:[#allocation7 + $0x6a0] sm:$0xff] }
 0x148   :  { %v719_v60 = vmax.f32 %v698_v9, 0.0  ;;  %v734_v61 = vmax.f32 %v700_v38, 0.0  ;;  %v8585_v24 = vcombine.high %v945_v56, %v949_v59  ;;  %v957_v2 = vld [vmem:[#allocation7 + $0x668] sm:$0xff]  ;;  %v8584_v42 = vcombine.low %v945_v56, %v949_v59  ;;  %v968_v7 = vld [vmem:[#allocation7 + $0x6c0] sm:$0xff] }
 0x149   :  { %6992 = vmatpush1.bf16.msra.mxu0 %v8558_v40  ;;  %7336 = vmatpush1.bf16.msra.mxu1 %v8560_v50  ;;  %v717_v52 = vmax.f32 %v655_v12, 0.0  ;;  %v733_v1 = vmax.f32 %v659_v39, 0.0  ;;  %v10031_v5 = vpack.c.bf16 %v732_v55, %v716_v48  ;;  %v8576_v40 = vcombine.low %v9992_v19, %v9994_v21  ;;  %v972_v8 = vld [vmem:[#allocation7 + $0x6e0] sm:$0xff]  ;;  %v969_v12 = vld [vmem:[#allocation7 + $0x6c8] sm:$0xff] }
 0x14a   :  { %6993 = vmatprep.subr.bf16.mxu0 %v8567_v30  ;;  %7337 = vmatprep.subr.bf16.mxu1 %v8569_v33  ;;  %v10035_v0 = vpack.c.bf16 %v734_v61, %v718_v49  ;;  %v735_v30 = vmax.f32 %v702_v10, 0.0  ;;  %v8583_v33 = vcombine.high %v944_v41, %v948_v57  ;;  %v8591_v19 = vcombine.high %v952_v36, %v956_v31  ;;  %v973_v37 = vld [vmem:[#allocation7 + $0x6e8] sm:$0xff]  ;;  %v976_v48 = vld [vmem:[#allocation7 + $0x700] sm:$0xff] }
 0x14b   :  { %v10037_v50 = vpack.c.bf16 %v733_v1, %v717_v52  ;;  %v8593_v21 = vcombine.high %v953_v32, %v957_v2  ;;  %v8592_v14 = vcombine.low %v953_v32, %v957_v2  ;;  %v8599_v63 = vcombine.high %v960_v43, %v964_v44  ;;  %v980_v49 = vld [vmem:[#allocation7 + $0x720] sm:$0xff]  ;;  %v977_v52 = vld [vmem:[#allocation7 + $0x708] sm:$0xff] }
 0x14c   :  { %v10039_v58 = vpack.c.bf16 %v735_v30, %v719_v60  ;;  %v8598_v9 = vcombine.low %v960_v43, %v964_v44  ;;  %v8607_v39 = vcombine.high %v968_v7, %v972_v8  ;;  %v981_v55 = vld [vmem:[#allocation7 + $0x728] sm:$0xff]  ;;  %v8608_v56 = vcombine.low %v969_v12, %v973_v37  ;;  %v984_v61 = vld [vmem:[#allocation7 + $0x740] sm:$0xff] }
 0x14d   :  { %6994 = vmatpush1.bf16.msra.mxu0 %v8566_v20  ;;  %7338 = vmatpush1.bf16.msra.mxu1 %v8568_v54  ;;  %v8582_v20 = vcombine.low %v944_v41, %v948_v57  ;;  %v961_v54 = vld [vmem:[#allocation7 + $0x688] sm:$0xff]  ;;  %v8609_v41 = vcombine.high %v969_v12, %v973_v37  ;;  %v8606_v57 = vcombine.low %v968_v7, %v972_v8  ;;  %v988_v1 = vld [vmem:[#allocation7 + $0x760] sm:$0xff] }
 0x14e   :  { %6995 = vmatprep.subr.bf16.mxu0 %v8575_v3  ;;  %7339 = vmatprep.subr.bf16.mxu1 %v8577_v46  ;;  %v965_v3 = vld [vmem:[#allocation7 + $0x6a8] sm:$0xff]  ;;  %v8590_v46 = vcombine.low %v952_v36, %v956_v31  ;;  %v8615_v59 = vcombine.high %v976_v48, %v980_v49  ;;  %v8617_v60 = vcombine.high %v977_v52, %v981_v55  ;;  %v992_v36 = vld [vmem:[#allocation7 + $0x780] sm:$0xff] }
 0x14f   :  { %v8601_v4 = vcombine.high %v961_v54, %v965_v3  ;;  %v8600_v38 = vcombine.low %v961_v54, %v965_v3  ;;  %v985_v10 = vld [vmem:[#allocation7 + $0x748] sm:$0xff]  ;;  %v8616_v30 = vcombine.low %v977_v52, %v981_v55  ;;  %v996_v31 = vld [vmem:[#allocation7 + $0x7a0] sm:$0xff] }
 0x150   :  { %v993_v32 = vld [vmem:[#allocation7 + $0x788] sm:$0xff]  ;;  %v1000_v43 = vld [vmem:[#allocation7 + $0x7c0] sm:$0xff] }
 0x151   :  { %6996 = vmatpush1.bf16.msra.mxu0 %v8574_v11  ;;  %7340 = vmatpush1.bf16.msra.mxu1 %v8576_v40  ;;  %v989_v11 = vld [vmem:[#allocation7 + $0x768] sm:$0xff]  ;;  %v8614_v40 = vcombine.low %v976_v48, %v980_v49  ;;  %v1004_v44 = vld [vmem:[#allocation7 + $0x7e0] sm:$0xff] }
 0x152   :  { %6997 = vmatprep.subr.bf16.mxu0 %v8583_v33  ;;  %7341 = vmatprep.subr.bf16.mxu1 %v8585_v24  ;;  %v8623_v33 = vcombine.high %v984_v61, %v988_v1  ;;  %v8625_v24 = vcombine.high %v985_v10, %v989_v11  ;;  %v997_v2 = vld [vmem:[#allocation7 + $0x7a8] sm:$0xff]  ;;  %v1008_v7 = vld [vmem:[#allocation7 + $0x800] sm:$0xff] }
 0x153   :  { %v1001_v54 = vld [vmem:[#allocation7 + $0x7c8] sm:$0xff]  ;;  %v1012_v8 = vld [vmem:[#allocation7 + $0x820] sm:$0xff] }
 0x154   :  { %v1005_v3 = vld [vmem:[#allocation7 + $0x7e8] sm:$0xff]  ;;  %v1016_v48 = vld [vmem:[#allocation7 + $0x840] sm:$0xff] }
 0x155   :  { %6998 = vmatpush1.bf16.msra.mxu0 %v8582_v20  ;;  %7342 = vmatpush1.bf16.msra.mxu1 %v8584_v42  ;;  %v8622_v20 = vcombine.low %v984_v61, %v988_v1  ;;  %v8624_v42 = vcombine.low %v985_v10, %v989_v11  ;;  %v1009_v12 = vld [vmem:[#allocation7 + $0x808] sm:$0xff]  ;;  %v1020_v49 = vld [vmem:[#allocation7 + $0x860] sm:$0xff] }
 0x156   :  { %6999 = vmatprep.subr.bf16.mxu0 %v8591_v19  ;;  %7343 = vmatprep.subr.bf16.mxu1 %v8593_v21  ;;  %v8631_v19 = vcombine.high %v992_v36, %v996_v31  ;;  %v8633_v21 = vcombine.high %v993_v32, %v997_v2  ;;  %v1013_v37 = vld [vmem:[#allocation7 + $0x828] sm:$0xff]  ;;  %v1024_v61 = vld [vmem:[#allocation7 + $0x880] sm:$0xff] }
 0x157   :  { %v1017_v52 = vld [vmem:[#allocation7 + $0x848] sm:$0xff]  ;;  %v1028_v1 = vld [vmem:[#allocation7 + $0x8a0] sm:$0xff] }
 0x158   :  { %v1021_v55 = vld [vmem:[#allocation7 + $0x868] sm:$0xff] }
 0x159   :  { %7000 = vmatpush1.bf16.msra.mxu0 %v8590_v46  ;;  %7344 = vmatpush1.bf16.msra.mxu1 %v8592_v14  ;;  %v8630_v46 = vcombine.low %v992_v36, %v996_v31  ;;  %v8632_v14 = vcombine.low %v993_v32, %v997_v2  ;;  %v1025_v10 = vld [vmem:[#allocation7 + $0x888] sm:$0xff]  ;;  %v1032_v36 = vld [vmem:[#allocation7 + $0x8c0] sm:$0xff] }
 0x15a   :  { %7001 = vmatprep.subr.bf16.mxu0 %v8599_v63  ;;  %7345 = vmatprep.subr.bf16.mxu1 %v8601_v4  ;;  %v8639_v63 = vcombine.high %v1000_v43, %v1004_v44  ;;  %v8641_v4 = vcombine.high %v1001_v54, %v1005_v3  ;;  %v1029_v11 = vld [vmem:[#allocation7 + $0x8a8] sm:$0xff]  ;;  %v1036_v31 = vld [vmem:[#allocation7 + $0x8e0] sm:$0xff] }
 0x15b   :  { %v1033_v32 = vld [vmem:[#allocation7 + $0x8c8] sm:$0xff] }
 0x15c   :  { %v1037_v2 = vld [vmem:[#allocation7 + $0x8e8] sm:$0xff] }
 0x15d   :  { %7002 = vmatpush1.bf16.msra.mxu0 %v8598_v9  ;;  %7346 = vmatpush1.bf16.msra.mxu1 %v8600_v38  ;;  %v8638_v9 = vcombine.low %v1000_v43, %v1004_v44  ;;  %v8640_v38 = vcombine.low %v1001_v54, %v1005_v3  ;;  %v1040_v43 = vld [vmem:[#allocation7 + $0x900] sm:$0xff]  ;;  %v1041_v54 = vld [vmem:[#allocation7 + $0x908] sm:$0xff] }
 0x15e   :  { %7003 = vmatprep.subr.bf16.mxu0 %v8607_v39  ;;  %7347 = vmatprep.subr.bf16.mxu1 %v8609_v41  ;;  %v8647_v39 = vcombine.high %v1008_v7, %v1012_v8  ;;  %v8649_v41 = vcombine.high %v1009_v12, %v1013_v37  ;;  %v1044_v44 = vld [vmem:[#allocation7 + $0x920] sm:$0xff]  ;;  %v1045_v3 = vld [vmem:[#allocation7 + $0x928] sm:$0xff] }
 0x161   :  { %7004 = vmatpush1.bf16.msra.mxu0 %v8606_v57  ;;  %7348 = vmatpush1.bf16.msra.mxu1 %v8608_v56  ;;  %v8646_v57 = vcombine.low %v1008_v7, %v1012_v8  ;;  %v8648_v56 = vcombine.low %v1009_v12, %v1013_v37  ;;  %v1048_v7 = vld [vmem:[#allocation7 + $0x940] sm:$0xff]  ;;  %v1049_v12 = vld [vmem:[#allocation7 + $0x948] sm:$0xff] }
 0x162   :  { %7005 = vmatprep.subr.bf16.mxu0 %v8615_v59  ;;  %7349 = vmatprep.subr.bf16.mxu1 %v8617_v60  ;;  %v8655_v59 = vcombine.high %v1016_v48, %v1020_v49  ;;  %v8657_v60 = vcombine.high %v1017_v52, %v1021_v55  ;;  %v1052_v8 = vld [vmem:[#allocation7 + $0x960] sm:$0xff]  ;;  %v1053_v37 = vld [vmem:[#allocation7 + $0x968] sm:$0xff] }
 0x165   :  { %7006 = vmatpush1.bf16.msra.mxu0 %v8614_v40  ;;  %7350 = vmatpush1.bf16.msra.mxu1 %v8616_v30  ;;  %v8654_v40 = vcombine.low %v1016_v48, %v1020_v49  ;;  %v8656_v30 = vcombine.low %v1017_v52, %v1021_v55  ;;  %v1056_v48 = vld [vmem:[#allocation7 + $0x980] sm:$0xff]  ;;  %v1057_v52 = vld [vmem:[#allocation7 + $0x988] sm:$0xff] }
 0x166   :  { %7007 = vmatprep.subr.bf16.mxu0 %v8623_v33  ;;  %7351 = vmatprep.subr.bf16.mxu1 %v8625_v24  ;;  %v8663_v33 = vcombine.high %v1024_v61, %v1028_v1  ;;  %v8665_v24 = vcombine.high %v1025_v10, %v1029_v11  ;;  %v1060_v49 = vld [vmem:[#allocation7 + $0x9a0] sm:$0xff]  ;;  %v1061_v55 = vld [vmem:[#allocation7 + $0x9a8] sm:$0xff] }
 0x169   :  { %7008 = vmatpush1.bf16.msra.mxu0 %v8622_v20  ;;  %7352 = vmatpush1.bf16.msra.mxu1 %v8624_v42  ;;  %v8662_v20 = vcombine.low %v1024_v61, %v1028_v1  ;;  %v8664_v42 = vcombine.low %v1025_v10, %v1029_v11  ;;  %v1064_v61 = vld [vmem:[#allocation7 + $0x9c0] sm:$0xff]  ;;  %v1065_v10 = vld [vmem:[#allocation7 + $0x9c8] sm:$0xff] }
 0x16a   :  { %7009 = vmatprep.subr.bf16.mxu0 %v8631_v19  ;;  %7353 = vmatprep.subr.bf16.mxu1 %v8633_v21  ;;  %v8671_v19 = vcombine.high %v1032_v36, %v1036_v31  ;;  %v8673_v21 = vcombine.high %v1033_v32, %v1037_v2  ;;  %v1068_v1 = vld [vmem:[#allocation7 + $0x9e0] sm:$0xff]  ;;  %v1069_v11 = vld [vmem:[#allocation7 + $0x9e8] sm:$0xff] }
 0x16d   :  { %7010 = vmatpush1.bf16.msra.mxu0 %v8630_v46  ;;  %7354 = vmatpush1.bf16.msra.mxu1 %v8632_v14  ;;  %v8670_v46 = vcombine.low %v1032_v36, %v1036_v31  ;;  %v8672_v14 = vcombine.low %v1033_v32, %v1037_v2  ;;  %v1072_v36 = vld [vmem:[#allocation7 + $0xa00] sm:$0xff]  ;;  %v1073_v32 = vld [vmem:[#allocation7 + $0xa08] sm:$0xff] }
 0x16e   :  { %7011 = vmatprep.subr.bf16.mxu0 %v8639_v63  ;;  %7355 = vmatprep.subr.bf16.mxu1 %v8641_v4  ;;  %v8679_v63 = vcombine.high %v1040_v43, %v1044_v44  ;;  %v8681_v4 = vcombine.high %v1041_v54, %v1045_v3  ;;  %v1076_v31 = vld [vmem:[#allocation7 + $0xa20] sm:$0xff]  ;;  %v1077_v2 = vld [vmem:[#allocation7 + $0xa28] sm:$0xff] }
 0x171   :  { %7012 = vmatpush1.bf16.msra.mxu0 %v8638_v9  ;;  %7356 = vmatpush1.bf16.msra.mxu1 %v8640_v38  ;;  %v8678_v9 = vcombine.low %v1040_v43, %v1044_v44  ;;  %v8680_v38 = vcombine.low %v1041_v54, %v1045_v3  ;;  %v1080_v43 = vld [vmem:[#allocation7 + $0xa40] sm:$0xff]  ;;  %v1081_v54 = vld [vmem:[#allocation7 + $0xa48] sm:$0xff] }
 0x172   :  { %7024 = vmatprep.subr.bf16.mxu0 %v8647_v39  ;;  %7368 = vmatprep.subr.bf16.mxu1 %v8649_v41  ;;  %v8687_v39 = vcombine.high %v1048_v7, %v1052_v8  ;;  %v8689_v41 = vcombine.high %v1049_v12, %v1053_v37  ;;  %v1084_v44 = vld [vmem:[#allocation7 + $0xa60] sm:$0xff]  ;;  %v1085_v3 = vld [vmem:[#allocation7 + $0xa68] sm:$0xff] }
 0x174   :  { %7014 = vmatmul.mubr.bf16.vlgmr.msra.gmra.mrb[16].mxu0 %v9873_v62  ;;  %7358 = vmatmul.mubr.bf16.vlgmr.msra.gmra.mrb[16].mxu1 %v9873_v62 }
 0x175   :  { %7025 = vmatpush1.bf16.msra.mxu0 %v8646_v57  ;;  %7369 = vmatpush1.bf16.msra.mxu1 %v8648_v56  ;;  %v8686_v57 = vcombine.low %v1048_v7, %v1052_v8  ;;  %v8688_v56 = vcombine.low %v1049_v12, %v1053_v37  ;;  %v1088_v7 = vld [vmem:[#allocation7 + $0xa80] sm:$0xff]  ;;  %v1089_v12 = vld [vmem:[#allocation7 + $0xa88] sm:$0xff] }
 0x176   :  { %7026 = vmatprep.subr.bf16.mxu0 %v8655_v59  ;;  %7370 = vmatprep.subr.bf16.mxu1 %v8657_v60  ;;  %v8695_v59 = vcombine.high %v1056_v48, %v1060_v49  ;;  %v8697_v60 = vcombine.high %v1057_v52, %v1061_v55  ;;  %v1092_v8 = vld [vmem:[#allocation7 + $0xaa0] sm:$0xff]  ;;  %v1093_v37 = vld [vmem:[#allocation7 + $0xaa8] sm:$0xff] }
 0x177   :  { %7056 = vmatprep.mubr.bf16.mxu0 %v9943_v47  ;;  %7400 = vmatprep.mubr.bf16.mxu1 %v9943_v47 }
 0x179   :  { %7027 = vmatpush1.bf16.msra.mxu0 %v8654_v40  ;;  %7371 = vmatpush1.bf16.msra.mxu1 %v8656_v30  ;;  %v8694_v40 = vcombine.low %v1056_v48, %v1060_v49  ;;  %v8696_v30 = vcombine.low %v1057_v52, %v1061_v55  ;;  %v1096_v48 = vld [vmem:[#allocation7 + $0xac0] sm:$0xff]  ;;  %v1097_v52 = vld [vmem:[#allocation7 + $0xac8] sm:$0xff] }
 0x17a   :  { %7028 = vmatprep.subr.bf16.mxu0 %v8663_v33  ;;  %7372 = vmatprep.subr.bf16.mxu1 %v8665_v24  ;;  %v8703_v33 = vcombine.high %v1064_v61, %v1068_v1  ;;  %v8705_v24 = vcombine.high %v1065_v10, %v1069_v11  ;;  %v1100_v49 = vld [vmem:[#allocation7 + $0xae0] sm:$0xff]  ;;  %v1101_v55 = vld [vmem:[#allocation7 + $0xae8] sm:$0xff] }
 0x17d   :  { %7029 = vmatpush1.bf16.msra.mxu0 %v8662_v20  ;;  %7373 = vmatpush1.bf16.msra.mxu1 %v8664_v42  ;;  %v8702_v20 = vcombine.low %v1064_v61, %v1068_v1  ;;  %v8704_v42 = vcombine.low %v1065_v10, %v1069_v11  ;;  %v1104_v61 = vld [vmem:[#allocation7 + $0xb00] sm:$0xff]  ;;  %v1105_v10 = vld [vmem:[#allocation7 + $0xb08] sm:$0xff] }
 0x17e   :  { %7030 = vmatprep.subr.bf16.mxu0 %v8671_v19  ;;  %7374 = vmatprep.subr.bf16.mxu1 %v8673_v21  ;;  %v8711_v19 = vcombine.high %v1072_v36, %v1076_v31  ;;  %v8713_v21 = vcombine.high %v1073_v32, %v1077_v2  ;;  %v1108_v1 = vld [vmem:[#allocation7 + $0xb20] sm:$0xff]  ;;  %v1109_v11 = vld [vmem:[#allocation7 + $0xb28] sm:$0xff] }
 0x181   :  { %7031 = vmatpush1.bf16.msra.mxu0 %v8670_v46  ;;  %7375 = vmatpush1.bf16.msra.mxu1 %v8672_v14  ;;  %v8710_v46 = vcombine.low %v1072_v36, %v1076_v31  ;;  %v8712_v14 = vcombine.low %v1073_v32, %v1077_v2  ;;  %v1112_v36 = vld [vmem:[#allocation7 + $0xb40] sm:$0xff]  ;;  %v1113_v32 = vld [vmem:[#allocation7 + $0xb48] sm:$0xff] }
 0x182   :  { %7032 = vmatprep.subr.bf16.mxu0 %v8679_v63  ;;  %7376 = vmatprep.subr.bf16.mxu1 %v8681_v4  ;;  %v8719_v63 = vcombine.high %v1080_v43, %v1084_v44  ;;  %v8721_v4 = vcombine.high %v1081_v54, %v1085_v3  ;;  %v1116_v31 = vld [vmem:[#allocation7 + $0xb60] sm:$0xff]  ;;  %v1117_v2 = vld [vmem:[#allocation7 + $0xb68] sm:$0xff] }
 0x185   :  { %7033 = vmatpush1.bf16.msra.mxu0 %v8678_v9  ;;  %7377 = vmatpush1.bf16.msra.mxu1 %v8680_v38  ;;  %v8718_v9 = vcombine.low %v1080_v43, %v1084_v44  ;;  %v8720_v38 = vcombine.low %v1081_v54, %v1085_v3  ;;  %v1120_v43 = vld [vmem:[#allocation7 + $0xb80] sm:$0xff]  ;;  %v1121_v54 = vld [vmem:[#allocation7 + $0xb88] sm:$0xff] }
 0x186   :  { %7034 = vmatprep.subr.bf16.mxu0 %v8687_v39  ;;  %7378 = vmatprep.subr.bf16.mxu1 %v8689_v41  ;;  %v8727_v39 = vcombine.high %v1088_v7, %v1092_v8  ;;  %v8729_v41 = vcombine.high %v1089_v12, %v1093_v37  ;;  %v1124_v44 = vld [vmem:[#allocation7 + $0xba0] sm:$0xff]  ;;  %v1125_v3 = vld [vmem:[#allocation7 + $0xba8] sm:$0xff] }
 0x189   :  { %7035 = vmatpush1.bf16.msra.mxu0 %v8686_v57  ;;  %7379 = vmatpush1.bf16.msra.mxu1 %v8688_v56  ;;  %v8726_v57 = vcombine.low %v1088_v7, %v1092_v8  ;;  %v8728_v56 = vcombine.low %v1089_v12, %v1093_v37  ;;  %v1128_v7 = vld [vmem:[#allocation7 + $0xbc0] sm:$0xff]  ;;  %v1129_v12 = vld [vmem:[#allocation7 + $0xbc8] sm:$0xff] }
 0x18a   :  { %7036 = vmatprep.subr.bf16.mxu0 %v8695_v59  ;;  %7380 = vmatprep.subr.bf16.mxu1 %v8697_v60  ;;  %v8735_v59 = vcombine.high %v1096_v48, %v1100_v49  ;;  %v8737_v60 = vcombine.high %v1097_v52, %v1101_v55  ;;  %v1132_v8 = vld [vmem:[#allocation7 + $0xbe0] sm:$0xff]  ;;  %v1133_v37 = vld [vmem:[#allocation7 + $0xbe8] sm:$0xff] }
 0x18d   :  { %7037 = vmatpush1.bf16.msra.mxu0 %v8694_v40  ;;  %7381 = vmatpush1.bf16.msra.mxu1 %v8696_v30  ;;  %v8734_v40 = vcombine.low %v1096_v48, %v1100_v49  ;;  %v8736_v30 = vcombine.low %v1097_v52, %v1101_v55  ;;  %v1136_v48 = vld [vmem:[#allocation7 + $0xc00] sm:$0xff]  ;;  %v1137_v52 = vld [vmem:[#allocation7 + $0xc08] sm:$0xff] }
 0x18e   :  { %7038 = vmatprep.subr.bf16.mxu0 %v8703_v33  ;;  %7382 = vmatprep.subr.bf16.mxu1 %v8705_v24  ;;  %v8743_v33 = vcombine.high %v1104_v61, %v1108_v1  ;;  %v8745_v24 = vcombine.high %v1105_v10, %v1109_v11  ;;  %v1140_v49 = vld [vmem:[#allocation7 + $0xc20] sm:$0xff]  ;;  %v1141_v55 = vld [vmem:[#allocation7 + $0xc28] sm:$0xff] }
 0x191   :  { %7039 = vmatpush1.bf16.msra.mxu0 %v8702_v20  ;;  %7383 = vmatpush1.bf16.msra.mxu1 %v8704_v42  ;;  %v8742_v20 = vcombine.low %v1104_v61, %v1108_v1  ;;  %v8744_v42 = vcombine.low %v1105_v10, %v1109_v11  ;;  %v1144_v61 = vld [vmem:[#allocation7 + $0xc40] sm:$0xff]  ;;  %v1145_v10 = vld [vmem:[#allocation7 + $0xc48] sm:$0xff] }
 0x192   :  { %7040 = vmatprep.subr.bf16.mxu0 %v8711_v19  ;;  %7384 = vmatprep.subr.bf16.mxu1 %v8713_v21  ;;  %v8751_v19 = vcombine.high %v1112_v36, %v1116_v31  ;;  %v8753_v21 = vcombine.high %v1113_v32, %v1117_v2  ;;  %v1148_v1 = vld [vmem:[#allocation7 + $0xc60] sm:$0xff]  ;;  %v1149_v11 = vld [vmem:[#allocation7 + $0xc68] sm:$0xff] }
 0x195   :  { %7041 = vmatpush1.bf16.msra.mxu0 %v8710_v46  ;;  %7385 = vmatpush1.bf16.msra.mxu1 %v8712_v14  ;;  %v8750_v46 = vcombine.low %v1112_v36, %v1116_v31  ;;  %v8752_v14 = vcombine.low %v1113_v32, %v1117_v2  ;;  %v1152_v36 = vld [vmem:[#allocation7 + $0xc80] sm:$0xff]  ;;  %v1153_v32 = vld [vmem:[#allocation7 + $0xc88] sm:$0xff] }
 0x196   :  { %7042 = vmatprep.subr.bf16.mxu0 %v8719_v63  ;;  %7386 = vmatprep.subr.bf16.mxu1 %v8721_v4  ;;  %v8759_v63 = vcombine.high %v1120_v43, %v1124_v44  ;;  %v8761_v4 = vcombine.high %v1121_v54, %v1125_v3  ;;  %v1156_v31 = vld [vmem:[#allocation7 + $0xca0] sm:$0xff]  ;;  %v1157_v2 = vld [vmem:[#allocation7 + $0xca8] sm:$0xff] }
 0x199   :  { %7043 = vmatpush1.bf16.msra.mxu0 %v8718_v9  ;;  %7387 = vmatpush1.bf16.msra.mxu1 %v8720_v38  ;;  %v8758_v9 = vcombine.low %v1120_v43, %v1124_v44  ;;  %v8760_v38 = vcombine.low %v1121_v54, %v1125_v3  ;;  %v1160_v43 = vld [vmem:[#allocation7 + $0xcc0] sm:$0xff]  ;;  %v1161_v54 = vld [vmem:[#allocation7 + $0xcc8] sm:$0xff] }
 0x19a   :  { %7044 = vmatprep.subr.bf16.mxu0 %v8727_v39  ;;  %7388 = vmatprep.subr.bf16.mxu1 %v8729_v41  ;;  %v8767_v39 = vcombine.high %v1128_v7, %v1132_v8  ;;  %v8769_v41 = vcombine.high %v1129_v12, %v1133_v37  ;;  %v1164_v44 = vld [vmem:[#allocation7 + $0xce0] sm:$0xff]  ;;  %v1165_v3 = vld [vmem:[#allocation7 + $0xce8] sm:$0xff] }
 0x19d   :  { %7045 = vmatpush1.bf16.msra.mxu0 %v8726_v57  ;;  %7389 = vmatpush1.bf16.msra.mxu1 %v8728_v56  ;;  %v8766_v57 = vcombine.low %v1128_v7, %v1132_v8  ;;  %v8768_v56 = vcombine.low %v1129_v12, %v1133_v37  ;;  %v1168_v7 = vld [vmem:[#allocation7 + $0xd00] sm:$0xff]  ;;  %v1169_v12 = vld [vmem:[#allocation7 + $0xd08] sm:$0xff] }
 0x19e   :  { %7046 = vmatprep.subr.bf16.mxu0 %v8735_v59  ;;  %7390 = vmatprep.subr.bf16.mxu1 %v8737_v60  ;;  %v8775_v59 = vcombine.high %v1136_v48, %v1140_v49  ;;  %v8777_v60 = vcombine.high %v1137_v52, %v1141_v55  ;;  %v1172_v8 = vld [vmem:[#allocation7 + $0xd20] sm:$0xff]  ;;  %v1173_v37 = vld [vmem:[#allocation7 + $0xd28] sm:$0xff] }
 0x1a1   :  { %7047 = vmatpush1.bf16.msra.mxu0 %v8734_v40  ;;  %7391 = vmatpush1.bf16.msra.mxu1 %v8736_v30  ;;  %v8774_v40 = vcombine.low %v1136_v48, %v1140_v49  ;;  %v8776_v30 = vcombine.low %v1137_v52, %v1141_v55  ;;  %v1176_v48 = vld [vmem:[#allocation7 + $0xd40] sm:$0xff]  ;;  %v1177_v52 = vld [vmem:[#allocation7 + $0xd48] sm:$0xff] }
 0x1a2   :  { %7048 = vmatprep.subr.bf16.mxu0 %v8743_v33  ;;  %7392 = vmatprep.subr.bf16.mxu1 %v8745_v24  ;;  %v8783_v33 = vcombine.high %v1144_v61, %v1148_v1  ;;  %v8785_v24 = vcombine.high %v1145_v10, %v1149_v11  ;;  %v1180_v49 = vld [vmem:[#allocation7 + $0xd60] sm:$0xff]  ;;  %v1181_v55 = vld [vmem:[#allocation7 + $0xd68] sm:$0xff] }
 0x1a5   :  { %7049 = vmatpush1.bf16.msra.mxu0 %v8742_v20  ;;  %7393 = vmatpush1.bf16.msra.mxu1 %v8744_v42  ;;  %v8782_v20 = vcombine.low %v1144_v61, %v1148_v1  ;;  %v8784_v42 = vcombine.low %v1145_v10, %v1149_v11  ;;  %v1184_v61 = vld [vmem:[#allocation7 + $0xd80] sm:$0xff]  ;;  %v1185_v10 = vld [vmem:[#allocation7 + $0xd88] sm:$0xff] }
 0x1a6   :  { %7050 = vmatprep.subr.bf16.mxu0 %v8751_v19  ;;  %7394 = vmatprep.subr.bf16.mxu1 %v8753_v21  ;;  %v8791_v19 = vcombine.high %v1152_v36, %v1156_v31  ;;  %v8793_v21 = vcombine.high %v1153_v32, %v1157_v2  ;;  %v1188_v1 = vld [vmem:[#allocation7 + $0xda0] sm:$0xff]  ;;  %v1189_v11 = vld [vmem:[#allocation7 + $0xda8] sm:$0xff] }
 0x1a9   :  { %7051 = vmatpush1.bf16.msra.mxu0 %v8750_v46  ;;  %7395 = vmatpush1.bf16.msra.mxu1 %v8752_v14  ;;  %v8790_v46 = vcombine.low %v1152_v36, %v1156_v31  ;;  %v8792_v14 = vcombine.low %v1153_v32, %v1157_v2  ;;  %v1192_v36 = vld [vmem:[#allocation7 + $0xdc0] sm:$0xff]  ;;  %v1193_v32 = vld [vmem:[#allocation7 + $0xdc8] sm:$0xff] }
 0x1aa   :  { %7052 = vmatprep.subr.bf16.mxu0 %v8759_v63  ;;  %7396 = vmatprep.subr.bf16.mxu1 %v8761_v4  ;;  %v8799_v63 = vcombine.high %v1160_v43, %v1164_v44  ;;  %v8801_v4 = vcombine.high %v1161_v54, %v1165_v3  ;;  %v1196_v31 = vld [vmem:[#allocation7 + $0xde0] sm:$0xff]  ;;  %v1197_v2 = vld [vmem:[#allocation7 + $0xde8] sm:$0xff] }
 0x1ad   :  { %7053 = vmatpush1.bf16.msra.mxu0 %v8758_v9  ;;  %7397 = vmatpush1.bf16.msra.mxu1 %v8760_v38  ;;  %v8798_v9 = vcombine.low %v1160_v43, %v1164_v44  ;;  %v8800_v38 = vcombine.low %v1161_v54, %v1165_v3  ;;  %v1200_v43 = vld [vmem:[#allocation7 + $0xe00] sm:$0xff]  ;;  %v1201_v54 = vld [vmem:[#allocation7 + $0xe08] sm:$0xff] }
 0x1ae   :  { %7054 = vmatprep.subr.bf16.mxu0 %v8767_v39  ;;  %7398 = vmatprep.subr.bf16.mxu1 %v8769_v41  ;;  %v8807_v39 = vcombine.high %v1168_v7, %v1172_v8  ;;  %v8809_v41 = vcombine.high %v1169_v12, %v1173_v37  ;;  %v1204_v44 = vld [vmem:[#allocation7 + $0xe20] sm:$0xff]  ;;  %v1205_v3 = vld [vmem:[#allocation7 + $0xe28] sm:$0xff] }
 0x1b1   :  { %7055 = vmatpush1.bf16.msra.mxu0 %v8766_v57  ;;  %7399 = vmatpush1.bf16.msra.mxu1 %v8768_v56  ;;  %v8806_v57 = vcombine.low %v1168_v7, %v1172_v8  ;;  %v8808_v56 = vcombine.low %v1169_v12, %v1173_v37  ;;  %v1208_v7 = vld [vmem:[#allocation7 + $0xe40] sm:$0xff]  ;;  %v1209_v12 = vld [vmem:[#allocation7 + $0xe48] sm:$0xff] }
 0x1b2   :  { %7067 = vmatprep.subr.bf16.mxu0 %v8775_v59  ;;  %7411 = vmatprep.subr.bf16.mxu1 %v8777_v60  ;;  %v8815_v59 = vcombine.high %v1176_v48, %v1180_v49  ;;  %v8817_v60 = vcombine.high %v1177_v52, %v1181_v55  ;;  %v1212_v8 = vld [vmem:[#allocation7 + $0xe60] sm:$0xff]  ;;  %v1213_v37 = vld [vmem:[#allocation7 + $0xe68] sm:$0xff] }
 0x1b4   :  { %7057 = vmatmul.mubr.bf16.vlgmr.msra.gmra.mrb[16].mxu0 %v9937_v45  ;;  %7401 = vmatmul.mubr.bf16.vlgmr.msra.gmra.mrb[16].mxu1 %v9937_v45 }
 0x1b5   :  { %7068 = vmatpush1.bf16.msra.mxu0 %v8774_v40  ;;  %7412 = vmatpush1.bf16.msra.mxu1 %v8776_v30  ;;  %v8814_v40 = vcombine.low %v1176_v48, %v1180_v49  ;;  %v8816_v30 = vcombine.low %v1177_v52, %v1181_v55  ;;  %v1216_v48 = vld [vmem:[#allocation7 + $0xe80] sm:$0xff]  ;;  %v1217_v52 = vld [vmem:[#allocation7 + $0xe88] sm:$0xff] }
 0x1b6   :  { %7069 = vmatprep.subr.bf16.mxu0 %v8783_v33  ;;  %7413 = vmatprep.subr.bf16.mxu1 %v8785_v24  ;;  %v8823_v33 = vcombine.high %v1184_v61, %v1188_v1  ;;  %v8825_v24 = vcombine.high %v1185_v10, %v1189_v11  ;;  %v1220_v49 = vld [vmem:[#allocation7 + $0xea0] sm:$0xff]  ;;  %v1221_v55 = vld [vmem:[#allocation7 + $0xea8] sm:$0xff] }
 0x1b7   :  { %7099 = vmatprep.mubr.bf16.mxu0 %v9965_v28  ;;  %7443 = vmatprep.mubr.bf16.mxu1 %v9965_v28 }
 0x1b9   :  { %7070 = vmatpush1.bf16.msra.mxu0 %v8782_v20  ;;  %7414 = vmatpush1.bf16.msra.mxu1 %v8784_v42  ;;  %v8822_v20 = vcombine.low %v1184_v61, %v1188_v1  ;;  %v8824_v42 = vcombine.low %v1185_v10, %v1189_v11  ;;  %v1224_v61 = vld [vmem:[#allocation7 + $0xec0] sm:$0xff]  ;;  %v1225_v10 = vld [vmem:[#allocation7 + $0xec8] sm:$0xff] }
 0x1ba   :  { %7071 = vmatprep.subr.bf16.mxu0 %v8791_v19  ;;  %7415 = vmatprep.subr.bf16.mxu1 %v8793_v21  ;;  %v8831_v19 = vcombine.high %v1192_v36, %v1196_v31  ;;  %v8833_v21 = vcombine.high %v1193_v32, %v1197_v2  ;;  %v1228_v1 = vld [vmem:[#allocation7 + $0xee0] sm:$0xff]  ;;  %v1229_v11 = vld [vmem:[#allocation7 + $0xee8] sm:$0xff] }
 0x1bd   :  { %7072 = vmatpush1.bf16.msra.mxu0 %v8790_v46  ;;  %7416 = vmatpush1.bf16.msra.mxu1 %v8792_v14  ;;  %v8830_v46 = vcombine.low %v1192_v36, %v1196_v31  ;;  %v8832_v14 = vcombine.low %v1193_v32, %v1197_v2  ;;  %v1232_v36 = vld [vmem:[#allocation7 + $0xf00] sm:$0xff]  ;;  %v1233_v32 = vld [vmem:[#allocation7 + $0xf08] sm:$0xff] }
 0x1be   :  { %7073 = vmatprep.subr.bf16.mxu0 %v8799_v63  ;;  %7417 = vmatprep.subr.bf16.mxu1 %v8801_v4  ;;  %v8839_v63 = vcombine.high %v1200_v43, %v1204_v44  ;;  %v8841_v4 = vcombine.high %v1201_v54, %v1205_v3  ;;  %v1236_v31 = vld [vmem:[#allocation7 + $0xf20] sm:$0xff]  ;;  %v1237_v2 = vld [vmem:[#allocation7 + $0xf28] sm:$0xff] }
 0x1c1   :  { %7074 = vmatpush1.bf16.msra.mxu0 %v8798_v9  ;;  %7418 = vmatpush1.bf16.msra.mxu1 %v8800_v38  ;;  %v8838_v9 = vcombine.low %v1200_v43, %v1204_v44  ;;  %v8840_v38 = vcombine.low %v1201_v54, %v1205_v3  ;;  %v1240_v43 = vld [vmem:[#allocation7 + $0xf40] sm:$0xff]  ;;  %v1241_v54 = vld [vmem:[#allocation7 + $0xf48] sm:$0xff] }
 0x1c2   :  { %7075 = vmatprep.subr.bf16.mxu0 %v8807_v39  ;;  %7419 = vmatprep.subr.bf16.mxu1 %v8809_v41  ;;  %v8847_v39 = vcombine.high %v1208_v7, %v1212_v8  ;;  %v8849_v41 = vcombine.high %v1209_v12, %v1213_v37  ;;  %v1244_v44 = vld [vmem:[#allocation7 + $0xf60] sm:$0xff]  ;;  %v1245_v3 = vld [vmem:[#allocation7 + $0xf68] sm:$0xff] }
 0x1c5   :  { %7076 = vmatpush1.bf16.msra.mxu0 %v8806_v57  ;;  %7420 = vmatpush1.bf16.msra.mxu1 %v8808_v56  ;;  %v8846_v57 = vcombine.low %v1208_v7, %v1212_v8  ;;  %v8848_v56 = vcombine.low %v1209_v12, %v1213_v37  ;;  %v1248_v7 = vld [vmem:[#allocation7 + $0xf80] sm:$0xff]  ;;  %v1249_v12 = vld [vmem:[#allocation7 + $0xf88] sm:$0xff] }
 0x1c6   :  { %7077 = vmatprep.subr.bf16.mxu0 %v8815_v59  ;;  %7421 = vmatprep.subr.bf16.mxu1 %v8817_v60  ;;  %v8855_v59 = vcombine.high %v1216_v48, %v1220_v49  ;;  %v8857_v60 = vcombine.high %v1217_v52, %v1221_v55  ;;  %v1252_v8 = vld [vmem:[#allocation7 + $0xfa0] sm:$0xff]  ;;  %v1253_v37 = vld [vmem:[#allocation7 + $0xfa8] sm:$0xff] }
 0x1c9   :  { %7078 = vmatpush1.bf16.msra.mxu0 %v8814_v40  ;;  %7422 = vmatpush1.bf16.msra.mxu1 %v8816_v30  ;;  %v8854_v40 = vcombine.low %v1216_v48, %v1220_v49  ;;  %v8856_v30 = vcombine.low %v1217_v52, %v1221_v55  ;;  %v1256_v48 = vld [vmem:[#allocation7 + $0xfc0] sm:$0xff]  ;;  %v1257_v52 = vld [vmem:[#allocation7 + $0xfc8] sm:$0xff] }
 0x1ca   :  { %7079 = vmatprep.subr.bf16.mxu0 %v8823_v33  ;;  %7423 = vmatprep.subr.bf16.mxu1 %v8825_v24  ;;  %v8863_v33 = vcombine.high %v1224_v61, %v1228_v1  ;;  %v8865_v24 = vcombine.high %v1225_v10, %v1229_v11  ;;  %v1260_v49 = vld [vmem:[#allocation7 + $0xfe0] sm:$0xff]  ;;  %v1261_v55 = vld [vmem:[#allocation7 + $0xfe8] sm:$0xff] }
 0x1cd   :  { %7080 = vmatpush1.bf16.msra.mxu0 %v8822_v20  ;;  %7424 = vmatpush1.bf16.msra.mxu1 %v8824_v42  ;;  %v8862_v20 = vcombine.low %v1224_v61, %v1228_v1  ;;  %v8864_v42 = vcombine.low %v1225_v10, %v1229_v11  ;;  %v1264_v61 = vld [vmem:[#allocation7 + $0x1000] sm:$0xff]  ;;  %v1265_v10 = vld [vmem:[#allocation7 + $0x1008] sm:$0xff] }
 0x1ce   :  { %7081 = vmatprep.subr.bf16.mxu0 %v8831_v19  ;;  %7425 = vmatprep.subr.bf16.mxu1 %v8833_v21  ;;  %v8871_v19 = vcombine.high %v1232_v36, %v1236_v31  ;;  %v8873_v21 = vcombine.high %v1233_v32, %v1237_v2  ;;  %v1268_v1 = vld [vmem:[#allocation7 + $0x1020] sm:$0xff]  ;;  %v1269_v11 = vld [vmem:[#allocation7 + $0x1028] sm:$0xff] }
 0x1d1   :  { %7082 = vmatpush1.bf16.msra.mxu0 %v8830_v46  ;;  %7426 = vmatpush1.bf16.msra.mxu1 %v8832_v14  ;;  %v8870_v46 = vcombine.low %v1232_v36, %v1236_v31  ;;  %v8872_v14 = vcombine.low %v1233_v32, %v1237_v2  ;;  %v1272_v36 = vld [vmem:[#allocation7 + $0x1040] sm:$0xff]  ;;  %v1273_v32 = vld [vmem:[#allocation7 + $0x1048] sm:$0xff] }
 0x1d2   :  { %7083 = vmatprep.subr.bf16.mxu0 %v8839_v63  ;;  %7427 = vmatprep.subr.bf16.mxu1 %v8841_v4  ;;  %v8879_v63 = vcombine.high %v1240_v43, %v1244_v44  ;;  %v8881_v4 = vcombine.high %v1241_v54, %v1245_v3  ;;  %v1276_v31 = vld [vmem:[#allocation7 + $0x1060] sm:$0xff]  ;;  %v1277_v2 = vld [vmem:[#allocation7 + $0x1068] sm:$0xff] }
 0x1d5   :  { %7084 = vmatpush1.bf16.msra.mxu0 %v8838_v9  ;;  %7428 = vmatpush1.bf16.msra.mxu1 %v8840_v38  ;;  %v8878_v9 = vcombine.low %v1240_v43, %v1244_v44  ;;  %v8880_v38 = vcombine.low %v1241_v54, %v1245_v3  ;;  %v1280_v43 = vld [vmem:[#allocation7 + $0x1080] sm:$0xff]  ;;  %v1281_v54 = vld [vmem:[#allocation7 + $0x1088] sm:$0xff] }
 0x1d6   :  { %7085 = vmatprep.subr.bf16.mxu0 %v8847_v39  ;;  %7429 = vmatprep.subr.bf16.mxu1 %v8849_v41  ;;  %v8887_v39 = vcombine.high %v1248_v7, %v1252_v8  ;;  %v8889_v41 = vcombine.high %v1249_v12, %v1253_v37  ;;  %v1284_v44 = vld [vmem:[#allocation7 + $0x10a0] sm:$0xff]  ;;  %v1285_v3 = vld [vmem:[#allocation7 + $0x10a8] sm:$0xff] }
 0x1d9   :  { %7086 = vmatpush1.bf16.msra.mxu0 %v8846_v57  ;;  %7430 = vmatpush1.bf16.msra.mxu1 %v8848_v56  ;;  %v8886_v57 = vcombine.low %v1248_v7, %v1252_v8  ;;  %v8888_v56 = vcombine.low %v1249_v12, %v1253_v37  ;;  %v1288_v7 = vld [vmem:[#allocation7 + $0x10c0] sm:$0xff]  ;;  %v1289_v12 = vld [vmem:[#allocation7 + $0x10c8] sm:$0xff] }
 0x1da   :  { %7087 = vmatprep.subr.bf16.mxu0 %v8855_v59  ;;  %7431 = vmatprep.subr.bf16.mxu1 %v8857_v60  ;;  %v8895_v59 = vcombine.high %v1256_v48, %v1260_v49  ;;  %v8897_v60 = vcombine.high %v1257_v52, %v1261_v55  ;;  %v1292_v8 = vld [vmem:[#allocation7 + $0x10e0] sm:$0xff]  ;;  %v1293_v37 = vld [vmem:[#allocation7 + $0x10e8] sm:$0xff] }
 0x1dd   :  { %7088 = vmatpush1.bf16.msra.mxu0 %v8854_v40  ;;  %7432 = vmatpush1.bf16.msra.mxu1 %v8856_v30  ;;  %v8894_v40 = vcombine.low %v1256_v48, %v1260_v49  ;;  %v8896_v30 = vcombine.low %v1257_v52, %v1261_v55  ;;  %v1296_v48 = vld [vmem:[#allocation7 + $0x1100] sm:$0xff]  ;;  %v1297_v52 = vld [vmem:[#allocation7 + $0x1108] sm:$0xff] }
 0x1de   :  { %7089 = vmatprep.subr.bf16.mxu0 %v8863_v33  ;;  %7433 = vmatprep.subr.bf16.mxu1 %v8865_v24  ;;  %v8903_v33 = vcombine.high %v1264_v61, %v1268_v1  ;;  %v8905_v24 = vcombine.high %v1265_v10, %v1269_v11  ;;  %v1300_v49 = vld [vmem:[#allocation7 + $0x1120] sm:$0xff]  ;;  %v1301_v55 = vld [vmem:[#allocation7 + $0x1128] sm:$0xff] }
 0x1e1   :  { %7090 = vmatpush1.bf16.msra.mxu0 %v8862_v20  ;;  %7434 = vmatpush1.bf16.msra.mxu1 %v8864_v42  ;;  %v8902_v20 = vcombine.low %v1264_v61, %v1268_v1  ;;  %v8904_v42 = vcombine.low %v1265_v10, %v1269_v11  ;;  %v1304_v61 = vld [vmem:[#allocation7 + $0x1140] sm:$0xff]  ;;  %v1305_v10 = vld [vmem:[#allocation7 + $0x1148] sm:$0xff] }
 0x1e2   :  { %7091 = vmatprep.subr.bf16.mxu0 %v8871_v19  ;;  %7435 = vmatprep.subr.bf16.mxu1 %v8873_v21  ;;  %v8911_v19 = vcombine.high %v1272_v36, %v1276_v31  ;;  %v8913_v21 = vcombine.high %v1273_v32, %v1277_v2  ;;  %v1308_v1 = vld [vmem:[#allocation7 + $0x1160] sm:$0xff]  ;;  %v1309_v11 = vld [vmem:[#allocation7 + $0x1168] sm:$0xff] }
 0x1e5   :  { %7092 = vmatpush1.bf16.msra.mxu0 %v8870_v46  ;;  %7436 = vmatpush1.bf16.msra.mxu1 %v8872_v14  ;;  %v8910_v46 = vcombine.low %v1272_v36, %v1276_v31  ;;  %v8912_v14 = vcombine.low %v1273_v32, %v1277_v2  ;;  %v1312_v36 = vld [vmem:[#allocation7 + $0x1180] sm:$0xff]  ;;  %v1313_v32 = vld [vmem:[#allocation7 + $0x1188] sm:$0xff] }
 0x1e6   :  { %7093 = vmatprep.subr.bf16.mxu0 %v8879_v63  ;;  %7437 = vmatprep.subr.bf16.mxu1 %v8881_v4  ;;  %v8919_v63 = vcombine.high %v1280_v43, %v1284_v44  ;;  %v8921_v4 = vcombine.high %v1281_v54, %v1285_v3  ;;  %v1316_v31 = vld [vmem:[#allocation7 + $0x11a0] sm:$0xff]  ;;  %v1317_v2 = vld [vmem:[#allocation7 + $0x11a8] sm:$0xff] }
 0x1e9   :  { %7094 = vmatpush1.bf16.msra.mxu0 %v8878_v9  ;;  %7438 = vmatpush1.bf16.msra.mxu1 %v8880_v38  ;;  %v8918_v9 = vcombine.low %v1280_v43, %v1284_v44  ;;  %v8920_v38 = vcombine.low %v1281_v54, %v1285_v3  ;;  %v1320_v43 = vld [vmem:[#allocation7 + $0x11c0] sm:$0xff]  ;;  %v1321_v54 = vld [vmem:[#allocation7 + $0x11c8] sm:$0xff] }
 0x1ea   :  { %7095 = vmatprep.subr.bf16.mxu0 %v8887_v39  ;;  %7439 = vmatprep.subr.bf16.mxu1 %v8889_v41  ;;  %v8927_v39 = vcombine.high %v1288_v7, %v1292_v8  ;;  %v8929_v41 = vcombine.high %v1289_v12, %v1293_v37  ;;  %v1324_v44 = vld [vmem:[#allocation7 + $0x11e0] sm:$0xff]  ;;  %v1325_v3 = vld [vmem:[#allocation7 + $0x11e8] sm:$0xff] }
 0x1ed   :  { %7096 = vmatpush1.bf16.msra.mxu0 %v8886_v57  ;;  %7440 = vmatpush1.bf16.msra.mxu1 %v8888_v56  ;;  %v8926_v57 = vcombine.low %v1288_v7, %v1292_v8  ;;  %v8928_v56 = vcombine.low %v1289_v12, %v1293_v37  ;;  %v1328_v7 = vld [vmem:[#allocation7 + $0x1200] sm:$0xff]  ;;  %v1329_v12 = vld [vmem:[#allocation7 + $0x1208] sm:$0xff] }
 0x1ee   :  { %7097 = vmatprep.subr.bf16.mxu0 %v8895_v59  ;;  %7441 = vmatprep.subr.bf16.mxu1 %v8897_v60  ;;  %v8935_v59 = vcombine.high %v1296_v48, %v1300_v49  ;;  %v8937_v60 = vcombine.high %v1297_v52, %v1301_v55  ;;  %v1332_v8 = vld [vmem:[#allocation7 + $0x1220] sm:$0xff]  ;;  %v1333_v37 = vld [vmem:[#allocation7 + $0x1228] sm:$0xff] }
 0x1f1   :  { %7098 = vmatpush1.bf16.msra.mxu0 %v8894_v40  ;;  %7442 = vmatpush1.bf16.msra.mxu1 %v8896_v30  ;;  %v8934_v40 = vcombine.low %v1296_v48, %v1300_v49  ;;  %v8936_v30 = vcombine.low %v1297_v52, %v1301_v55  ;;  %v1336_v48 = vld [vmem:[#allocation7 + $0x1240] sm:$0xff]  ;;  %v1337_v52 = vld [vmem:[#allocation7 + $0x1248] sm:$0xff] }
 0x1f2   :  { %7110 = vmatprep.subr.bf16.mxu0 %v8903_v33  ;;  %7454 = vmatprep.subr.bf16.mxu1 %v8905_v24  ;;  %v8943_v33 = vcombine.high %v1304_v61, %v1308_v1  ;;  %v8945_v24 = vcombine.high %v1305_v10, %v1309_v11  ;;  %v1340_v49 = vld [vmem:[#allocation7 + $0x1260] sm:$0xff]  ;;  %v1341_v55 = vld [vmem:[#allocation7 + $0x1268] sm:$0xff] }
 0x1f4   :  { %7100 = vmatmul.mubr.bf16.vlgmr.msra.gmra.mrb[16].mxu0 %v9963_v27  ;;  %7444 = vmatmul.mubr.bf16.vlgmr.msra.gmra.mrb[16].mxu1 %v9963_v27 }
 0x1f5   :  { %7111 = vmatpush1.bf16.msra.mxu0 %v8902_v20  ;;  %7142 = vmatprep.mubr.bf16.mxu0 %v9998_v26  ;;  %v8942_v20 = vcombine.low %v1304_v61, %v1308_v1  ;;  %v1344_v61 = vld [vmem:[#allocation7 + $0x1280] sm:$0xff] }
 0x1f6   :  { %7455 = vmatpush1.bf16.msra.mxu1 %v8904_v42  ;;  %7486 = vmatprep.mubr.bf16.mxu1 %v9998_v26  ;;  %v8944_v42 = vcombine.low %v1305_v10, %v1309_v11  ;;  %v1348_v1 = vld [vmem:[#allocation7 + $0x12a0] sm:$0xff]  ;;  %v1345_v10 = vld [vmem:[#allocation7 + $0x1288] sm:$0xff] }
 0x1f7   :  { %7112 = vmatprep.subr.bf16.mxu0 %v8911_v19  ;;  %7456 = vmatprep.subr.bf16.mxu1 %v8913_v21  ;;  %v8951_v19 = vcombine.high %v1312_v36, %v1316_v31  ;;  %v8953_v21 = vcombine.high %v1313_v32, %v1317_v2  ;;  %v1349_v11 = vld [vmem:[#allocation7 + $0x12a8] sm:$0xff] }
 0x1f9   :  { %7113 = vmatpush1.bf16.msra.mxu0 %v8910_v46  ;;  %v8950_v46 = vcombine.low %v1312_v36, %v1316_v31  ;;  %v1352_v36 = vld [vmem:[#allocation7 + $0x12c0] sm:$0xff] }
 0x1fa   :  { %7457 = vmatpush1.bf16.msra.mxu1 %v8912_v14  ;;  %7114 = vmatprep.subr.bf16.mxu0 %v8919_v63  ;;  %v8952_v14 = vcombine.low %v1313_v32, %v1317_v2  ;;  %v8959_v63 = vcombine.high %v1320_v43, %v1324_v44  ;;  %v1356_v31 = vld [vmem:[#allocation7 + $0x12e0] sm:$0xff]  ;;  %v1353_v32 = vld [vmem:[#allocation7 + $0x12c8] sm:$0xff] }
 0x1fb   :  { %7458 = vmatprep.subr.bf16.mxu1 %v8921_v4  ;;  %v8961_v4 = vcombine.high %v1321_v54, %v1325_v3  ;;  %v1357_v2 = vld [vmem:[#allocation7 + $0x12e8] sm:$0xff] }
 0x1fd   :  { %7115 = vmatpush1.bf16.msra.mxu0 %v8918_v9  ;;  %v8958_v9 = vcombine.low %v1320_v43, %v1324_v44  ;;  %v1360_v43 = vld [vmem:[#allocation7 + $0x1300] sm:$0xff] }
 0x1fe   :  { %7459 = vmatpush1.bf16.msra.mxu1 %v8920_v38  ;;  %7116 = vmatprep.subr.bf16.mxu0 %v8927_v39  ;;  %v8960_v38 = vcombine.low %v1321_v54, %v1325_v3  ;;  %v8967_v39 = vcombine.high %v1328_v7, %v1332_v8  ;;  %v1364_v44 = vld [vmem:[#allocation7 + $0x1320] sm:$0xff]  ;;  %v1361_v54 = vld [vmem:[#allocation7 + $0x1308] sm:$0xff] }
 0x1ff   :  { %7460 = vmatprep.subr.bf16.mxu1 %v8929_v41  ;;  %v8969_v41 = vcombine.high %v1329_v12, %v1333_v37  ;;  %v1365_v3 = vld [vmem:[#allocation7 + $0x1328] sm:$0xff] }
 0x201   :  { %7117 = vmatpush1.bf16.msra.mxu0 %v8926_v57  ;;  %v8966_v57 = vcombine.low %v1328_v7, %v1332_v8  ;;  %v1368_v7 = vld [vmem:[#allocation7 + $0x1340] sm:$0xff] }
 0x202   :  { %7461 = vmatpush1.bf16.msra.mxu1 %v8928_v56  ;;  %7118 = vmatprep.subr.bf16.mxu0 %v8935_v59  ;;  %v8968_v56 = vcombine.low %v1329_v12, %v1333_v37  ;;  %v8975_v59 = vcombine.high %v1336_v48, %v1340_v49  ;;  %v1372_v8 = vld [vmem:[#allocation7 + $0x1360] sm:$0xff]  ;;  %v1369_v12 = vld [vmem:[#allocation7 + $0x1348] sm:$0xff] }
 0x203   :  { %7462 = vmatprep.subr.bf16.mxu1 %v8937_v60  ;;  %v8977_v60 = vcombine.high %v1337_v52, %v1341_v55  ;;  %v1373_v37 = vld [vmem:[#allocation7 + $0x1368] sm:$0xff] }
 0x205   :  { %7119 = vmatpush1.bf16.msra.mxu0 %v8934_v40  ;;  %v8974_v40 = vcombine.low %v1336_v48, %v1340_v49  ;;  %v1376_v48 = vld [vmem:[#allocation7 + $0x1380] sm:$0xff] }
 0x206   :  { %7463 = vmatpush1.bf16.msra.mxu1 %v8936_v30  ;;  %7120 = vmatprep.subr.bf16.mxu0 %v8943_v33  ;;  %v8976_v30 = vcombine.low %v1337_v52, %v1341_v55  ;;  %v8983_v33 = vcombine.high %v1344_v61, %v1348_v1  ;;  %v1380_v49 = vld [vmem:[#allocation7 + $0x13a0] sm:$0xff]  ;;  %v1377_v52 = vld [vmem:[#allocation7 + $0x1388] sm:$0xff] }
 0x207   :  { %7464 = vmatprep.subr.bf16.mxu1 %v8945_v24  ;;  %v8985_v24 = vcombine.high %v1345_v10, %v1349_v11  ;;  %v1381_v55 = vld [vmem:[#allocation7 + $0x13a8] sm:$0xff] }
 0x209   :  { %7121 = vmatpush1.bf16.msra.mxu0 %v8942_v20  ;;  %v8982_v20 = vcombine.low %v1344_v61, %v1348_v1  ;;  %v1384_v61 = vld [vmem:[#allocation7 + $0x13c0] sm:$0xff] }
 0x20a   :  { %7465 = vmatpush1.bf16.msra.mxu1 %v8944_v42  ;;  %7122 = vmatprep.subr.bf16.mxu0 %v8951_v19  ;;  %v8984_v42 = vcombine.low %v1345_v10, %v1349_v11  ;;  %v8991_v19 = vcombine.high %v1352_v36, %v1356_v31  ;;  %v1388_v1 = vld [vmem:[#allocation7 + $0x13e0] sm:$0xff]  ;;  %v1385_v10 = vld [vmem:[#allocation7 + $0x13c8] sm:$0xff] }
 0x20b   :  { %7466 = vmatprep.subr.bf16.mxu1 %v8953_v21  ;;  %v8993_v21 = vcombine.high %v1353_v32, %v1357_v2  ;;  %v1389_v11 = vld [vmem:[#allocation7 + $0x13e8] sm:$0xff] }
 0x20d   :  { %7123 = vmatpush1.bf16.msra.mxu0 %v8950_v46  ;;  %v8990_v46 = vcombine.low %v1352_v36, %v1356_v31  ;;  %v1392_v36 = vld [vmem:[#allocation7 + $0x1400] sm:$0xff] }
 0x20e   :  { %7467 = vmatpush1.bf16.msra.mxu1 %v8952_v14  ;;  %7124 = vmatprep.subr.bf16.mxu0 %v8959_v63  ;;  %v8992_v14 = vcombine.low %v1353_v32, %v1357_v2  ;;  %v8999_v63 = vcombine.high %v1360_v43, %v1364_v44  ;;  %v1396_v31 = vld [vmem:[#allocation7 + $0x1420] sm:$0xff]  ;;  %v1393_v32 = vld [vmem:[#allocation7 + $0x1408] sm:$0xff] }
 0x20f   :  { %7468 = vmatprep.subr.bf16.mxu1 %v8961_v4  ;;  %v9001_v4 = vcombine.high %v1361_v54, %v1365_v3  ;;  %v1397_v2 = vld [vmem:[#allocation7 + $0x1428] sm:$0xff] }
 0x211   :  { %7125 = vmatpush1.bf16.msra.mxu0 %v8958_v9  ;;  %v8998_v9 = vcombine.low %v1360_v43, %v1364_v44  ;;  %v1400_v43 = vld [vmem:[#allocation7 + $0x1440] sm:$0xff] }
 0x212   :  { %7469 = vmatpush1.bf16.msra.mxu1 %v8960_v38  ;;  %7126 = vmatprep.subr.bf16.mxu0 %v8967_v39  ;;  %v9000_v38 = vcombine.low %v1361_v54, %v1365_v3  ;;  %v9007_v39 = vcombine.high %v1368_v7, %v1372_v8  ;;  %v1404_v44 = vld [vmem:[#allocation7 + $0x1460] sm:$0xff]  ;;  %v9030_v54 = vcombine.low %v1392_v36, %v1396_v31  ;;  %v1401_v3 = vld [vmem:[#allocation7 + $0x1448] sm:$0xff] }
 0x213   :  { %7470 = vmatprep.subr.bf16.mxu1 %v8969_v41  ;;  %v9009_v41 = vcombine.high %v1369_v12, %v1373_v37 }
 0x215   :  { %7127 = vmatpush1.bf16.msra.mxu0 %v8966_v57  ;;  %v9006_v57 = vcombine.low %v1368_v7, %v1372_v8  ;;  %v1412_v7 = vld [vmem:[#allocation7 + $0x14a0] sm:$0xff] }
 0x216   :  { %7471 = vmatpush1.bf16.msra.mxu1 %v8968_v56  ;;  %7128 = vmatprep.subr.bf16.mxu0 %v8975_v59  ;;  %v9008_v56 = vcombine.low %v1369_v12, %v1373_v37  ;;  %v9015_v59 = vcombine.high %v1376_v48, %v1380_v49  ;;  %v1409_v12 = vld [vmem:[#allocation7 + $0x1488] sm:$0xff] }
 0x217   :  { %7472 = vmatprep.subr.bf16.mxu1 %v8977_v60  ;;  %v9017_v60 = vcombine.high %v1377_v52, %v1381_v55  ;;  %v1413_v37 = vld [vmem:[#allocation7 + $0x14a8] sm:$0xff] }
 0x219   :  { %7129 = vmatpush1.bf16.msra.mxu0 %v8974_v40  ;;  %v9014_v40 = vcombine.low %v1376_v48, %v1380_v49  ;;  %v1416_v48 = vld [vmem:[#allocation7 + $0x14c0] sm:$0xff] }
 0x21a   :  { %7473 = vmatpush1.bf16.msra.mxu1 %v8976_v30  ;;  %7130 = vmatprep.subr.bf16.mxu0 %v8983_v33  ;;  %v9016_v30 = vcombine.low %v1377_v52, %v1381_v55  ;;  %v9023_v33 = vcombine.high %v1384_v61, %v1388_v1  ;;  %v1420_v49 = vld [vmem:[#allocation7 + $0x14e0] sm:$0xff]  ;;  %v1417_v52 = vld [vmem:[#allocation7 + $0x14c8] sm:$0xff] }
 0x21b   :  { %7474 = vmatprep.subr.bf16.mxu1 %v8985_v24  ;;  %v9025_v24 = vcombine.high %v1385_v10, %v1389_v11  ;;  %v1421_v55 = vld [vmem:[#allocation7 + $0x14e8] sm:$0xff] }
 0x21d   :  { %7131 = vmatpush1.bf16.msra.mxu0 %v8982_v20  ;;  %v9022_v20 = vcombine.low %v1384_v61, %v1388_v1  ;;  %v1424_v61 = vld [vmem:[#allocation7 + $0x1500] sm:$0xff] }
 0x21e   :  { %7475 = vmatpush1.bf16.msra.mxu1 %v8984_v42  ;;  %7132 = vmatprep.subr.bf16.mxu0 %v8991_v19  ;;  %v9024_v42 = vcombine.low %v1385_v10, %v1389_v11  ;;  %v9031_v19 = vcombine.high %v1392_v36, %v1396_v31  ;;  %v1428_v1 = vld [vmem:[#allocation7 + $0x1520] sm:$0xff]  ;;  %v1425_v10 = vld [vmem:[#allocation7 + $0x1508] sm:$0xff] }
 0x21f   :  { %7476 = vmatprep.subr.bf16.mxu1 %v8993_v21  ;;  %v9033_v21 = vcombine.high %v1393_v32, %v1397_v2  ;;  %v1429_v11 = vld [vmem:[#allocation7 + $0x1528] sm:$0xff]  ;;  %v1432_v36 = vld [vmem:[#allocation7 + $0x1540] sm:$0xff] }
 0x220   :  { %v1436_v31 = vld [vmem:[#allocation7 + $0x1560] sm:$0xff] }
 0x221   :  { %7133 = vmatpush1.bf16.msra.mxu0 %v8990_v46  ;;  %v1405_v46 = vld [vmem:[#allocation7 + $0x1468] sm:$0xff] }
 0x222   :  { %7477 = vmatpush1.bf16.msra.mxu1 %v8992_v14  ;;  %7134 = vmatprep.subr.bf16.mxu0 %v8999_v63  ;;  %v9032_v14 = vcombine.low %v1393_v32, %v1397_v2  ;;  %v9039_v63 = vcombine.high %v1400_v43, %v1404_v44  ;;  %v9041_v8 = vcombine.high %v1401_v3, %v1405_v46  ;;  %v1433_v32 = vld [vmem:[#allocation7 + $0x1548] sm:$0xff] }
 0x223   :  { %7478 = vmatprep.subr.bf16.mxu1 %v9001_v4  ;;  %v1408_v4 = vld [vmem:[#allocation7 + $0x1480] sm:$0xff]  ;;  %v1437_v2 = vld [vmem:[#allocation7 + $0x1568] sm:$0xff] }
 0x225   :  { %7135 = vmatpush1.bf16.msra.mxu0 %v8998_v9  ;;  %v9038_v9 = vcombine.low %v1400_v43, %v1404_v44  ;;  %v1440_v43 = vld [vmem:[#allocation7 + $0x1580] sm:$0xff] }
 0x226   :  { %7479 = vmatpush1.bf16.msra.mxu1 %v9000_v38  ;;  %7136 = vmatprep.subr.bf16.mxu0 %v9007_v39  ;;  %v9040_v38 = vcombine.low %v1401_v3, %v1405_v46  ;;  %v9047_v39 = vcombine.high %v1408_v4, %v1412_v7  ;;  %v1444_v44 = vld [vmem:[#allocation7 + $0x15a0] sm:$0xff]  ;;  %v1445_v3 = vld [vmem:[#allocation7 + $0x15a8] sm:$0xff]  ;;  %v9070_v46 = vcombine.low %v1432_v36, %v1436_v31 }
 0x227   :  { %7480 = vmatprep.subr.bf16.mxu1 %v9009_v41  ;;  %v9049_v41 = vcombine.high %v1409_v12, %v1413_v37 }
 0x229   :  { %7137 = vmatpush1.bf16.msra.mxu0 %v9006_v57  ;;  %v9046_v57 = vcombine.low %v1408_v4, %v1412_v7  ;;  %v1448_v7 = vld [vmem:[#allocation7 + $0x15c0] sm:$0xff] }
 0x22a   :  { %7481 = vmatpush1.bf16.msra.mxu1 %v9008_v56  ;;  %7138 = vmatprep.subr.bf16.mxu0 %v9015_v59  ;;  %v9048_v56 = vcombine.low %v1409_v12, %v1413_v37  ;;  %v9055_v59 = vcombine.high %v1416_v48, %v1420_v49  ;;  %v1449_v12 = vld [vmem:[#allocation7 + $0x15c8] sm:$0xff] }
 0x22b   :  { %7482 = vmatprep.subr.bf16.mxu1 %v9017_v60  ;;  %v9057_v60 = vcombine.high %v1417_v52, %v1421_v55  ;;  %v1453_v37 = vld [vmem:[#allocation7 + $0x15e8] sm:$0xff] }
 0x22d   :  { %7139 = vmatpush1.bf16.msra.mxu0 %v9014_v40  ;;  %v9054_v40 = vcombine.low %v1416_v48, %v1420_v49  ;;  %v1456_v48 = vld [vmem:[#allocation7 + $0x1600] sm:$0xff] }
 0x22e   :  { %7483 = vmatpush1.bf16.msra.mxu1 %v9016_v30  ;;  %7140 = vmatprep.subr.bf16.mxu0 %v9023_v33  ;;  %v9056_v30 = vcombine.low %v1417_v52, %v1421_v55  ;;  %v9063_v33 = vcombine.high %v1424_v61, %v1428_v1  ;;  %v1460_v49 = vld [vmem:[#allocation7 + $0x1620] sm:$0xff]  ;;  %v1457_v52 = vld [vmem:[#allocation7 + $0x1608] sm:$0xff] }
 0x22f   :  { %7484 = vmatprep.subr.bf16.mxu1 %v9025_v24  ;;  %v9065_v24 = vcombine.high %v1425_v10, %v1429_v11  ;;  %v1461_v55 = vld [vmem:[#allocation7 + $0x1628] sm:$0xff] }
 0x231   :  { %7141 = vmatpush1.bf16.msra.mxu0 %v9022_v20  ;;  %v9062_v20 = vcombine.low %v1424_v61, %v1428_v1  ;;  %v1464_v61 = vld [vmem:[#allocation7 + $0x1640] sm:$0xff] }
 0x232   :  { %7485 = vmatpush1.bf16.msra.mxu1 %v9024_v42  ;;  %7153 = vmatprep.subr.bf16.mxu0 %v9031_v19  ;;  %v9064_v42 = vcombine.low %v1425_v10, %v1429_v11  ;;  %v9071_v19 = vcombine.high %v1432_v36, %v1436_v31  ;;  %v1468_v1 = vld [vmem:[#allocation7 + $0x1660] sm:$0xff]  ;;  %v1465_v10 = vld [vmem:[#allocation7 + $0x1648] sm:$0xff] }
 0x233   :  { %7497 = vmatprep.subr.bf16.mxu1 %v9033_v21  ;;  %v9073_v21 = vcombine.high %v1433_v32, %v1437_v2  ;;  %v1469_v11 = vld [vmem:[#allocation7 + $0x1668] sm:$0xff]  ;;  %v1472_v36 = vld [vmem:[#allocation7 + $0x1680] sm:$0xff] }
 0x234   :  { %7143 = vmatmul.mubr.bf16.vlgmr.msra.gmra.mrb[16].mxu0 %v9986_v6  ;;  %v1476_v31 = vld [vmem:[#allocation7 + $0x16a0] sm:$0xff] }
 0x235   :  { %7487 = vmatmul.mubr.bf16.vlgmr.msra.gmra.mrb[16].mxu1 %v9986_v6  ;;  %7154 = vmatpush1.bf16.msra.mxu0 %v9030_v54  ;;  %v1441_v54 = vld [vmem:[#allocation7 + $0x1588] sm:$0xff] }
 0x236   :  { %7185 = vmatprep.mubr.bf16.mxu0 %v10000_v29  ;;  %7498 = vmatpush1.bf16.msra.mxu1 %v9032_v14  ;;  %v9072_v14 = vcombine.low %v1433_v32, %v1437_v2  ;;  %v9081_v4 = vcombine.high %v1441_v54, %v1445_v3  ;;  %v1473_v32 = vld [vmem:[#allocation7 + $0x1688] sm:$0xff] }
 0x237   :  { %7529 = vmatprep.mubr.bf16.mxu1 %v10000_v29  ;;  %7155 = vmatprep.subr.bf16.mxu0 %v9039_v63  ;;  %v9079_v63 = vcombine.high %v1440_v43, %v1444_v44  ;;  %v1477_v2 = vld [vmem:[#allocation7 + $0x16a8] sm:$0xff] }
 0x238   :  { %7499 = vmatprep.subr.bf16.mxu1 %v9041_v8  ;;  %v1452_v8 = vld [vmem:[#allocation7 + $0x15e0] sm:$0xff] }
 0x239   :  { %7156 = vmatpush1.bf16.msra.mxu0 %v9038_v9  ;;  %v9078_v9 = vcombine.low %v1440_v43, %v1444_v44  ;;  %v1480_v43 = vld [vmem:[#allocation7 + $0x16c0] sm:$0xff] }
 0x23a   :  { %7500 = vmatpush1.bf16.msra.mxu1 %v9040_v38  ;;  %7157 = vmatprep.subr.bf16.mxu0 %v9047_v39  ;;  %v9080_v38 = vcombine.low %v1441_v54, %v1445_v3  ;;  %v9087_v39 = vcombine.high %v1448_v7, %v1452_v8  ;;  %v1484_v44 = vld [vmem:[#allocation7 + $0x16e0] sm:$0xff]  ;;  %v1481_v54 = vld [vmem:[#allocation7 + $0x16c8] sm:$0xff] }
 0x23b   :  { %7501 = vmatprep.subr.bf16.mxu1 %v9049_v41  ;;  %v9089_v41 = vcombine.high %v1449_v12, %v1453_v37  ;;  %v1485_v3 = vld [vmem:[#allocation7 + $0x16e8] sm:$0xff] }
 0x23d   :  { %7158 = vmatpush1.bf16.msra.mxu0 %v9046_v57  ;;  %v9086_v57 = vcombine.low %v1448_v7, %v1452_v8  ;;  %v1488_v7 = vld [vmem:[#allocation7 + $0x1700] sm:$0xff] }
 0x23e   :  { %7502 = vmatpush1.bf16.msra.mxu1 %v9048_v56  ;;  %7159 = vmatprep.subr.bf16.mxu0 %v9055_v59  ;;  %v9088_v56 = vcombine.low %v1449_v12, %v1453_v37  ;;  %v9095_v59 = vcombine.high %v1456_v48, %v1460_v49  ;;  %v1492_v8 = vld [vmem:[#allocation7 + $0x1720] sm:$0xff]  ;;  %v1489_v12 = vld [vmem:[#allocation7 + $0x1708] sm:$0xff] }
 0x23f   :  { %7503 = vmatprep.subr.bf16.mxu1 %v9057_v60  ;;  %v9097_v60 = vcombine.high %v1457_v52, %v1461_v55  ;;  %v1493_v37 = vld [vmem:[#allocation7 + $0x1728] sm:$0xff] }
 0x241   :  { %7160 = vmatpush1.bf16.msra.mxu0 %v9054_v40  ;;  %v9094_v40 = vcombine.low %v1456_v48, %v1460_v49  ;;  %v1496_v48 = vld [vmem:[#allocation7 + $0x1740] sm:$0xff] }
 0x242   :  { %7504 = vmatpush1.bf16.msra.mxu1 %v9056_v30  ;;  %7161 = vmatprep.subr.bf16.mxu0 %v9063_v33  ;;  %v9096_v30 = vcombine.low %v1457_v52, %v1461_v55  ;;  %v9103_v33 = vcombine.high %v1464_v61, %v1468_v1  ;;  %v1500_v49 = vld [vmem:[#allocation7 + $0x1760] sm:$0xff]  ;;  %v1497_v52 = vld [vmem:[#allocation7 + $0x1748] sm:$0xff] }
 0x243   :  { %7505 = vmatprep.subr.bf16.mxu1 %v9065_v24  ;;  %v9105_v24 = vcombine.high %v1465_v10, %v1469_v11  ;;  %v1501_v55 = vld [vmem:[#allocation7 + $0x1768] sm:$0xff] }
 0x245   :  { %7162 = vmatpush1.bf16.msra.mxu0 %v9062_v20  ;;  %v9102_v20 = vcombine.low %v1464_v61, %v1468_v1  ;;  %v1504_v61 = vld [vmem:[#allocation7 + $0x1780] sm:$0xff] }
 0x246   :  { %7506 = vmatpush1.bf16.msra.mxu1 %v9064_v42  ;;  %7163 = vmatprep.subr.bf16.mxu0 %v9071_v19  ;;  %v9104_v42 = vcombine.low %v1465_v10, %v1469_v11  ;;  %v9111_v19 = vcombine.high %v1472_v36, %v1476_v31  ;;  %v1508_v1 = vld [vmem:[#allocation7 + $0x17a0] sm:$0xff]  ;;  %v1505_v10 = vld [vmem:[#allocation7 + $0x1788] sm:$0xff] }
 0x247   :  { %7507 = vmatprep.subr.bf16.mxu1 %v9073_v21  ;;  %v9113_v21 = vcombine.high %v1473_v32, %v1477_v2  ;;  %v1509_v11 = vld [vmem:[#allocation7 + $0x17a8] sm:$0xff] }
 0x249   :  { %7164 = vmatpush1.bf16.msra.mxu0 %v9070_v46  ;;  %v9110_v46 = vcombine.low %v1472_v36, %v1476_v31  ;;  %v1512_v36 = vld [vmem:[#allocation7 + $0x17c0] sm:$0xff] }
 0x24a   :  { %7508 = vmatpush1.bf16.msra.mxu1 %v9072_v14  ;;  %7165 = vmatprep.subr.bf16.mxu0 %v9079_v63  ;;  %v9112_v14 = vcombine.low %v1473_v32, %v1477_v2  ;;  %v9119_v63 = vcombine.high %v1480_v43, %v1484_v44  ;;  %v1516_v31 = vld [vmem:[#allocation7 + $0x17e0] sm:$0xff]  ;;  %v1513_v32 = vld [vmem:[#allocation7 + $0x17c8] sm:$0xff] }
 0x24b   :  { %7509 = vmatprep.subr.bf16.mxu1 %v9081_v4  ;;  %v9121_v4 = vcombine.high %v1481_v54, %v1485_v3  ;;  %v1517_v2 = vld [vmem:[#allocation7 + $0x17e8] sm:$0xff] }
 0x24d   :  { %7166 = vmatpush1.bf16.msra.mxu0 %v9078_v9  ;;  %v9118_v9 = vcombine.low %v1480_v43, %v1484_v44  ;;  %v1520_v43 = vld [vmem:[#allocation7 + $0x1800] sm:$0xff] }
 0x24e   :  { %7510 = vmatpush1.bf16.msra.mxu1 %v9080_v38  ;;  %7167 = vmatprep.subr.bf16.mxu0 %v9087_v39  ;;  %v9120_v38 = vcombine.low %v1481_v54, %v1485_v3  ;;  %v9127_v39 = vcombine.high %v1488_v7, %v1492_v8  ;;  %v1524_v44 = vld [vmem:[#allocation7 + $0x1820] sm:$0xff]  ;;  %v1521_v54 = vld [vmem:[#allocation7 + $0x1808] sm:$0xff] }
 0x24f   :  { %7511 = vmatprep.subr.bf16.mxu1 %v9089_v41  ;;  %v9129_v41 = vcombine.high %v1489_v12, %v1493_v37  ;;  %v1525_v3 = vld [vmem:[#allocation7 + $0x1828] sm:$0xff] }
 0x251   :  { %7168 = vmatpush1.bf16.msra.mxu0 %v9086_v57  ;;  %v9126_v57 = vcombine.low %v1488_v7, %v1492_v8  ;;  %v1528_v7 = vld [vmem:[#allocation7 + $0x1840] sm:$0xff] }
 0x252   :  { %7512 = vmatpush1.bf16.msra.mxu1 %v9088_v56  ;;  %7169 = vmatprep.subr.bf16.mxu0 %v9095_v59  ;;  %v9128_v56 = vcombine.low %v1489_v12, %v1493_v37  ;;  %v9135_v59 = vcombine.high %v1496_v48, %v1500_v49  ;;  %v1532_v8 = vld [vmem:[#allocation7 + $0x1860] sm:$0xff]  ;;  %v9158_v12 = vcombine.low %v1520_v43, %v1524_v44  ;;  %v1529_v37 = vld [vmem:[#allocation7 + $0x1848] sm:$0xff] }
 0x253   :  { %7513 = vmatprep.subr.bf16.mxu1 %v9097_v60  ;;  %v9137_v60 = vcombine.high %v1497_v52, %v1501_v55 }
 0x255   :  { %7170 = vmatpush1.bf16.msra.mxu0 %v9094_v40  ;;  %v9134_v40 = vcombine.low %v1496_v48, %v1500_v49  ;;  %v1540_v48 = vld [vmem:[#allocation7 + $0x18a0] sm:$0xff] }
 0x256   :  { %7514 = vmatpush1.bf16.msra.mxu1 %v9096_v30  ;;  %7171 = vmatprep.subr.bf16.mxu0 %v9103_v33  ;;  %v9136_v30 = vcombine.low %v1497_v52, %v1501_v55  ;;  %v9143_v33 = vcombine.high %v1504_v61, %v1508_v1  ;;  %v1537_v52 = vld [vmem:[#allocation7 + $0x1888] sm:$0xff] }
 0x257   :  { %7515 = vmatprep.subr.bf16.mxu1 %v9105_v24  ;;  %v9145_v24 = vcombine.high %v1505_v10, %v1509_v11  ;;  %v1541_v55 = vld [vmem:[#allocation7 + $0x18a8] sm:$0xff] }
 0x259   :  { %7172 = vmatpush1.bf16.msra.mxu0 %v9102_v20  ;;  %v9142_v20 = vcombine.low %v1504_v61, %v1508_v1  ;;  %v1544_v61 = vld [vmem:[#allocation7 + $0x18c0] sm:$0xff] }
 0x25a   :  { %7516 = vmatpush1.bf16.msra.mxu1 %v9104_v42  ;;  %7173 = vmatprep.subr.bf16.mxu0 %v9111_v19  ;;  %v9144_v42 = vcombine.low %v1505_v10, %v1509_v11  ;;  %v9151_v19 = vcombine.high %v1512_v36, %v1516_v31  ;;  %v1548_v1 = vld [vmem:[#allocation7 + $0x18e0] sm:$0xff]  ;;  %v1545_v10 = vld [vmem:[#allocation7 + $0x18c8] sm:$0xff] }
 0x25b   :  { %7517 = vmatprep.subr.bf16.mxu1 %v9113_v21  ;;  %v9153_v21 = vcombine.high %v1513_v32, %v1517_v2  ;;  %v1549_v11 = vld [vmem:[#allocation7 + $0x18e8] sm:$0xff] }
 0x25d   :  { %7174 = vmatpush1.bf16.msra.mxu0 %v9110_v46  ;;  %v9150_v46 = vcombine.low %v1512_v36, %v1516_v31  ;;  %v1552_v36 = vld [vmem:[#allocation7 + $0x1900] sm:$0xff] }
 0x25e   :  { %7518 = vmatpush1.bf16.msra.mxu1 %v9112_v14  ;;  %7175 = vmatprep.subr.bf16.mxu0 %v9119_v63  ;;  %v9152_v14 = vcombine.low %v1513_v32, %v1517_v2  ;;  %v9159_v63 = vcombine.high %v1520_v43, %v1524_v44  ;;  %v1556_v31 = vld [vmem:[#allocation7 + $0x1920] sm:$0xff]  ;;  %v1553_v32 = vld [vmem:[#allocation7 + $0x1908] sm:$0xff] }
 0x25f   :  { %7519 = vmatprep.subr.bf16.mxu1 %v9121_v4  ;;  %v9161_v4 = vcombine.high %v1521_v54, %v1525_v3  ;;  %v1557_v2 = vld [vmem:[#allocation7 + $0x1928] sm:$0xff]  ;;  %v1560_v43 = vld [vmem:[#allocation7 + $0x1940] sm:$0xff] }
 0x260   :  { %v1564_v44 = vld [vmem:[#allocation7 + $0x1960] sm:$0xff] }
 0x261   :  { %7176 = vmatpush1.bf16.msra.mxu0 %v9118_v9  ;;  %v1533_v9 = vld [vmem:[#allocation7 + $0x1868] sm:$0xff] }
 0x262   :  { %7520 = vmatpush1.bf16.msra.mxu1 %v9120_v38  ;;  %7177 = vmatprep.subr.bf16.mxu0 %v9127_v39  ;;  %v9160_v38 = vcombine.low %v1521_v54, %v1525_v3  ;;  %v9167_v39 = vcombine.high %v1528_v7, %v1532_v8  ;;  %v9169_v49 = vcombine.high %v1529_v37, %v1533_v9  ;;  %v1561_v54 = vld [vmem:[#allocation7 + $0x1948] sm:$0xff] }
 0x263   :  { %7521 = vmatprep.subr.bf16.mxu1 %v9129_v41  ;;  %v1536_v41 = vld [vmem:[#allocation7 + $0x1880] sm:$0xff]  ;;  %v1565_v3 = vld [vmem:[#allocation7 + $0x1968] sm:$0xff] }
 0x265   :  { %7178 = vmatpush1.bf16.msra.mxu0 %v9126_v57  ;;  %v9166_v57 = vcombine.low %v1528_v7, %v1532_v8  ;;  %v1568_v7 = vld [vmem:[#allocation7 + $0x1980] sm:$0xff] }
 0x266   :  { %7522 = vmatpush1.bf16.msra.mxu1 %v9128_v56  ;;  %7179 = vmatprep.subr.bf16.mxu0 %v9135_v59  ;;  %v9168_v56 = vcombine.low %v1529_v37, %v1533_v9  ;;  %v9175_v59 = vcombine.high %v1536_v41, %v1540_v48  ;;  %v1572_v8 = vld [vmem:[#allocation7 + $0x19a0] sm:$0xff]  ;;  %v1573_v37 = vld [vmem:[#allocation7 + $0x19a8] sm:$0xff]  ;;  %v9198_v9 = vcombine.low %v1560_v43, %v1564_v44 }
 0x267   :  { %7523 = vmatprep.subr.bf16.mxu1 %v9137_v60  ;;  %v9177_v60 = vcombine.high %v1537_v52, %v1541_v55 }
 0x269   :  { %7180 = vmatpush1.bf16.msra.mxu0 %v9134_v40  ;;  %v9174_v40 = vcombine.low %v1536_v41, %v1540_v48  ;;  %v1576_v48 = vld [vmem:[#allocation7 + $0x19c0] sm:$0xff] }
 0x26a   :  { %7524 = vmatpush1.bf16.msra.mxu1 %v9136_v30  ;;  %7181 = vmatprep.subr.bf16.mxu0 %v9143_v33  ;;  %v9176_v30 = vcombine.low %v1537_v52, %v1541_v55  ;;  %v9183_v33 = vcombine.high %v1544_v61, %v1548_v1  ;;  %v1577_v52 = vld [vmem:[#allocation7 + $0x19c8] sm:$0xff] }
 0x26b   :  { %7525 = vmatprep.subr.bf16.mxu1 %v9145_v24  ;;  %v9185_v24 = vcombine.high %v1545_v10, %v1549_v11  ;;  %v1581_v55 = vld [vmem:[#allocation7 + $0x19e8] sm:$0xff] }
 0x26d   :  { %7182 = vmatpush1.bf16.msra.mxu0 %v9142_v20  ;;  %v9182_v20 = vcombine.low %v1544_v61, %v1548_v1  ;;  %v1584_v61 = vld [vmem:[#allocation7 + $0x1a00] sm:$0xff] }
 0x26e   :  { %7526 = vmatpush1.bf16.msra.mxu1 %v9144_v42  ;;  %7183 = vmatprep.subr.bf16.mxu0 %v9151_v19  ;;  %v9184_v42 = vcombine.low %v1545_v10, %v1549_v11  ;;  %v9191_v19 = vcombine.high %v1552_v36, %v1556_v31  ;;  %v1588_v1 = vld [vmem:[#allocation7 + $0x1a20] sm:$0xff]  ;;  %v1585_v10 = vld [vmem:[#allocation7 + $0x1a08] sm:$0xff] }
 0x26f   :  { %7527 = vmatprep.subr.bf16.mxu1 %v9153_v21  ;;  %v9193_v21 = vcombine.high %v1553_v32, %v1557_v2  ;;  %v1589_v11 = vld [vmem:[#allocation7 + $0x1a28] sm:$0xff] }
 0x271   :  { %7184 = vmatpush1.bf16.msra.mxu0 %v9150_v46  ;;  %v9190_v46 = vcombine.low %v1552_v36, %v1556_v31  ;;  %v1592_v36 = vld [vmem:[#allocation7 + $0x1a40] sm:$0xff] }
 0x272   :  { %7528 = vmatpush1.bf16.msra.mxu1 %v9152_v14  ;;  %7196 = vmatprep.subr.bf16.mxu0 %v9159_v63  ;;  %v9192_v14 = vcombine.low %v1553_v32, %v1557_v2  ;;  %v9199_v63 = vcombine.high %v1560_v43, %v1564_v44  ;;  %v1596_v31 = vld [vmem:[#allocation7 + $0x1a60] sm:$0xff]  ;;  %v1593_v32 = vld [vmem:[#allocation7 + $0x1a48] sm:$0xff] }
 0x273   :  { %7540 = vmatprep.subr.bf16.mxu1 %v9161_v4  ;;  %v9201_v4 = vcombine.high %v1561_v54, %v1565_v3  ;;  %v1597_v2 = vld [vmem:[#allocation7 + $0x1a68] sm:$0xff]  ;;  %v1600_v43 = vld [vmem:[#allocation7 + $0x1a80] sm:$0xff] }
 0x274   :  { %7186 = vmatmul.mubr.bf16.vlgmr.msra.gmra.mrb[16].mxu0 %v9996_v25  ;;  %v1604_v44 = vld [vmem:[#allocation7 + $0x1aa0] sm:$0xff] }
 0x275   :  { %7530 = vmatmul.mubr.bf16.vlgmr.msra.gmra.mrb[16].mxu1 %v9996_v25  ;;  %7197 = vmatpush1.bf16.msra.mxu0 %v9158_v12  ;;  %v1569_v12 = vld [vmem:[#allocation7 + $0x1988] sm:$0xff] }
 0x276   :  { %7228 = vmatprep.mubr.bf16.mxu0 %v10037_v50  ;;  %7541 = vmatpush1.bf16.msra.mxu1 %v9160_v38  ;;  %v9200_v38 = vcombine.low %v1561_v54, %v1565_v3  ;;  %v9209_v41 = vcombine.high %v1569_v12, %v1573_v37  ;;  %v1601_v54 = vld [vmem:[#allocation7 + $0x1a88] sm:$0xff] }
 0x277   :  { %7572 = vmatprep.mubr.bf16.mxu1 %v10037_v50  ;;  %7198 = vmatprep.subr.bf16.mxu0 %v9167_v39  ;;  %v9207_v39 = vcombine.high %v1568_v7, %v1572_v8  ;;  %v1605_v3 = vld [vmem:[#allocation7 + $0x1aa8] sm:$0xff] }
 0x278   :  { %7542 = vmatprep.subr.bf16.mxu1 %v9169_v49  ;;  %v1580_v49 = vld [vmem:[#allocation7 + $0x19e0] sm:$0xff] }
 0x279   :  { %7199 = vmatpush1.bf16.msra.mxu0 %v9166_v57  ;;  %v9206_v57 = vcombine.low %v1568_v7, %v1572_v8  ;;  %v1608_v7 = vld [vmem:[#allocation7 + $0x1ac0] sm:$0xff] }
 0x27a   :  { %7543 = vmatpush1.bf16.msra.mxu1 %v9168_v56  ;;  %7200 = vmatprep.subr.bf16.mxu0 %v9175_v59  ;;  %v9208_v56 = vcombine.low %v1569_v12, %v1573_v37  ;;  %v9215_v59 = vcombine.high %v1576_v48, %v1580_v49  ;;  %v1612_v8 = vld [vmem:[#allocation7 + $0x1ae0] sm:$0xff]  ;;  %v1609_v12 = vld [vmem:[#allocation7 + $0x1ac8] sm:$0xff] }
 0x27b   :  { %7544 = vmatprep.subr.bf16.mxu1 %v9177_v60  ;;  %v9217_v60 = vcombine.high %v1577_v52, %v1581_v55  ;;  %v1613_v37 = vld [vmem:[#allocation7 + $0x1ae8] sm:$0xff] }
 0x27d   :  { %7201 = vmatpush1.bf16.msra.mxu0 %v9174_v40  ;;  %v9214_v40 = vcombine.low %v1576_v48, %v1580_v49  ;;  %v1616_v48 = vld [vmem:[#allocation7 + $0x1b00] sm:$0xff] }
 0x27e   :  { %7545 = vmatpush1.bf16.msra.mxu1 %v9176_v30  ;;  %7202 = vmatprep.subr.bf16.mxu0 %v9183_v33  ;;  %v9216_v30 = vcombine.low %v1577_v52, %v1581_v55  ;;  %v9223_v33 = vcombine.high %v1584_v61, %v1588_v1  ;;  %v1620_v49 = vld [vmem:[#allocation7 + $0x1b20] sm:$0xff]  ;;  %v1617_v52 = vld [vmem:[#allocation7 + $0x1b08] sm:$0xff] }
 0x27f   :  { %7546 = vmatprep.subr.bf16.mxu1 %v9185_v24  ;;  %v9225_v24 = vcombine.high %v1585_v10, %v1589_v11  ;;  %v1621_v55 = vld [vmem:[#allocation7 + $0x1b28] sm:$0xff] }
 0x281   :  { %7203 = vmatpush1.bf16.msra.mxu0 %v9182_v20  ;;  %v9222_v20 = vcombine.low %v1584_v61, %v1588_v1  ;;  %v1624_v61 = vld [vmem:[#allocation7 + $0x1b40] sm:$0xff] }
 0x282   :  { %7547 = vmatpush1.bf16.msra.mxu1 %v9184_v42  ;;  %7204 = vmatprep.subr.bf16.mxu0 %v9191_v19  ;;  %v9224_v42 = vcombine.low %v1585_v10, %v1589_v11  ;;  %v9231_v19 = vcombine.high %v1592_v36, %v1596_v31  ;;  %v1628_v1 = vld [vmem:[#allocation7 + $0x1b60] sm:$0xff]  ;;  %v1625_v10 = vld [vmem:[#allocation7 + $0x1b48] sm:$0xff] }
 0x283   :  { %7548 = vmatprep.subr.bf16.mxu1 %v9193_v21  ;;  %v9233_v21 = vcombine.high %v1593_v32, %v1597_v2  ;;  %v1629_v11 = vld [vmem:[#allocation7 + $0x1b68] sm:$0xff] }
 0x285   :  { %7205 = vmatpush1.bf16.msra.mxu0 %v9190_v46  ;;  %v9230_v46 = vcombine.low %v1592_v36, %v1596_v31  ;;  %v1632_v36 = vld [vmem:[#allocation7 + $0x1b80] sm:$0xff] }
 0x286   :  { %7549 = vmatpush1.bf16.msra.mxu1 %v9192_v14  ;;  %7206 = vmatprep.subr.bf16.mxu0 %v9199_v63  ;;  %v9232_v14 = vcombine.low %v1593_v32, %v1597_v2  ;;  %v9239_v63 = vcombine.high %v1600_v43, %v1604_v44  ;;  %v1636_v31 = vld [vmem:[#allocation7 + $0x1ba0] sm:$0xff]  ;;  %v1633_v32 = vld [vmem:[#allocation7 + $0x1b88] sm:$0xff] }
 0x287   :  { %7550 = vmatprep.subr.bf16.mxu1 %v9201_v4  ;;  %v9241_v4 = vcombine.high %v1601_v54, %v1605_v3  ;;  %v1637_v2 = vld [vmem:[#allocation7 + $0x1ba8] sm:$0xff] }
 0x289   :  { %7207 = vmatpush1.bf16.msra.mxu0 %v9198_v9  ;;  %v9238_v9 = vcombine.low %v1600_v43, %v1604_v44  ;;  %v1640_v43 = vld [vmem:[#allocation7 + $0x1bc0] sm:$0xff] }
 0x28a   :  { %7551 = vmatpush1.bf16.msra.mxu1 %v9200_v38  ;;  %7208 = vmatprep.subr.bf16.mxu0 %v9207_v39  ;;  %v9240_v38 = vcombine.low %v1601_v54, %v1605_v3  ;;  %v9247_v39 = vcombine.high %v1608_v7, %v1612_v8  ;;  %v1644_v44 = vld [vmem:[#allocation7 + $0x1be0] sm:$0xff]  ;;  %v1641_v54 = vld [vmem:[#allocation7 + $0x1bc8] sm:$0xff] }
 0x28b   :  { %7552 = vmatprep.subr.bf16.mxu1 %v9209_v41  ;;  %v9249_v41 = vcombine.high %v1609_v12, %v1613_v37  ;;  %v1645_v3 = vld [vmem:[#allocation7 + $0x1be8] sm:$0xff] }
 0x28d   :  { %7209 = vmatpush1.bf16.msra.mxu0 %v9206_v57  ;;  %v9246_v57 = vcombine.low %v1608_v7, %v1612_v8  ;;  %v1648_v7 = vld [vmem:[#allocation7 + $0x1c00] sm:$0xff] }
 0x28e   :  { %7553 = vmatpush1.bf16.msra.mxu1 %v9208_v56  ;;  %7210 = vmatprep.subr.bf16.mxu0 %v9215_v59  ;;  %v9248_v56 = vcombine.low %v1609_v12, %v1613_v37  ;;  %v9255_v59 = vcombine.high %v1616_v48, %v1620_v49  ;;  %v1652_v8 = vld [vmem:[#allocation7 + $0x1c20] sm:$0xff]  ;;  %v1649_v12 = vld [vmem:[#allocation7 + $0x1c08] sm:$0xff] }
 0x28f   :  { %7554 = vmatprep.subr.bf16.mxu1 %v9217_v60  ;;  %v9257_v60 = vcombine.high %v1617_v52, %v1621_v55  ;;  %v1653_v37 = vld [vmem:[#allocation7 + $0x1c28] sm:$0xff] }
 0x291   :  { %7211 = vmatpush1.bf16.msra.mxu0 %v9214_v40  ;;  %v9254_v40 = vcombine.low %v1616_v48, %v1620_v49  ;;  %v1656_v48 = vld [vmem:[#allocation7 + $0x1c40] sm:$0xff] }
 0x292   :  { %7555 = vmatpush1.bf16.msra.mxu1 %v9216_v30  ;;  %7212 = vmatprep.subr.bf16.mxu0 %v9223_v33  ;;  %v9256_v30 = vcombine.low %v1617_v52, %v1621_v55  ;;  %v9263_v33 = vcombine.high %v1624_v61, %v1628_v1  ;;  %v1660_v49 = vld [vmem:[#allocation7 + $0x1c60] sm:$0xff]  ;;  %v9286_v52 = vcombine.low %v1648_v7, %v1652_v8  ;;  %v1657_v55 = vld [vmem:[#allocation7 + $0x1c48] sm:$0xff] }
 0x293   :  { %7556 = vmatprep.subr.bf16.mxu1 %v9225_v24  ;;  %v9265_v24 = vcombine.high %v1625_v10, %v1629_v11 }
 0x295   :  { %7213 = vmatpush1.bf16.msra.mxu0 %v9222_v20  ;;  %v9262_v20 = vcombine.low %v1624_v61, %v1628_v1  ;;  %v1668_v61 = vld [vmem:[#allocation7 + $0x1ca0] sm:$0xff] }
 0x296   :  { %7557 = vmatpush1.bf16.msra.mxu1 %v9224_v42  ;;  %7214 = vmatprep.subr.bf16.mxu0 %v9231_v19  ;;  %v9264_v42 = vcombine.low %v1625_v10, %v1629_v11  ;;  %v9271_v19 = vcombine.high %v1632_v36, %v1636_v31  ;;  %v1665_v10 = vld [vmem:[#allocation7 + $0x1c88] sm:$0xff] }
 0x297   :  { %7558 = vmatprep.subr.bf16.mxu1 %v9233_v21  ;;  %v9273_v21 = vcombine.high %v1633_v32, %v1637_v2  ;;  %v1669_v11 = vld [vmem:[#allocation7 + $0x1ca8] sm:$0xff] }
 0x299   :  { %7215 = vmatpush1.bf16.msra.mxu0 %v9230_v46  ;;  %v9270_v46 = vcombine.low %v1632_v36, %v1636_v31  ;;  %v1672_v36 = vld [vmem:[#allocation7 + $0x1cc0] sm:$0xff] }
 0x29a   :  { %7559 = vmatpush1.bf16.msra.mxu1 %v9232_v14  ;;  %7216 = vmatprep.subr.bf16.mxu0 %v9239_v63  ;;  %v9272_v14 = vcombine.low %v1633_v32, %v1637_v2  ;;  %v9279_v63 = vcombine.high %v1640_v43, %v1644_v44  ;;  %v1676_v31 = vld [vmem:[#allocation7 + $0x1ce0] sm:$0xff]  ;;  %v1673_v32 = vld [vmem:[#allocation7 + $0x1cc8] sm:$0xff] }
 0x29b   :  { %7560 = vmatprep.subr.bf16.mxu1 %v9241_v4  ;;  %v9281_v4 = vcombine.high %v1641_v54, %v1645_v3  ;;  %v1677_v2 = vld [vmem:[#allocation7 + $0x1ce8] sm:$0xff] }
 0x29d   :  { %7217 = vmatpush1.bf16.msra.mxu0 %v9238_v9  ;;  %v9278_v9 = vcombine.low %v1640_v43, %v1644_v44  ;;  %v1680_v43 = vld [vmem:[#allocation7 + $0x1d00] sm:$0xff] }
 0x29e   :  { %7561 = vmatpush1.bf16.msra.mxu1 %v9240_v38  ;;  %7218 = vmatprep.subr.bf16.mxu0 %v9247_v39  ;;  %v9280_v38 = vcombine.low %v1641_v54, %v1645_v3  ;;  %v9287_v39 = vcombine.high %v1648_v7, %v1652_v8  ;;  %v1684_v44 = vld [vmem:[#allocation7 + $0x1d20] sm:$0xff]  ;;  %v1681_v54 = vld [vmem:[#allocation7 + $0x1d08] sm:$0xff] }
 0x29f   :  { %7562 = vmatprep.subr.bf16.mxu1 %v9249_v41  ;;  %v9289_v41 = vcombine.high %v1649_v12, %v1653_v37  ;;  %v1685_v3 = vld [vmem:[#allocation7 + $0x1d28] sm:$0xff]  ;;  %v1688_v7 = vld [vmem:[#allocation7 + $0x1d40] sm:$0xff] }
 0x2a0   :  { %v1692_v8 = vld [vmem:[#allocation7 + $0x1d60] sm:$0xff] }
 0x2a1   :  { %7219 = vmatpush1.bf16.msra.mxu0 %v9246_v57  ;;  %v1661_v57 = vld [vmem:[#allocation7 + $0x1c68] sm:$0xff] }
 0x2a2   :  { %7563 = vmatpush1.bf16.msra.mxu1 %v9248_v56  ;;  %7220 = vmatprep.subr.bf16.mxu0 %v9255_v59  ;;  %v9288_v56 = vcombine.low %v1649_v12, %v1653_v37  ;;  %v9295_v59 = vcombine.high %v1656_v48, %v1660_v49  ;;  %v9297_v1 = vcombine.high %v1657_v55, %v1661_v57  ;;  %v1689_v12 = vld [vmem:[#allocation7 + $0x1d48] sm:$0xff] }
 0x2a3   :  { %7564 = vmatprep.subr.bf16.mxu1 %v9257_v60  ;;  %v1664_v60 = vld [vmem:[#allocation7 + $0x1c80] sm:$0xff]  ;;  %v1693_v37 = vld [vmem:[#allocation7 + $0x1d68] sm:$0xff] }
 0x2a5   :  { %7221 = vmatpush1.bf16.msra.mxu0 %v9254_v40  ;;  %v9294_v40 = vcombine.low %v1656_v48, %v1660_v49  ;;  %v1696_v48 = vld [vmem:[#allocation7 + $0x1d80] sm:$0xff] }
 0x2a6   :  { %7565 = vmatpush1.bf16.msra.mxu1 %v9256_v30  ;;  %7222 = vmatprep.subr.bf16.mxu0 %v9263_v33  ;;  %v9296_v30 = vcombine.low %v1657_v55, %v1661_v57  ;;  %v9303_v33 = vcombine.high %v1664_v60, %v1668_v61  ;;  %v1700_v49 = vld [vmem:[#allocation7 + $0x1da0] sm:$0xff]  ;;  %v1701_v55 = vld [vmem:[#allocation7 + $0x1da8] sm:$0xff]  ;;  %v9326_v57 = vcombine.low %v1688_v7, %v1692_v8 }
 0x2a7   :  { %7566 = vmatprep.subr.bf16.mxu1 %v9265_v24  ;;  %v9305_v24 = vcombine.high %v1665_v10, %v1669_v11 }
 0x2a9   :  { %7223 = vmatpush1.bf16.msra.mxu0 %v9262_v20  ;;  %v9302_v20 = vcombine.low %v1664_v60, %v1668_v61  ;;  %v1704_v61 = vld [vmem:[#allocation7 + $0x1dc0] sm:$0xff] }
 0x2aa   :  { %7567 = vmatpush1.bf16.msra.mxu1 %v9264_v42  ;;  %7224 = vmatprep.subr.bf16.mxu0 %v9271_v19  ;;  %v9304_v42 = vcombine.low %v1665_v10, %v1669_v11  ;;  %v9311_v19 = vcombine.high %v1672_v36, %v1676_v31  ;;  %v1705_v10 = vld [vmem:[#allocation7 + $0x1dc8] sm:$0xff] }
 0x2ab   :  { %7568 = vmatprep.subr.bf16.mxu1 %v9273_v21  ;;  %v9313_v21 = vcombine.high %v1673_v32, %v1677_v2  ;;  %v1709_v11 = vld [vmem:[#allocation7 + $0x1de8] sm:$0xff] }
 0x2ad   :  { %7225 = vmatpush1.bf16.msra.mxu0 %v9270_v46  ;;  %v9310_v46 = vcombine.low %v1672_v36, %v1676_v31  ;;  %v1712_v36 = vld [vmem:[#allocation7 + $0x1e00] sm:$0xff] }
 0x2ae   :  { %7569 = vmatpush1.bf16.msra.mxu1 %v9272_v14  ;;  %7226 = vmatprep.subr.bf16.mxu0 %v9279_v63  ;;  %v9312_v14 = vcombine.low %v1673_v32, %v1677_v2  ;;  %v9319_v63 = vcombine.high %v1680_v43, %v1684_v44  ;;  %v1716_v31 = vld [vmem:[#allocation7 + $0x1e20] sm:$0xff]  ;;  %v1713_v32 = vld [vmem:[#allocation7 + $0x1e08] sm:$0xff] }
 0x2af   :  { %7570 = vmatprep.subr.bf16.mxu1 %v9281_v4  ;;  %v9321_v4 = vcombine.high %v1681_v54, %v1685_v3  ;;  %v1717_v2 = vld [vmem:[#allocation7 + $0x1e28] sm:$0xff] }
 0x2b1   :  { %7227 = vmatpush1.bf16.msra.mxu0 %v9278_v9  ;;  %v9318_v9 = vcombine.low %v1680_v43, %v1684_v44  ;;  %v1720_v43 = vld [vmem:[#allocation7 + $0x1e40] sm:$0xff] }
 0x2b2   :  { %7571 = vmatpush1.bf16.msra.mxu1 %v9280_v38  ;;  %7239 = vmatprep.subr.bf16.mxu0 %v9287_v39  ;;  %v9320_v38 = vcombine.low %v1681_v54, %v1685_v3  ;;  %v9327_v39 = vcombine.high %v1688_v7, %v1692_v8  ;;  %v1724_v44 = vld [vmem:[#allocation7 + $0x1e60] sm:$0xff]  ;;  %v1721_v54 = vld [vmem:[#allocation7 + $0x1e48] sm:$0xff] }
 0x2b3   :  { %7583 = vmatprep.subr.bf16.mxu1 %v9289_v41  ;;  %v9329_v41 = vcombine.high %v1689_v12, %v1693_v37  ;;  %v1725_v3 = vld [vmem:[#allocation7 + $0x1e68] sm:$0xff]  ;;  %v1728_v7 = vld [vmem:[#allocation7 + $0x1e80] sm:$0xff] }
 0x2b4   :  { %7229 = vmatmul.mubr.bf16.vlgmr.msra.gmra.mrb[16].mxu0 %v10031_v5  ;;  %v1732_v8 = vld [vmem:[#allocation7 + $0x1ea0] sm:$0xff] }
 0x2b5   :  { %7573 = vmatmul.mubr.bf16.vlgmr.msra.gmra.mrb[16].mxu1 %v10031_v5  ;;  %7240 = vmatpush1.bf16.msra.mxu0 %v9286_v52  ;;  %v1697_v52 = vld [vmem:[#allocation7 + $0x1d88] sm:$0xff] }
 0x2b6   :  { %7271 = vmatprep.mubr.bf16.mxu0 %v10039_v58  ;;  %7584 = vmatpush1.bf16.msra.mxu1 %v9288_v56  ;;  %v9328_v56 = vcombine.low %v1689_v12, %v1693_v37  ;;  %v9337_v60 = vcombine.high %v1697_v52, %v1701_v55  ;;  %v1729_v12 = vld [vmem:[#allocation7 + $0x1e88] sm:$0xff] }
 0x2b7   :  { %7615 = vmatprep.mubr.bf16.mxu1 %v10039_v58  ;;  %7241 = vmatprep.subr.bf16.mxu0 %v9295_v59  ;;  %v9335_v59 = vcombine.high %v1696_v48, %v1700_v49  ;;  %v1733_v37 = vld [vmem:[#allocation7 + $0x1ea8] sm:$0xff] }
 0x2b8   :  { %7585 = vmatprep.subr.bf16.mxu1 %v9297_v1  ;;  %v1708_v1 = vld [vmem:[#allocation7 + $0x1de0] sm:$0xff] }
 0x2b9   :  { %7242 = vmatpush1.bf16.msra.mxu0 %v9294_v40  ;;  %v9334_v40 = vcombine.low %v1696_v48, %v1700_v49  ;;  %v1736_v48 = vld [vmem:[#allocation7 + $0x1ec0] sm:$0xff] }
 0x2ba   :  { %7586 = vmatpush1.bf16.msra.mxu1 %v9296_v30  ;;  %7243 = vmatprep.subr.bf16.mxu0 %v9303_v33  ;;  %v9336_v30 = vcombine.low %v1697_v52, %v1701_v55  ;;  %v9343_v33 = vcombine.high %v1704_v61, %v1708_v1  ;;  %v1740_v49 = vld [vmem:[#allocation7 + $0x1ee0] sm:$0xff]  ;;  %v1737_v52 = vld [vmem:[#allocation7 + $0x1ec8] sm:$0xff] }
 0x2bb   :  { %7587 = vmatprep.subr.bf16.mxu1 %v9305_v24  ;;  %v9345_v24 = vcombine.high %v1705_v10, %v1709_v11  ;;  %v1741_v55 = vld [vmem:[#allocation7 + $0x1ee8] sm:$0xff] }
 0x2bd   :  { %7244 = vmatpush1.bf16.msra.mxu0 %v9302_v20  ;;  %v9342_v20 = vcombine.low %v1704_v61, %v1708_v1  ;;  %v1744_v61 = vld [vmem:[#allocation7 + $0x1f00] sm:$0xff] }
 0x2be   :  { %7588 = vmatpush1.bf16.msra.mxu1 %v9304_v42  ;;  %7245 = vmatprep.subr.bf16.mxu0 %v9311_v19  ;;  %v9344_v42 = vcombine.low %v1705_v10, %v1709_v11  ;;  %v9351_v19 = vcombine.high %v1712_v36, %v1716_v31  ;;  %v1748_v1 = vld [vmem:[#allocation7 + $0x1f20] sm:$0xff]  ;;  %v1745_v10 = vld [vmem:[#allocation7 + $0x1f08] sm:$0xff] }
 0x2bf   :  { %7589 = vmatprep.subr.bf16.mxu1 %v9313_v21  ;;  %v9353_v21 = vcombine.high %v1713_v32, %v1717_v2  ;;  %v1749_v11 = vld [vmem:[#allocation7 + $0x1f28] sm:$0xff] }
 0x2c1   :  { %7246 = vmatpush1.bf16.msra.mxu0 %v9310_v46  ;;  %v9350_v46 = vcombine.low %v1712_v36, %v1716_v31  ;;  %v1752_v36 = vld [vmem:[#allocation7 + $0x1f40] sm:$0xff] }
 0x2c2   :  { %7590 = vmatpush1.bf16.msra.mxu1 %v9312_v14  ;;  %7247 = vmatprep.subr.bf16.mxu0 %v9319_v63  ;;  %v9352_v14 = vcombine.low %v1713_v32, %v1717_v2  ;;  %v9359_v63 = vcombine.high %v1720_v43, %v1724_v44  ;;  %v1756_v31 = vld [vmem:[#allocation7 + $0x1f60] sm:$0xff]  ;;  %v1753_v32 = vld [vmem:[#allocation7 + $0x1f48] sm:$0xff] }
 0x2c3   :  { %7591 = vmatprep.subr.bf16.mxu1 %v9321_v4  ;;  %v9361_v4 = vcombine.high %v1721_v54, %v1725_v3  ;;  %v1757_v2 = vld [vmem:[#allocation7 + $0x1f68] sm:$0xff] }
 0x2c5   :  { %7248 = vmatpush1.bf16.msra.mxu0 %v9318_v9  ;;  %v9358_v9 = vcombine.low %v1720_v43, %v1724_v44  ;;  %v1760_v43 = vld [vmem:[#allocation7 + $0x1f80] sm:$0xff] }
 0x2c6   :  { %7592 = vmatpush1.bf16.msra.mxu1 %v9320_v38  ;;  %7249 = vmatprep.subr.bf16.mxu0 %v9327_v39  ;;  %v9360_v38 = vcombine.low %v1721_v54, %v1725_v3  ;;  %v9367_v39 = vcombine.high %v1728_v7, %v1732_v8  ;;  %v1764_v44 = vld [vmem:[#allocation7 + $0x1fa0] sm:$0xff]  ;;  %v1761_v54 = vld [vmem:[#allocation7 + $0x1f88] sm:$0xff] }
 0x2c7   :  { %7593 = vmatprep.subr.bf16.mxu1 %v9329_v41  ;;  %v9369_v41 = vcombine.high %v1729_v12, %v1733_v37  ;;  %v1765_v3 = vld [vmem:[#allocation7 + $0x1fa8] sm:$0xff] }
 0x2c9   :  { %7250 = vmatpush1.bf16.msra.mxu0 %v9326_v57  ;;  %v9366_v57 = vcombine.low %v1728_v7, %v1732_v8  ;;  %v1768_v7 = vld [vmem:[#allocation7 + $0x1fc0] sm:$0xff] }
 0x2ca   :  { %7594 = vmatpush1.bf16.msra.mxu1 %v9328_v56  ;;  %7251 = vmatprep.subr.bf16.mxu0 %v9335_v59  ;;  %v9368_v56 = vcombine.low %v1729_v12, %v1733_v37  ;;  %v9375_v59 = vcombine.high %v1736_v48, %v1740_v49  ;;  %v1772_v8 = vld [vmem:[#allocation7 + $0x1fe0] sm:$0xff]  ;;  %v1769_v12 = vld [vmem:[#allocation7 + $0x1fc8] sm:$0xff] }
 0x2cb   :  { %7595 = vmatprep.subr.bf16.mxu1 %v9337_v60  ;;  %v9377_v60 = vcombine.high %v1737_v52, %v1741_v55  ;;  %v1773_v37 = vld [vmem:[#allocation7 + $0x1fe8] sm:$0xff] }
 0x2cd   :  { %7252 = vmatpush1.bf16.msra.mxu0 %v9334_v40  ;;  %v9374_v40 = vcombine.low %v1736_v48, %v1740_v49  ;;  %v754_v48 = vld [vmem:[#allocation7 + $0x10] sm:$0xff] }
 0x2ce   :  { %7596 = vmatpush1.bf16.msra.mxu1 %v9336_v30  ;;  %7253 = vmatprep.subr.bf16.mxu0 %v9343_v33  ;;  %v9376_v30 = vcombine.low %v1737_v52, %v1741_v55  ;;  %v9383_v33 = vcombine.high %v1744_v61, %v1748_v1  ;;  %v758_v49 = vld [vmem:[#allocation7 + $0x30] sm:$0xff]  ;;  %v755_v52 = vld [vmem:[#allocation7 + $0x18] sm:$0xff] }
 0x2cf   :  { %7597 = vmatprep.subr.bf16.mxu1 %v9345_v24  ;;  %v9385_v24 = vcombine.high %v1745_v10, %v1749_v11  ;;  %v759_v55 = vld [vmem:[#allocation7 + $0x38] sm:$0xff] }
 0x2d1   :  { %7254 = vmatpush1.bf16.msra.mxu0 %v9342_v20  ;;  %v9382_v20 = vcombine.low %v1744_v61, %v1748_v1  ;;  %v762_v61 = vld [vmem:[#allocation7 + $0x50] sm:$0xff] }
 0x2d2   :  { %7598 = vmatpush1.bf16.msra.mxu1 %v9344_v42  ;;  %7255 = vmatprep.subr.bf16.mxu0 %v9351_v19  ;;  %v9384_v42 = vcombine.low %v1745_v10, %v1749_v11  ;;  %v9391_v19 = vcombine.high %v1752_v36, %v1756_v31  ;;  %v766_v1 = vld [vmem:[#allocation7 + $0x70] sm:$0xff]  ;;  %v8394_v10 = vcombine.low %v754_v48, %v758_v49  ;;  %v763_v11 = vld [vmem:[#allocation7 + $0x58] sm:$0xff] }
 0x2d3   :  { %7599 = vmatprep.subr.bf16.mxu1 %v9353_v21  ;;  %v9393_v21 = vcombine.high %v1753_v32, %v1757_v2 }
 0x2d5   :  { %7256 = vmatpush1.bf16.msra.mxu0 %v9350_v46  ;;  %v9390_v46 = vcombine.low %v1752_v36, %v1756_v31  ;;  %v774_v36 = vld [vmem:[#allocation7 + $0xb0] sm:$0xff] }
 0x2d6   :  { %7600 = vmatpush1.bf16.msra.mxu1 %v9352_v14  ;;  %7257 = vmatprep.subr.bf16.mxu0 %v9359_v63  ;;  %v9392_v14 = vcombine.low %v1753_v32, %v1757_v2  ;;  %v9399_v63 = vcombine.high %v1760_v43, %v1764_v44  ;;  %v771_v32 = vld [vmem:[#allocation7 + $0x98] sm:$0xff] }
 0x2d7   :  { %7601 = vmatprep.subr.bf16.mxu1 %v9361_v4  ;;  %v9401_v4 = vcombine.high %v1761_v54, %v1765_v3  ;;  %v775_v2 = vld [vmem:[#allocation7 + $0xb8] sm:$0xff] }
 0x2d9   :  { %7258 = vmatpush1.bf16.msra.mxu0 %v9358_v9  ;;  %v9398_v9 = vcombine.low %v1760_v43, %v1764_v44  ;;  %v778_v43 = vld [vmem:[#allocation7 + $0xd0] sm:$0xff] }
 0x2da   :  { %7602 = vmatpush1.bf16.msra.mxu1 %v9360_v38  ;;  %7259 = vmatprep.subr.bf16.mxu0 %v9367_v39  ;;  %v9400_v38 = vcombine.low %v1761_v54, %v1765_v3  ;;  %v9407_v39 = vcombine.high %v1768_v7, %v1772_v8  ;;  %v782_v44 = vld [vmem:[#allocation7 + $0xf0] sm:$0xff]  ;;  %v779_v54 = vld [vmem:[#allocation7 + $0xd8] sm:$0xff] }
 0x2db   :  { %7603 = vmatprep.subr.bf16.mxu1 %v9369_v41  ;;  %v9409_v41 = vcombine.high %v1769_v12, %v1773_v37  ;;  %v783_v3 = vld [vmem:[#allocation7 + $0xf8] sm:$0xff] }
 0x2dd   :  { %7260 = vmatpush1.bf16.msra.mxu0 %v9366_v57  ;;  %v9406_v57 = vcombine.low %v1768_v7, %v1772_v8  ;;  %v786_v7 = vld [vmem:[#allocation7 + $0x110] sm:$0xff] }
 0x2de   :  { %7604 = vmatpush1.bf16.msra.mxu1 %v9368_v56  ;;  %7261 = vmatprep.subr.bf16.mxu0 %v9375_v59  ;;  %v9408_v56 = vcombine.low %v1769_v12, %v1773_v37  ;;  %v8395_v59 = vcombine.high %v754_v48, %v758_v49  ;;  %v790_v8 = vld [vmem:[#allocation7 + $0x130] sm:$0xff]  ;;  %v787_v12 = vld [vmem:[#allocation7 + $0x118] sm:$0xff] }
 0x2df   :  { %7605 = vmatprep.subr.bf16.mxu1 %v9377_v60  ;;  %v8397_v60 = vcombine.high %v755_v52, %v759_v55  ;;  %v791_v37 = vld [vmem:[#allocation7 + $0x138] sm:$0xff]  ;;  %v798_v48 = vld [vmem:[#allocation7 + $0x170] sm:$0xff] }
 0x2e0   :  { %v795_v49 = vld [vmem:[#allocation7 + $0x158] sm:$0xff] }
 0x2e1   :  { %7262 = vmatpush1.bf16.msra.mxu0 %v9374_v40  ;;  %v767_v40 = vld [vmem:[#allocation7 + $0x78] sm:$0xff] }
 0x2e2   :  { %7606 = vmatpush1.bf16.msra.mxu1 %v9376_v30  ;;  %7263 = vmatprep.subr.bf16.mxu0 %v9383_v33  ;;  %v8396_v30 = vcombine.low %v755_v52, %v759_v55  ;;  %v8403_v33 = vcombine.high %v762_v61, %v766_v1  ;;  %v8405_v31 = vcombine.high %v763_v11, %v767_v40  ;;  %v799_v52 = vld [vmem:[#allocation7 + $0x178] sm:$0xff] }
 0x2e3   :  { %7607 = vmatprep.subr.bf16.mxu1 %v9385_v24  ;;  %v770_v24 = vld [vmem:[#allocation7 + $0x90] sm:$0xff]  ;;  %v8426_v55 = vcombine.low %v786_v7, %v790_v8 }
 0x2e5   :  { %7264 = vmatpush1.bf16.msra.mxu0 %v9382_v20  ;;  %v8402_v20 = vcombine.low %v762_v61, %v766_v1  ;;  %v806_v61 = vld [vmem:[#allocation7 + $0x1b0] sm:$0xff]  ;;  %v803_v1 = vld [vmem:[#allocation7 + $0x198] sm:$0xff] }
 0x2e6   :  { %7608 = vmatpush1.bf16.msra.mxu1 %v9384_v42  ;;  %7265 = vmatprep.subr.bf16.mxu0 %v9391_v19  ;;  %v8404_v42 = vcombine.low %v763_v11, %v767_v40  ;;  %v8411_v19 = vcombine.high %v770_v24, %v774_v36  ;;  %v8436_v40 = vcombine.low %v795_v49, %v799_v52 }
 0x2e7   :  { %7609 = vmatprep.subr.bf16.mxu1 %v9393_v21  ;;  %v8413_v21 = vcombine.high %v771_v32, %v775_v2 }
 0x2e9   :  { %7266 = vmatpush1.bf16.msra.mxu0 %v9390_v46  ;;  %v8410_v46 = vcombine.low %v770_v24, %v774_v36  ;;  %v810_v24 = vld [vmem:[#allocation7 + $0x1d0] sm:$0xff] }
 0x2ea   :  { %7610 = vmatpush1.bf16.msra.mxu1 %v9392_v14  ;;  %7267 = vmatprep.subr.bf16.mxu0 %v9399_v63  ;;  %v8412_v14 = vcombine.low %v771_v32, %v775_v2  ;;  %v8419_v63 = vcombine.high %v778_v43, %v782_v44  ;;  %v814_v36 = vld [vmem:[#allocation7 + $0x1f0] sm:$0xff]  ;;  %v815_v32 = vld [vmem:[#allocation7 + $0x1f8] sm:$0xff] }
 0x2eb   :  { %7611 = vmatprep.subr.bf16.mxu1 %v9401_v4  ;;  %v8421_v4 = vcombine.high %v779_v54, %v783_v3 }
 0x2ed   :  { %7268 = vmatpush1.bf16.msra.mxu0 %v9398_v9  ;;  %v8420_v9 = vcombine.low %v779_v54, %v783_v3  ;;  %v823_v54 = vld [vmem:[#allocation7 + $0x238] sm:$0xff]  ;;  %v8450_v3 = vcombine.low %v810_v24, %v814_v36 }
 0x2ee   :  { %7612 = vmatpush1.bf16.msra.mxu1 %v9400_v38  ;;  %7269 = vmatprep.subr.bf16.mxu0 %v9407_v39  ;;  %v8427_v38 = vcombine.high %v786_v7, %v790_v8  ;;  %v8429_v39 = vcombine.high %v787_v12, %v791_v37  ;;  %v830_v7 = vld [vmem:[#allocation7 + $0x270] sm:$0xff]  ;;  %v827_v8 = vld [vmem:[#allocation7 + $0x258] sm:$0xff] }
 0x2ef   :  { %7613 = vmatprep.subr.bf16.mxu1 %v9409_v41  ;;  %v794_v41 = vld [vmem:[#allocation7 + $0x150] sm:$0xff] }
 0x2f0   :  { %v8434_v11 = vcombine.low %v794_v41, %v798_v48 }
 0x2f1   :  { %7270 = vmatpush1.bf16.msra.mxu0 %v9406_v57  ;;  %v8428_v57 = vcombine.low %v787_v12, %v791_v37  ;;  %v831_v12 = vld [vmem:[#allocation7 + $0x278] sm:$0xff] }
 0x2f2   :  { %7614 = vmatpush1.bf16.msra.mxu1 %v9408_v56  ;;  %7626 = vmatprep.subr.bf16.mxu0 %v8395_v59  ;;  %v8435_v56 = vcombine.high %v794_v41, %v798_v48  ;;  %v8437_v59 = vcombine.high %v795_v49, %v799_v52  ;;  %v838_v41 = vld [vmem:[#allocation7 + $0x2b0] sm:$0xff]  ;;  %v835_v48 = vld [vmem:[#allocation7 + $0x298] sm:$0xff] }
 0x2f3   :  { %7970 = vmatprep.subr.bf16.mxu1 %v8397_v60  ;;  %v802_v60 = vld [vmem:[#allocation7 + $0x190] sm:$0xff]  ;;  %v839_v49 = vld [vmem:[#allocation7 + $0x2b8] sm:$0xff] }
 0x2f4   :  { %7272 = vmatmul.mubr.bf16.vlgmr.msra.gmra.mrb[16].mxu0 %v10035_v0  ;;  %v8442_v2 = vcombine.low %v802_v60, %v806_v61 }
 0x2f5   :  { %7616 = vmatmul.mubr.bf16.vlgmr.msra.gmra.mrb[16].mxu1 %v10035_v0  ;;  %7627 = vmatpush1.bf16.msra.mxu0 %v8394_v10  ;;  %v807_v10 = vld [vmem:[#allocation7 + $0x1b8] sm:$0xff] }
 0x2f6   :  { %7658 = vmatprep.mubr.bf16.mxu0 %v9859_v53  ;;  %7971 = vmatpush1.bf16.msra.mxu1 %v8396_v30  ;;  %v8443_v30 = vcombine.high %v802_v60, %v806_v61  ;;  %v846_v60 = vld [vmem:[#allocation7 + $0x2f0] sm:$0xff]  ;;  %v843_v61 = vld [vmem:[#allocation7 + $0x2d8] sm:$0xff] }
 0x2f7   :  { %8002 = vmatprep.mubr.bf16.mxu1 %v9859_v53  ;;  %7628 = vmatprep.subr.bf16.mxu0 %v8403_v33  ;;  %v8418_v53 = vcombine.low %v778_v43, %v782_v44  ;;  %v8445_v33 = vcombine.high %v803_v1, %v807_v10  ;;  %v822_v43 = vld [vmem:[#allocation7 + $0x230] sm:$0xff]  ;;  %v819_v44 = vld [vmem:[#allocation7 + $0x218] sm:$0xff] }
 0x2f8   :  { %7972 = vmatprep.subr.bf16.mxu1 %v8405_v31  ;;  %v811_v31 = vld [vmem:[#allocation7 + $0x1d8] sm:$0xff] }
 0x2f9   :  { %7629 = vmatpush1.bf16.msra.mxu0 %v8402_v20  ;;  %v8444_v20 = vcombine.low %v803_v1, %v807_v10  ;;  %v847_v1 = vld [vmem:[#allocation7 + $0x2f8] sm:$0xff] }
 0x2fa   :  { %7973 = vmatpush1.bf16.msra.mxu1 %v8404_v42  ;;  %7630 = vmatprep.subr.bf16.mxu0 %v8411_v19  ;;  %v8451_v42 = vcombine.high %v810_v24, %v814_v36  ;;  %v8453_v19 = vcombine.high %v811_v31, %v815_v32  ;;  %v854_v24 = vld [vmem:[#allocation7 + $0x330] sm:$0xff]  ;;  %v851_v36 = vld [vmem:[#allocation7 + $0x318] sm:$0xff] }
 0x2fb   :  { %7974 = vmatprep.subr.bf16.mxu1 %v8413_v21  ;;  %v818_v21 = vld [vmem:[#allocation7 + $0x210] sm:$0xff] }
 0x2fc   :  { %v8458_v37 = vcombine.low %v818_v21, %v822_v43 }
 0x2fd   :  { %7631 = vmatpush1.bf16.msra.mxu0 %v8410_v46  ;;  %v8452_v46 = vcombine.low %v811_v31, %v815_v32  ;;  %v855_v31 = vld [vmem:[#allocation7 + $0x338] sm:$0xff] }
 0x2fe   :  { %7975 = vmatpush1.bf16.msra.mxu1 %v8412_v14  ;;  %7632 = vmatprep.subr.bf16.mxu0 %v8419_v63  ;;  %v8459_v14 = vcombine.high %v818_v21, %v822_v43  ;;  %v8461_v63 = vcombine.high %v819_v44, %v823_v54  ;;  %v862_v21 = vld [vmem:[#allocation7 + $0x370] sm:$0xff]  ;;  %v859_v43 = vld [vmem:[#allocation7 + $0x358] sm:$0xff] }
 0x2ff   :  { %7976 = vmatprep.subr.bf16.mxu1 %v8421_v4  ;;  %v826_v4 = vld [vmem:[#allocation7 + $0x250] sm:$0xff] }
 0x300   :  { %v8466_v52 = vcombine.low %v826_v4, %v830_v7 }
 0x301   :  { %7633 = vmatpush1.bf16.msra.mxu0 %v8418_v53  ;;  %v8460_v53 = vcombine.low %v819_v44, %v823_v54  ;;  %v863_v44 = vld [vmem:[#allocation7 + $0x378] sm:$0xff] }
 0x302   :  { %7977 = vmatpush1.bf16.msra.mxu1 %v8420_v9  ;;  %7634 = vmatprep.subr.bf16.mxu0 %v8427_v38  ;;  %v8467_v9 = vcombine.high %v826_v4, %v830_v7  ;;  %v8469_v38 = vcombine.high %v827_v8, %v831_v12  ;;  %v870_v4 = vld [vmem:[#allocation7 + $0x3b0] sm:$0xff]  ;;  %v867_v7 = vld [vmem:[#allocation7 + $0x398] sm:$0xff] }
 0x303   :  { %7978 = vmatprep.subr.bf16.mxu1 %v8429_v39  ;;  %v834_v39 = vld [vmem:[#allocation7 + $0x290] sm:$0xff] }
 0x304   :  { %v8474_v10 = vcombine.low %v834_v39, %v838_v41 }
 0x305   :  { %7635 = vmatpush1.bf16.msra.mxu0 %v8426_v55  ;;  %v8468_v55 = vcombine.low %v827_v8, %v831_v12  ;;  %v871_v8 = vld [vmem:[#allocation7 + $0x3b8] sm:$0xff] }
 0x306   :  { %7979 = vmatpush1.bf16.msra.mxu1 %v8428_v57  ;;  %7636 = vmatprep.subr.bf16.mxu0 %v8435_v56  ;;  %v8475_v57 = vcombine.high %v834_v39, %v838_v41  ;;  %v8477_v56 = vcombine.high %v835_v48, %v839_v49  ;;  %v878_v39 = vld [vmem:[#allocation7 + $0x3f0] sm:$0xff]  ;;  %v875_v41 = vld [vmem:[#allocation7 + $0x3d8] sm:$0xff] }
 0x307   :  { %7980 = vmatprep.subr.bf16.mxu1 %v8437_v59  ;;  %v842_v59 = vld [vmem:[#allocation7 + $0x2d0] sm:$0xff] }
 0x308   :  { %v8482_v32 = vcombine.low %v842_v59, %v846_v60 }
 0x309   :  { %7637 = vmatpush1.bf16.msra.mxu0 %v8434_v11  ;;  %v8476_v11 = vcombine.low %v835_v48, %v839_v49  ;;  %v879_v48 = vld [vmem:[#allocation7 + $0x3f8] sm:$0xff] }
 0x30a   :  { %7981 = vmatpush1.bf16.msra.mxu1 %v8436_v40  ;;  %7638 = vmatprep.subr.bf16.mxu0 %v8443_v30  ;;  %v8483_v40 = vcombine.high %v842_v59, %v846_v60  ;;  %v8485_v30 = vcombine.high %v843_v61, %v847_v1  ;;  %v886_v59 = vld [vmem:[#allocation7 + $0x430] sm:$0xff]  ;;  %v883_v60 = vld [vmem:[#allocation7 + $0x418] sm:$0xff] }
 0x30b   :  { %7982 = vmatprep.subr.bf16.mxu1 %v8445_v33  ;;  %v850_v33 = vld [vmem:[#allocation7 + $0x310] sm:$0xff] }
 0x30c   :  { %v8490_v54 = vcombine.low %v850_v33, %v854_v24 }
 0x30d   :  { %7639 = vmatpush1.bf16.msra.mxu0 %v8442_v2  ;;  %v8484_v2 = vcombine.low %v843_v61, %v847_v1  ;;  %v887_v61 = vld [vmem:[#allocation7 + $0x438] sm:$0xff] }
 0x30e   :  { %7983 = vmatpush1.bf16.msra.mxu1 %v8444_v20  ;;  %7640 = vmatprep.subr.bf16.mxu0 %v8451_v42  ;;  %v8491_v20 = vcombine.high %v850_v33, %v854_v24  ;;  %v8493_v42 = vcombine.high %v851_v36, %v855_v31  ;;  %v894_v33 = vld [vmem:[#allocation7 + $0x470] sm:$0xff] }
 0x30f   :  { %7984 = vmatprep.subr.bf16.mxu1 %v8453_v19  ;;  %v858_v19 = vld [vmem:[#allocation7 + $0x350] sm:$0xff] }
 0x310   :  { %v8498_v12 = vcombine.low %v858_v19, %v862_v21 }
 0x311   :  { %7641 = vmatpush1.bf16.msra.mxu0 %v8450_v3  ;;  %v8492_v3 = vcombine.low %v851_v36, %v855_v31  ;;  %v891_v36 = vld [vmem:[#allocation7 + $0x458] sm:$0xff] }
 0x312   :  { %7985 = vmatpush1.bf16.msra.mxu1 %v8452_v46  ;;  %7642 = vmatprep.subr.bf16.mxu0 %v8459_v14  ;;  %v8499_v46 = vcombine.high %v858_v19, %v862_v21  ;;  %v8501_v14 = vcombine.high %v859_v43, %v863_v44  ;;  %v895_v31 = vld [vmem:[#allocation7 + $0x478] sm:$0xff] }
 0x313   :  { %7986 = vmatprep.subr.bf16.mxu1 %v8461_v63  ;;  %v866_v63 = vld [vmem:[#allocation7 + $0x390] sm:$0xff]  ;;  %v8533_v19 = vcombine.high %v891_v36, %v895_v31  ;;  %v899_v21 = vld [vmem:[#allocation7 + $0x498] sm:$0xff] }
 0x314   :  { %v8506_v49 = vcombine.low %v866_v63, %v870_v4 }
 0x315   :  { %7643 = vmatpush1.bf16.msra.mxu0 %v8458_v37  ;;  %v8500_v37 = vcombine.low %v859_v43, %v863_v44  ;;  %v903_v43 = vld [vmem:[#allocation7 + $0x4b8] sm:$0xff] }
 0x316   :  { %7987 = vmatpush1.bf16.msra.mxu1 %v8460_v53  ;;  %7644 = vmatprep.subr.bf16.mxu0 %v8467_v9  ;;  %v8507_v53 = vcombine.high %v866_v63, %v870_v4  ;;  %v8509_v9 = vcombine.high %v867_v7, %v871_v8  ;;  %v910_v63 = vld [vmem:[#allocation7 + $0x4f0] sm:$0xff]  ;;  %v907_v4 = vld [vmem:[#allocation7 + $0x4d8] sm:$0xff] }
 0x317   :  { %7988 = vmatprep.subr.bf16.mxu1 %v8469_v38  ;;  %v874_v38 = vld [vmem:[#allocation7 + $0x3d0] sm:$0xff] }
 0x318   :  { %v8514_v1 = vcombine.low %v874_v38, %v878_v39 }
 0x319   :  { %7645 = vmatpush1.bf16.msra.mxu0 %v8466_v52  ;;  %v8508_v52 = vcombine.low %v867_v7, %v871_v8  ;;  %v911_v7 = vld [vmem:[#allocation7 + $0x4f8] sm:$0xff] }
 0x31a   :  { %7989 = vmatpush1.bf16.msra.mxu1 %v8468_v55  ;;  %7646 = vmatprep.subr.bf16.mxu0 %v8475_v57  ;;  %v8515_v55 = vcombine.high %v874_v38, %v878_v39  ;;  %v8517_v57 = vcombine.high %v875_v41, %v879_v48  ;;  %v915_v38 = vld [vmem:[#allocation7 + $0x518] sm:$0xff] }
 0x31b   :  { %7990 = vmatprep.subr.bf16.mxu1 %v8477_v56  ;;  %v882_v56 = vld [vmem:[#allocation7 + $0x410] sm:$0xff]  ;;  %v919_v39 = vld [vmem:[#allocation7 + $0x538] sm:$0xff] }
 0x31c   :  { %v8522_v24 = vcombine.low %v882_v56, %v886_v59 }
 0x31d   :  { %7647 = vmatpush1.bf16.msra.mxu0 %v8474_v10  ;;  %v8516_v10 = vcombine.low %v875_v41, %v879_v48  ;;  %v8548_v41 = vcombine.low %v907_v4, %v911_v7 }
 0x31e   :  { %7991 = vmatpush1.bf16.msra.mxu1 %v8476_v11  ;;  %7648 = vmatprep.subr.bf16.mxu0 %v8483_v40  ;;  %v8523_v11 = vcombine.high %v882_v56, %v886_v59  ;;  %v8525_v40 = vcombine.high %v883_v60, %v887_v61  ;;  %v927_v56 = vld [vmem:[#allocation7 + $0x578] sm:$0xff] }
 0x31f   :  { %7992 = vmatprep.subr.bf16.mxu1 %v8485_v30  ;;  %v890_v30 = vld [vmem:[#allocation7 + $0x450] sm:$0xff] }
 0x320   :  { %v8530_v44 = vcombine.low %v890_v30, %v894_v33 }
 0x321   :  { %7649 = vmatpush1.bf16.msra.mxu0 %v8482_v32  ;;  %v8524_v32 = vcombine.low %v883_v60, %v887_v61  ;;  %v8556_v60 = vcombine.low %v915_v38, %v919_v39 }
 0x322   :  { %7993 = vmatpush1.bf16.msra.mxu1 %v8484_v2  ;;  %7650 = vmatprep.subr.bf16.mxu0 %v8491_v20  ;;  %v8531_v2 = vcombine.high %v890_v30, %v894_v33  ;;  %v898_v20 = vld [vmem:[#allocation7 + $0x490] sm:$0xff]  ;;  %v935_v30 = vld [vmem:[#allocation7 + $0x5b8] sm:$0xff] }
 0x323   :  { %7994 = vmatprep.subr.bf16.mxu1 %v8493_v42  ;;  %v902_v42 = vld [vmem:[#allocation7 + $0x4b0] sm:$0xff] }
 0x324   :  { %v8538_v8 = vcombine.low %v898_v20, %v902_v42 }
 0x325   :  { %7651 = vmatpush1.bf16.msra.mxu0 %v8490_v54  ;;  %v8532_v54 = vcombine.low %v891_v36, %v895_v31 }
 0x326   :  { %7995 = vmatpush1.bf16.msra.mxu1 %v8492_v3  ;;  %7652 = vmatprep.subr.bf16.mxu0 %v8499_v46  ;;  %v8539_v3 = vcombine.high %v898_v20, %v902_v42  ;;  %v8541_v46 = vcombine.high %v899_v21, %v903_v43  ;;  %v939_v20 = vld [vmem:[#allocation7 + $0x5d8] sm:$0xff] }
 0x327   :  { %7996 = vmatprep.subr.bf16.mxu1 %v8501_v14  ;;  %v906_v14 = vld [vmem:[#allocation7 + $0x4d0] sm:$0xff]  ;;  %v943_v42 = vld [vmem:[#allocation7 + $0x5f8] sm:$0xff] }
 0x329   :  { %7653 = vmatpush1.bf16.msra.mxu0 %v8498_v12  ;;  %v8547_v12 = vcombine.high %v906_v14, %v910_v63 }
 0x32a   :  { %7997 = vmatpush1.bf16.msra.mxu1 %v8500_v37  ;;  %7654 = vmatprep.subr.bf16.mxu0 %v8507_v53  ;;  %v8549_v37 = vcombine.high %v907_v4, %v911_v7  ;;  %v914_v53 = vld [vmem:[#allocation7 + $0x510] sm:$0xff]  ;;  %v8580_v4 = vcombine.low %v939_v20, %v943_v42 }
 0x32b   :  { %7998 = vmatprep.subr.bf16.mxu1 %v8509_v9  ;;  %v918_v9 = vld [vmem:[#allocation7 + $0x530] sm:$0xff] }
 0x32c   :  { %v8555_v48 = vcombine.high %v914_v53, %v918_v9  ;;  %v8554_v59 = vcombine.low %v914_v53, %v918_v9  ;;  %v959_v53 = vld [vmem:[#allocation7 + $0x678] sm:$0xff] }
 0x32d   :  { %7655 = vmatpush1.bf16.msra.mxu0 %v8506_v49  ;;  %v8557_v49 = vcombine.high %v915_v38, %v919_v39 }
 0x32e   :  { %7999 = vmatpush1.bf16.msra.mxu1 %v8508_v52  ;;  %7656 = vmatprep.subr.bf16.mxu0 %v8515_v55  ;;  %v922_v52 = vld [vmem:[#allocation7 + $0x550] sm:$0xff] }
 0x32f   :  { %8000 = vmatprep.subr.bf16.mxu1 %v8517_v57  ;;  %v926_v55 = vld [vmem:[#allocation7 + $0x570] sm:$0xff]  ;;  %v923_v57 = vld [vmem:[#allocation7 + $0x558] sm:$0xff] }
 0x330   :  { %v8563_v61 = vcombine.high %v922_v52, %v926_v55  ;;  %v8562_v33 = vcombine.low %v922_v52, %v926_v55  ;;  %v967_v52 = vld [vmem:[#allocation7 + $0x6b8] sm:$0xff] }
 0x331   :  { %7657 = vmatpush1.bf16.msra.mxu0 %v8514_v1  ;;  %v8565_v1 = vcombine.high %v923_v57, %v927_v56 }
 0x332   :  { %8001 = vmatpush1.bf16.msra.mxu1 %v8516_v10  ;;  %7669 = vmatprep.subr.bf16.mxu0 %v8523_v11  ;;  %v930_v10 = vld [vmem:[#allocation7 + $0x590] sm:$0xff] }
 0x333   :  { %8013 = vmatprep.subr.bf16.mxu1 %v8525_v40  ;;  %v934_v11 = vld [vmem:[#allocation7 + $0x5b0] sm:$0xff]  ;;  %v931_v40 = vld [vmem:[#allocation7 + $0x598] sm:$0xff] }
 0x334   :  { %7659 = vmatmul.mubr.bf16.vlgmr.msra.gmra.mrb[20].mxu0 %v9857_v51  ;;  %v8571_v36 = vcombine.high %v930_v10, %v934_v11  ;;  %v8573_v31 = vcombine.high %v931_v40, %v935_v30 }
 0x335   :  { %8003 = vmatmul.mubr.bf16.vlgmr.msra.gmra.mrb[20].mxu1 %v9857_v51  ;;  %7670 = vmatpush1.bf16.msra.mxu0 %v8522_v24  ;;  %v8540_v51 = vcombine.low %v899_v21, %v903_v43  ;;  %v8564_v24 = vcombine.low %v923_v57, %v927_v56  ;;  %v8572_v21 = vcombine.low %v931_v40, %v935_v30 }
 0x336   :  { %7701 = vmatprep.mubr.bf16.mxu0 %v9885_v18  ;;  %8014 = vmatpush1.bf16.msra.mxu1 %v8524_v32  ;;  %v938_v32 = vld [vmem:[#allocation7 + $0x5d0] sm:$0xff] }
 0x337   :  { %8045 = vmatprep.mubr.bf16.mxu1 %v9885_v18  ;;  %7671 = vmatprep.subr.bf16.mxu0 %v8531_v2  ;;  %v8546_v18 = vcombine.low %v906_v14, %v910_v63  ;;  %v942_v2 = vld [vmem:[#allocation7 + $0x5f0] sm:$0xff]  ;;  %v951_v14 = vld [vmem:[#allocation7 + $0x638] sm:$0xff] }
 0x338   :  { %8015 = vmatprep.subr.bf16.mxu1 %v8533_v19  ;;  %v8570_v19 = vcombine.low %v930_v10, %v934_v11  ;;  %v8579_v43 = vcombine.high %v938_v32, %v942_v2  ;;  %v8578_v63 = vcombine.low %v938_v32, %v942_v2  ;;  %v975_v10 = vld [vmem:[#allocation7 + $0x6f8] sm:$0xff] }
 0x339   :  { %7672 = vmatpush1.bf16.msra.mxu0 %v8530_v44  ;;  %v8581_v44 = vcombine.high %v939_v20, %v943_v42  ;;  %v983_v32 = vld [vmem:[#allocation7 + $0x738] sm:$0xff] }
 0x33a   :  { %8016 = vmatpush1.bf16.msra.mxu1 %v8532_v54  ;;  %7673 = vmatprep.subr.bf16.mxu0 %v8539_v3  ;;  %v946_v54 = vld [vmem:[#allocation7 + $0x610] sm:$0xff] }
 0x33b   :  { %8017 = vmatprep.subr.bf16.mxu1 %v8541_v46  ;;  %v950_v3 = vld [vmem:[#allocation7 + $0x630] sm:$0xff]  ;;  %v947_v46 = vld [vmem:[#allocation7 + $0x618] sm:$0xff] }
 0x33c   :  { %v8587_v7 = vcombine.high %v946_v54, %v950_v3  ;;  %v8586_v9 = vcombine.low %v946_v54, %v950_v3  ;;  %v8588_v38 = vcombine.low %v947_v46, %v951_v14  ;;  %v991_v54 = vld [vmem:[#allocation7 + $0x778] sm:$0xff] }
 0x33d   :  { %7674 = vmatpush1.bf16.msra.mxu0 %v8538_v8  ;;  %v8589_v8 = vcombine.high %v947_v46, %v951_v14 }
 0x33e   :  { %8018 = vmatpush1.bf16.msra.mxu1 %v8540_v51  ;;  %7675 = vmatprep.subr.bf16.mxu0 %v8547_v12  ;;  %v954_v51 = vld [vmem:[#allocation7 + $0x650] sm:$0xff] }
 0x33f   :  { %8019 = vmatprep.subr.bf16.mxu1 %v8549_v37  ;;  %v958_v12 = vld [vmem:[#allocation7 + $0x670] sm:$0xff]  ;;  %v955_v37 = vld [vmem:[#allocation7 + $0x658] sm:$0xff] }
 0x340   :  { %v8595_v39 = vcombine.high %v954_v51, %v958_v12  ;;  %v8594_v55 = vcombine.low %v954_v51, %v958_v12  ;;  %v8596_v57 = vcombine.low %v955_v37, %v959_v53  ;;  %v999_v51 = vld [vmem:[#allocation7 + $0x7b8] sm:$0xff] }
 0x341   :  { %7676 = vmatpush1.bf16.msra.mxu0 %v8546_v18  ;;  %v8597_v18 = vcombine.high %v955_v37, %v959_v53 }
 0x342   :  { %8020 = vmatpush1.bf16.msra.mxu1 %v8548_v41  ;;  %7677 = vmatprep.subr.bf16.mxu0 %v8555_v48  ;;  %v962_v41 = vld [vmem:[#allocation7 + $0x690] sm:$0xff] }
 0x343   :  { %8021 = vmatprep.subr.bf16.mxu1 %v8557_v49  ;;  %v966_v48 = vld [vmem:[#allocation7 + $0x6b0] sm:$0xff]  ;;  %v963_v49 = vld [vmem:[#allocation7 + $0x698] sm:$0xff] }
 0x344   :  { %v8603_v56 = vcombine.high %v962_v41, %v966_v48  ;;  %v8602_v11 = vcombine.low %v962_v41, %v966_v48  ;;  %v8604_v40 = vcombine.low %v963_v49, %v967_v52  ;;  %v1007_v41 = vld [vmem:[#allocation7 + $0x7f8] sm:$0xff] }
 0x345   :  { %7678 = vmatpush1.bf16.msra.mxu0 %v8554_v59  ;;  %v8605_v59 = vcombine.high %v963_v49, %v967_v52 }
 0x346   :  { %8022 = vmatpush1.bf16.msra.mxu1 %v8556_v60  ;;  %7679 = vmatprep.subr.bf16.mxu0 %v8563_v61  ;;  %v970_v60 = vld [vmem:[#allocation7 + $0x6d0] sm:$0xff] }
 0x347   :  { %8023 = vmatprep.subr.bf16.mxu1 %v8565_v1  ;;  %v974_v61 = vld [vmem:[#allocation7 + $0x6f0] sm:$0xff]  ;;  %v971_v1 = vld [vmem:[#allocation7 + $0x6d8] sm:$0xff] }
 0x348   :  { %v8611_v30 = vcombine.high %v970_v60, %v974_v61  ;;  %v8610_v2 = vcombine.low %v970_v60, %v974_v61  ;;  %v8612_v20 = vcombine.low %v971_v1, %v975_v10  ;;  %v1015_v60 = vld [vmem:[#allocation7 + $0x838] sm:$0xff] }
 0x349   :  { %7680 = vmatpush1.bf16.msra.mxu0 %v8562_v33  ;;  %v8613_v33 = vcombine.high %v971_v1, %v975_v10 }
 0x34a   :  { %8024 = vmatpush1.bf16.msra.mxu1 %v8564_v24  ;;  %7681 = vmatprep.subr.bf16.mxu0 %v8571_v36  ;;  %v978_v24 = vld [vmem:[#allocation7 + $0x710] sm:$0xff] }
 0x34b   :  { %8025 = vmatprep.subr.bf16.mxu1 %v8573_v31  ;;  %v982_v36 = vld [vmem:[#allocation7 + $0x730] sm:$0xff]  ;;  %v979_v31 = vld [vmem:[#allocation7 + $0x718] sm:$0xff] }
 0x34c   :  { %v8619_v42 = vcombine.high %v978_v24, %v982_v36  ;;  %v8618_v3 = vcombine.low %v978_v24, %v982_v36  ;;  %v8620_v46 = vcombine.low %v979_v31, %v983_v32  ;;  %v1019_v24 = vld [vmem:[#allocation7 + $0x858] sm:$0xff] }
 0x34d   :  { %7682 = vmatpush1.bf16.msra.mxu0 %v8570_v19  ;;  %v8621_v19 = vcombine.high %v979_v31, %v983_v32  ;;  %v1023_v36 = vld [vmem:[#allocation7 + $0x878] sm:$0xff] }
 0x34e   :  { %8026 = vmatpush1.bf16.msra.mxu1 %v8572_v21  ;;  %7683 = vmatprep.subr.bf16.mxu0 %v8579_v43  ;;  %v986_v21 = vld [vmem:[#allocation7 + $0x750] sm:$0xff] }
 0x34f   :  { %8027 = vmatprep.subr.bf16.mxu1 %v8581_v44  ;;  %v990_v43 = vld [vmem:[#allocation7 + $0x770] sm:$0xff]  ;;  %v987_v44 = vld [vmem:[#allocation7 + $0x758] sm:$0xff] }
 0x350   :  { %v8627_v14 = vcombine.high %v986_v21, %v990_v43  ;;  %v8626_v12 = vcombine.low %v986_v21, %v990_v43  ;;  %v8628_v37 = vcombine.low %v987_v44, %v991_v54  ;;  %v1031_v21 = vld [vmem:[#allocation7 + $0x8b8] sm:$0xff] }
 0x351   :  { %7684 = vmatpush1.bf16.msra.mxu0 %v8578_v63  ;;  %v8629_v63 = vcombine.high %v987_v44, %v991_v54  ;;  %v8660_v44 = vcombine.low %v1019_v24, %v1023_v36 }
 0x352   :  { %8028 = vmatpush1.bf16.msra.mxu1 %v8580_v4  ;;  %7685 = vmatprep.subr.bf16.mxu0 %v8587_v7  ;;  %v994_v4 = vld [vmem:[#allocation7 + $0x790] sm:$0xff] }
 0x353   :  { %8029 = vmatprep.subr.bf16.mxu1 %v8589_v8  ;;  %v998_v7 = vld [vmem:[#allocation7 + $0x7b0] sm:$0xff]  ;;  %v995_v8 = vld [vmem:[#allocation7 + $0x798] sm:$0xff] }
 0x354   :  { %v8635_v53 = vcombine.high %v994_v4, %v998_v7  ;;  %v8634_v48 = vcombine.low %v994_v4, %v998_v7  ;;  %v8636_v49 = vcombine.low %v995_v8, %v999_v51  ;;  %v1039_v4 = vld [vmem:[#allocation7 + $0x8f8] sm:$0xff] }
 0x355   :  { %7686 = vmatpush1.bf16.msra.mxu0 %v8586_v9  ;;  %v8637_v9 = vcombine.high %v995_v8, %v999_v51 }
 0x356   :  { %8030 = vmatpush1.bf16.msra.mxu1 %v8588_v38  ;;  %7687 = vmatprep.subr.bf16.mxu0 %v8595_v39  ;;  %v1002_v38 = vld [vmem:[#allocation7 + $0x7d0] sm:$0xff] }
 0x357   :  { %8031 = vmatprep.subr.bf16.mxu1 %v8597_v18  ;;  %v1006_v39 = vld [vmem:[#allocation7 + $0x7f0] sm:$0xff]  ;;  %v1003_v18 = vld [vmem:[#allocation7 + $0x7d8] sm:$0xff] }
 0x358   :  { %v8643_v52 = vcombine.high %v1002_v38, %v1006_v39  ;;  %v8642_v61 = vcombine.low %v1002_v38, %v1006_v39  ;;  %v8644_v1 = vcombine.low %v1003_v18, %v1007_v41 }
 0x359   :  { %7688 = vmatpush1.bf16.msra.mxu0 %v8594_v55  ;;  %v8645_v55 = vcombine.high %v1003_v18, %v1007_v41  ;;  %v1050_v41 = vld [vmem:[#allocation7 + $0x950] sm:$0xff] }
 0x35a   :  { %8032 = vmatpush1.bf16.msra.mxu1 %v8596_v57  ;;  %7689 = vmatprep.subr.bf16.mxu0 %v8603_v56  ;;  %v1010_v57 = vld [vmem:[#allocation7 + $0x810] sm:$0xff] }
 0x35b   :  { %8033 = vmatprep.subr.bf16.mxu1 %v8605_v59  ;;  %v1014_v56 = vld [vmem:[#allocation7 + $0x830] sm:$0xff]  ;;  %v1011_v59 = vld [vmem:[#allocation7 + $0x818] sm:$0xff] }
 0x35c   :  { %v8651_v10 = vcombine.high %v1010_v57, %v1014_v56  ;;  %v8652_v31 = vcombine.low %v1011_v59, %v1015_v60 }
 0x35d   :  { %7690 = vmatpush1.bf16.msra.mxu0 %v8602_v11  ;;  %v8653_v11 = vcombine.high %v1011_v59, %v1015_v60  ;;  %v1058_v60 = vld [vmem:[#allocation7 + $0x990] sm:$0xff] }
 0x35e   :  { %8034 = vmatpush1.bf16.msra.mxu1 %v8604_v40  ;;  %7691 = vmatprep.subr.bf16.mxu0 %v8611_v30  ;;  %v1018_v40 = vld [vmem:[#allocation7 + $0x850] sm:$0xff] }
 0x35f   :  { %8035 = vmatprep.subr.bf16.mxu1 %v8613_v33  ;;  %v1022_v30 = vld [vmem:[#allocation7 + $0x870] sm:$0xff]  ;;  %v8650_v33 = vcombine.low %v1010_v57, %v1014_v56 }
 0x360   :  { %v8659_v32 = vcombine.high %v1018_v40, %v1022_v30  ;;  %v8658_v43 = vcombine.low %v1018_v40, %v1022_v30 }
 0x361   :  { %7692 = vmatpush1.bf16.msra.mxu0 %v8610_v2  ;;  %v1026_v2 = vld [vmem:[#allocation7 + $0x890] sm:$0xff] }
 0x362   :  { %8036 = vmatpush1.bf16.msra.mxu1 %v8612_v20  ;;  %7693 = vmatprep.subr.bf16.mxu0 %v8619_v42  ;;  %v1030_v20 = vld [vmem:[#allocation7 + $0x8b0] sm:$0xff]  ;;  %v8661_v42 = vcombine.high %v1019_v24, %v1023_v36 }
 0x363   :  { %8037 = vmatprep.subr.bf16.mxu1 %v8621_v19  ;;  %v1027_v19 = vld [vmem:[#allocation7 + $0x898] sm:$0xff]  ;;  %v8667_v54 = vcombine.high %v1026_v2, %v1030_v20  ;;  %v8666_v7 = vcombine.low %v1026_v2, %v1030_v20  ;;  %v1066_v24 = vld [vmem:[#allocation7 + $0x9d0] sm:$0xff] }
 0x364   :  { %v1070_v36 = vld [vmem:[#allocation7 + $0x9f0] sm:$0xff] }
 0x365   :  { %7694 = vmatpush1.bf16.msra.mxu0 %v8618_v3  ;;  %v8669_v3 = vcombine.high %v1027_v19, %v1031_v21 }
 0x366   :  { %8038 = vmatpush1.bf16.msra.mxu1 %v8620_v46  ;;  %7695 = vmatprep.subr.bf16.mxu0 %v8627_v14  ;;  %v1034_v46 = vld [vmem:[#allocation7 + $0x8d0] sm:$0xff] }
 0x367   :  { %8039 = vmatprep.subr.bf16.mxu1 %v8629_v63  ;;  %v1038_v14 = vld [vmem:[#allocation7 + $0x8f0] sm:$0xff]  ;;  %v1035_v63 = vld [vmem:[#allocation7 + $0x8d8] sm:$0xff] }
 0x368   :  { %v8675_v8 = vcombine.high %v1034_v46, %v1038_v14  ;;  %v8677_v51 = vcombine.high %v1035_v63, %v1039_v4  ;;  %v8676_v38 = vcombine.low %v1035_v63, %v1039_v4  ;;  %v1082_v4 = vld [vmem:[#allocation7 + $0xa50] sm:$0xff] }
 0x369   :  { %7696 = vmatpush1.bf16.msra.mxu0 %v8626_v12  ;;  %v1042_v12 = vld [vmem:[#allocation7 + $0x910] sm:$0xff] }
 0x36a   :  { %8040 = vmatpush1.bf16.msra.mxu1 %v8628_v37  ;;  %7697 = vmatprep.subr.bf16.mxu0 %v8635_v53  ;;  %v1046_v37 = vld [vmem:[#allocation7 + $0x930] sm:$0xff]  ;;  %v1043_v53 = vld [vmem:[#allocation7 + $0x918] sm:$0xff] }
 0x36b   :  { %8041 = vmatprep.subr.bf16.mxu1 %v8637_v9  ;;  %v1047_v9 = vld [vmem:[#allocation7 + $0x938] sm:$0xff]  ;;  %v8683_v39 = vcombine.high %v1042_v12, %v1046_v37 }
 0x36c   :  { %v8685_v18 = vcombine.high %v1043_v53, %v1047_v9  ;;  %v8684_v57 = vcombine.low %v1043_v53, %v1047_v9  ;;  %v1090_v9 = vld [vmem:[#allocation7 + $0xa90] sm:$0xff] }
 0x36d   :  { %7698 = vmatpush1.bf16.msra.mxu0 %v8634_v48  ;;  %v1054_v48 = vld [vmem:[#allocation7 + $0x970] sm:$0xff] }
 0x36e   :  { %8042 = vmatpush1.bf16.msra.mxu1 %v8636_v49  ;;  %7699 = vmatprep.subr.bf16.mxu0 %v8643_v52  ;;  %v1051_v49 = vld [vmem:[#allocation7 + $0x958] sm:$0xff]  ;;  %v8691_v56 = vcombine.high %v1050_v41, %v1054_v48 }
 0x36f   :  { %8043 = vmatprep.subr.bf16.mxu1 %v8645_v55  ;;  %v1055_v52 = vld [vmem:[#allocation7 + $0x978] sm:$0xff]  ;;  %v8682_v55 = vcombine.low %v1042_v12, %v1046_v37 }
 0x370   :  { %v8693_v59 = vcombine.high %v1051_v49, %v1055_v52  ;;  %v8692_v40 = vcombine.low %v1051_v49, %v1055_v52  ;;  %v1098_v52 = vld [vmem:[#allocation7 + $0xad0] sm:$0xff] }
 0x371   :  { %7700 = vmatpush1.bf16.msra.mxu0 %v8642_v61  ;;  %v1062_v61 = vld [vmem:[#allocation7 + $0x9b0] sm:$0xff] }
 0x372   :  { %8044 = vmatpush1.bf16.msra.mxu1 %v8644_v1  ;;  %7712 = vmatprep.subr.bf16.mxu0 %v8651_v10  ;;  %v1059_v1 = vld [vmem:[#allocation7 + $0x998] sm:$0xff]  ;;  %v8699_v30 = vcombine.high %v1058_v60, %v1062_v61  ;;  %v8698_v2 = vcombine.low %v1058_v60, %v1062_v61 }
 0x373   :  { %8056 = vmatprep.subr.bf16.mxu1 %v8653_v11  ;;  %v1063_v10 = vld [vmem:[#allocation7 + $0x9b8] sm:$0xff]  ;;  %v8690_v11 = vcombine.low %v1050_v41, %v1054_v48 }
 0x374   :  { %7702 = vmatmul.mubr.bf16.vlgmr.msra.gmra.mrb[20].mxu0 %v9873_v62  ;;  %v8700_v20 = vcombine.low %v1059_v1, %v1063_v10 }
 0x375   :  { %8046 = vmatmul.mubr.bf16.vlgmr.msra.gmra.mrb[20].mxu1 %v9873_v62  ;;  %7713 = vmatpush1.bf16.msra.mxu0 %v8650_v33  ;;  %v8668_v62 = vcombine.low %v1027_v19, %v1031_v21  ;;  %v8701_v33 = vcombine.high %v1059_v1, %v1063_v10  ;;  %v1074_v21 = vld [vmem:[#allocation7 + $0xa10] sm:$0xff] }
 0x376   :  { %7744 = vmatprep.mubr.bf16.mxu0 %v9943_v47  ;;  %8057 = vmatpush1.bf16.msra.mxu1 %v8652_v31  ;;  %v1067_v31 = vld [vmem:[#allocation7 + $0x9d8] sm:$0xff]  ;;  %v1106_v10 = vld [vmem:[#allocation7 + $0xb10] sm:$0xff] }
 0x377   :  { %8088 = vmatprep.mubr.bf16.mxu1 %v9943_v47  ;;  %7714 = vmatprep.subr.bf16.mxu0 %v8659_v32  ;;  %v8674_v47 = vcombine.low %v1034_v46, %v1038_v14  ;;  %v1071_v32 = vld [vmem:[#allocation7 + $0x9f8] sm:$0xff] }
 0x378   :  { %8058 = vmatprep.subr.bf16.mxu1 %v8661_v42  ;;  %v8707_v42 = vcombine.high %v1066_v24, %v1070_v36  ;;  %v8709_v19 = vcombine.high %v1067_v31, %v1071_v32  ;;  %v8708_v46 = vcombine.low %v1067_v31, %v1071_v32  ;;  %v1114_v32 = vld [vmem:[#allocation7 + $0xb50] sm:$0xff] }
 0x379   :  { %7715 = vmatpush1.bf16.msra.mxu0 %v8658_v43  ;;  %v1078_v43 = vld [vmem:[#allocation7 + $0xa30] sm:$0xff] }
 0x37a   :  { %8059 = vmatpush1.bf16.msra.mxu1 %v8660_v44  ;;  %7716 = vmatprep.subr.bf16.mxu0 %v8667_v54  ;;  %v1075_v44 = vld [vmem:[#allocation7 + $0xa18] sm:$0xff]  ;;  %v8715_v14 = vcombine.high %v1074_v21, %v1078_v43 }
 0x37b   :  { %8060 = vmatprep.subr.bf16.mxu1 %v8669_v3  ;;  %v1079_v54 = vld [vmem:[#allocation7 + $0xa38] sm:$0xff]  ;;  %v8706_v3 = vcombine.low %v1066_v24, %v1070_v36 }
 0x37c   :  { %v8717_v63 = vcombine.high %v1075_v44, %v1079_v54  ;;  %v8716_v12 = vcombine.low %v1075_v44, %v1079_v54  ;;  %v1122_v54 = vld [vmem:[#allocation7 + $0xb90] sm:$0xff] }
 0x37d   :  { %7717 = vmatpush1.bf16.msra.mxu0 %v8666_v7  ;;  %v1086_v7 = vld [vmem:[#allocation7 + $0xa70] sm:$0xff] }
 0x37e   :  { %8061 = vmatpush1.bf16.msra.mxu1 %v8668_v62  ;;  %7718 = vmatprep.subr.bf16.mxu0 %v8675_v8  ;;  %v1083_v62 = vld [vmem:[#allocation7 + $0xa58] sm:$0xff]  ;;  %v8723_v37 = vcombine.high %v1082_v4, %v1086_v7 }
 0x37f   :  { %8062 = vmatprep.subr.bf16.mxu1 %v8677_v51  ;;  %v1087_v8 = vld [vmem:[#allocation7 + $0xa78] sm:$0xff]  ;;  %v8714_v51 = vcombine.low %v1074_v21, %v1078_v43 }
 0x380   :  { %v8725_v53 = vcombine.high %v1083_v62, %v1087_v8  ;;  %v8724_v41 = vcombine.low %v1083_v62, %v1087_v8  ;;  %v1130_v8 = vld [vmem:[#allocation7 + $0xbd0] sm:$0xff] }
 0x381   :  { %7719 = vmatpush1.bf16.msra.mxu0 %v8674_v47  ;;  %v1094_v47 = vld [vmem:[#allocation7 + $0xab0] sm:$0xff] }
 0x382   :  { %8063 = vmatpush1.bf16.msra.mxu1 %v8676_v38  ;;  %7720 = vmatprep.subr.bf16.mxu0 %v8683_v39  ;;  %v1091_v38 = vld [vmem:[#allocation7 + $0xa98] sm:$0xff]  ;;  %v8731_v48 = vcombine.high %v1090_v9, %v1094_v47 }
 0x383   :  { %8064 = vmatprep.subr.bf16.mxu1 %v8685_v18  ;;  %v1095_v39 = vld [vmem:[#allocation7 + $0xab8] sm:$0xff]  ;;  %v8722_v18 = vcombine.low %v1082_v4, %v1086_v7 }
 0x384   :  { %v8733_v49 = vcombine.high %v1091_v38, %v1095_v39  ;;  %v8732_v60 = vcombine.low %v1091_v38, %v1095_v39  ;;  %v1138_v39 = vld [vmem:[#allocation7 + $0xc10] sm:$0xff] }
 0x385   :  { %7721 = vmatpush1.bf16.msra.mxu0 %v8682_v55  ;;  %v1102_v55 = vld [vmem:[#allocation7 + $0xaf0] sm:$0xff] }
 0x386   :  { %8065 = vmatpush1.bf16.msra.mxu1 %v8684_v57  ;;  %7722 = vmatprep.subr.bf16.mxu0 %v8691_v56  ;;  %v1099_v57 = vld [vmem:[#allocation7 + $0xad8] sm:$0xff]  ;;  %v8739_v61 = vcombine.high %v1098_v52, %v1102_v55 }
 0x387   :  { %8066 = vmatprep.subr.bf16.mxu1 %v8693_v59  ;;  %v1103_v56 = vld [vmem:[#allocation7 + $0xaf8] sm:$0xff]  ;;  %v8730_v59 = vcombine.low %v1090_v9, %v1094_v47 }
 0x388   :  { %v8741_v1 = vcombine.high %v1099_v57, %v1103_v56  ;;  %v8740_v24 = vcombine.low %v1099_v57, %v1103_v56  ;;  %v1146_v56 = vld [vmem:[#allocation7 + $0xc50] sm:$0xff] }
 0x389   :  { %7723 = vmatpush1.bf16.msra.mxu0 %v8690_v11  ;;  %v1110_v11 = vld [vmem:[#allocation7 + $0xb30] sm:$0xff] }
 0x38a   :  { %8067 = vmatpush1.bf16.msra.mxu1 %v8692_v40  ;;  %7724 = vmatprep.subr.bf16.mxu0 %v8699_v30  ;;  %v1107_v40 = vld [vmem:[#allocation7 + $0xb18] sm:$0xff]  ;;  %v8747_v36 = vcombine.high %v1106_v10, %v1110_v11 }
 0x38b   :  { %8068 = vmatprep.subr.bf16.mxu1 %v8701_v33  ;;  %v1111_v30 = vld [vmem:[#allocation7 + $0xb38] sm:$0xff]  ;;  %v8738_v33 = vcombine.low %v1098_v52, %v1102_v55 }
 0x38c   :  { %v8749_v31 = vcombine.high %v1107_v40, %v1111_v30  ;;  %v8748_v21 = vcombine.low %v1107_v40, %v1111_v30  ;;  %v1154_v40 = vld [vmem:[#allocation7 + $0xc90] sm:$0xff] }
 0x38d   :  { %7725 = vmatpush1.bf16.msra.mxu0 %v8698_v2  ;;  %v1118_v2 = vld [vmem:[#allocation7 + $0xb70] sm:$0xff] }
 0x38e   :  { %8069 = vmatpush1.bf16.msra.mxu1 %v8700_v20  ;;  %7726 = vmatprep.subr.bf16.mxu0 %v8707_v42  ;;  %v1115_v20 = vld [vmem:[#allocation7 + $0xb58] sm:$0xff]  ;;  %v8755_v43 = vcombine.high %v1114_v32, %v1118_v2  ;;  %v1158_v30 = vld [vmem:[#allocation7 + $0xcb0] sm:$0xff] }
 0x38f   :  { %8070 = vmatprep.subr.bf16.mxu1 %v8709_v19  ;;  %v1119_v42 = vld [vmem:[#allocation7 + $0xb78] sm:$0xff]  ;;  %v8746_v19 = vcombine.low %v1106_v10, %v1110_v11 }
 0x390   :  { %v8757_v44 = vcombine.high %v1115_v20, %v1119_v42  ;;  %v8756_v4 = vcombine.low %v1115_v20, %v1119_v42  ;;  %v1162_v42 = vld [vmem:[#allocation7 + $0xcd0] sm:$0xff] }
 0x391   :  { %7727 = vmatpush1.bf16.msra.mxu0 %v8706_v3  ;;  %v1126_v3 = vld [vmem:[#allocation7 + $0xbb0] sm:$0xff] }
 0x392   :  { %8071 = vmatpush1.bf16.msra.mxu1 %v8708_v46  ;;  %7728 = vmatprep.subr.bf16.mxu0 %v8715_v14  ;;  %v1123_v46 = vld [vmem:[#allocation7 + $0xb98] sm:$0xff]  ;;  %v8763_v7 = vcombine.high %v1122_v54, %v1126_v3 }
 0x393   :  { %8072 = vmatprep.subr.bf16.mxu1 %v8717_v63  ;;  %v1127_v14 = vld [vmem:[#allocation7 + $0xbb8] sm:$0xff]  ;;  %v8754_v63 = vcombine.low %v1114_v32, %v1118_v2  ;;  %v8795_v2 = vcombine.high %v1154_v40, %v1158_v30 }
 0x394   :  { %v8765_v62 = vcombine.high %v1123_v46, %v1127_v14  ;;  %v8764_v9 = vcombine.low %v1123_v46, %v1127_v14  ;;  %v1170_v46 = vld [vmem:[#allocation7 + $0xd10] sm:$0xff] }
 0x395   :  { %7729 = vmatpush1.bf16.msra.mxu0 %v8714_v51  ;;  %v1134_v51 = vld [vmem:[#allocation7 + $0xbf0] sm:$0xff] }
 0x396   :  { %8073 = vmatpush1.bf16.msra.mxu1 %v8716_v12  ;;  %7730 = vmatprep.subr.bf16.mxu0 %v8723_v37  ;;  %v1131_v12 = vld [vmem:[#allocation7 + $0xbd8] sm:$0xff]  ;;  %v8771_v47 = vcombine.high %v1130_v8, %v1134_v51  ;;  %v1174_v14 = vld [vmem:[#allocation7 + $0xd30] sm:$0xff] }
 0x397   :  { %8074 = vmatprep.subr.bf16.mxu1 %v8725_v53  ;;  %v1135_v37 = vld [vmem:[#allocation7 + $0xbf8] sm:$0xff]  ;;  %v8762_v53 = vcombine.low %v1122_v54, %v1126_v3 }
 0x398   :  { %v8773_v38 = vcombine.high %v1131_v12, %v1135_v37  ;;  %v8772_v52 = vcombine.low %v1131_v12, %v1135_v37  ;;  %v1182_v12 = vld [vmem:[#allocation7 + $0xd70] sm:$0xff]  ;;  %v1179_v37 = vld [vmem:[#allocation7 + $0xd58] sm:$0xff] }
 0x399   :  { %7731 = vmatpush1.bf16.msra.mxu0 %v8722_v18  ;;  %v1142_v18 = vld [vmem:[#allocation7 + $0xc30] sm:$0xff] }
 0x39a   :  { %8075 = vmatpush1.bf16.msra.mxu1 %v8724_v41  ;;  %7732 = vmatprep.subr.bf16.mxu0 %v8731_v48  ;;  %v1139_v41 = vld [vmem:[#allocation7 + $0xc18] sm:$0xff]  ;;  %v8779_v55 = vcombine.high %v1138_v39, %v1142_v18 }
 0x39b   :  { %8076 = vmatprep.subr.bf16.mxu1 %v8733_v49  ;;  %v1143_v48 = vld [vmem:[#allocation7 + $0xc38] sm:$0xff]  ;;  %v8770_v49 = vcombine.low %v1130_v8, %v1134_v51  ;;  %v1178_v51 = vld [vmem:[#allocation7 + $0xd50] sm:$0xff] }
 0x39c   :  { %v8781_v57 = vcombine.high %v1139_v41, %v1143_v48  ;;  %v8780_v10 = vcombine.low %v1139_v41, %v1143_v48  ;;  %v1186_v41 = vld [vmem:[#allocation7 + $0xd90] sm:$0xff] }
 0x39d   :  { %7733 = vmatpush1.bf16.msra.mxu0 %v8730_v59  ;;  %v1150_v59 = vld [vmem:[#allocation7 + $0xc70] sm:$0xff] }
 0x39e   :  { %8077 = vmatpush1.bf16.msra.mxu1 %v8732_v60  ;;  %7734 = vmatprep.subr.bf16.mxu0 %v8739_v61  ;;  %v8778_v60 = vcombine.low %v1138_v39, %v1142_v18  ;;  %v1147_v61 = vld [vmem:[#allocation7 + $0xc58] sm:$0xff]  ;;  %v8787_v11 = vcombine.high %v1146_v56, %v1150_v59  ;;  %v8819_v39 = vcombine.high %v1178_v51, %v1182_v12  ;;  %v1190_v48 = vld [vmem:[#allocation7 + $0xdb0] sm:$0xff] }
 0x39f   :  { %8078 = vmatprep.subr.bf16.mxu1 %v8741_v1  ;;  %v1151_v1 = vld [vmem:[#allocation7 + $0xc78] sm:$0xff] }
 0x3a0   :  { %v8788_v32 = vcombine.low %v1147_v61, %v1151_v1 }
 0x3a1   :  { %7735 = vmatpush1.bf16.msra.mxu0 %v8738_v33  ;;  %v8789_v33 = vcombine.high %v1147_v61, %v1151_v1  ;;  %v8827_v1 = vcombine.high %v1186_v41, %v1190_v48 }
 0x3a2   :  { %8079 = vmatpush1.bf16.msra.mxu1 %v8740_v24  ;;  %7736 = vmatprep.subr.bf16.mxu0 %v8747_v36  ;;  %v1155_v24 = vld [vmem:[#allocation7 + $0xc98] sm:$0xff] }
 0x3a3   :  { %8080 = vmatprep.subr.bf16.mxu1 %v8749_v31  ;;  %v1159_v36 = vld [vmem:[#allocation7 + $0xcb8] sm:$0xff]  ;;  %v8786_v31 = vcombine.low %v1146_v56, %v1150_v59  ;;  %v8818_v59 = vcombine.low %v1178_v51, %v1182_v12 }
 0x3a4   :  { %v8797_v20 = vcombine.high %v1155_v24, %v1159_v36 }
 0x3a5   :  { %7737 = vmatpush1.bf16.msra.mxu0 %v8746_v19  ;;  %v1166_v19 = vld [vmem:[#allocation7 + $0xcf0] sm:$0xff] }
 0x3a6   :  { %8081 = vmatpush1.bf16.msra.mxu1 %v8748_v21  ;;  %7738 = vmatprep.subr.bf16.mxu0 %v8755_v43  ;;  %v1163_v21 = vld [vmem:[#allocation7 + $0xcd8] sm:$0xff]  ;;  %v8803_v54 = vcombine.high %v1162_v42, %v1166_v19 }
 0x3a7   :  { %8082 = vmatprep.subr.bf16.mxu1 %v8757_v44  ;;  %v1167_v43 = vld [vmem:[#allocation7 + $0xcf8] sm:$0xff]  ;;  %v8794_v44 = vcombine.low %v1154_v40, %v1158_v30  ;;  %v1194_v40 = vld [vmem:[#allocation7 + $0xdd0] sm:$0xff] }
 0x3a8   :  { %v8805_v3 = vcombine.high %v1163_v21, %v1167_v43  ;;  %v1198_v30 = vld [vmem:[#allocation7 + $0xdf0] sm:$0xff] }
 0x3a9   :  { %7739 = vmatpush1.bf16.msra.mxu0 %v8754_v63  ;;  %v1171_v63 = vld [vmem:[#allocation7 + $0xd18] sm:$0xff] }
 0x3aa   :  { %8083 = vmatpush1.bf16.msra.mxu1 %v8756_v4  ;;  %7740 = vmatprep.subr.bf16.mxu0 %v8763_v7  ;;  %v1175_v4 = vld [vmem:[#allocation7 + $0xd38] sm:$0xff]  ;;  %v8804_v7 = vcombine.low %v1163_v21, %v1167_v43 }
 0x3ab   :  { %8084 = vmatprep.subr.bf16.mxu1 %v8765_v62  ;;  %v8811_v62 = vcombine.high %v1170_v46, %v1174_v14  ;;  %v8813_v8 = vcombine.high %v1171_v63, %v1175_v4 }
 0x3ad   :  { %7741 = vmatpush1.bf16.msra.mxu0 %v8762_v53  ;;  %v1183_v53 = vld [vmem:[#allocation7 + $0xd78] sm:$0xff] }
 0x3ae   :  { %8085 = vmatpush1.bf16.msra.mxu1 %v8764_v9  ;;  %7742 = vmatprep.subr.bf16.mxu0 %v8771_v47  ;;  %v8810_v9 = vcombine.low %v1170_v46, %v1174_v14  ;;  %v1776_v47 = vld [vmem:[#allocation8] sm:$0xff]  ;;  %v8821_v18 = vcombine.high %v1179_v37, %v1183_v53  ;;  %v8820_v61 = vcombine.low %v1179_v37, %v1183_v53  ;;  %v1202_v14 = vld [vmem:[#allocation7 + $0xe10] sm:$0xff] }
 0x3af   :  { %8086 = vmatprep.subr.bf16.mxu1 %v8773_v38  ;;  %v8812_v38 = vcombine.low %v1171_v63, %v1175_v4  ;;  %v1785_v56 = vrot.slane %v1776_v47, %v9823_v15  ;;  %v1206_v63 = vld [vmem:[#allocation7 + $0xe30] sm:$0xff] }
 0x3b0   :  { %v8843_v51 = vcombine.high %v1202_v14, %v1206_v63  ;;  %v1210_v37 = vld [vmem:[#allocation7 + $0xe50] sm:$0xff] }
 0x3b1   :  { %7743 = vmatpush1.bf16.msra.mxu0 %v8770_v49  ;;  %v1781_v49 = vrot.slane %v1776_v47, %v9818_v13  ;;  %v1214_v53 = vld [vmem:[#allocation7 + $0xe70] sm:$0xff] }
 0x3b2   :  { %8087 = vmatpush1.bf16.msra.mxu1 %v8772_v52  ;;  %7755 = vmatprep.subr.bf16.mxu0 %v8779_v55  ;;  %v1187_v52 = vld [vmem:[#allocation7 + $0xd98] sm:$0xff] }
 0x3b3   :  { %8099 = vmatprep.subr.bf16.mxu1 %v8781_v57  ;;  %v1191_v55 = vld [vmem:[#allocation7 + $0xdb8] sm:$0xff]  ;;  %v1789_v57 = vrot.slane %v1776_v47, %v9826_v16 }
 0x3b4   :  { %7745 = vmatmul.mubr.bf16.vlgmr.msra.gmra.mrb[20].mxu0 %v9937_v45 }
 0x3b5   :  { %8089 = vmatmul.mubr.bf16.vlgmr.msra.gmra.mrb[20].mxu1 %v9937_v45  ;;  %7756 = vmatpush1.bf16.msra.mxu0 %v8778_v60  ;;  %v8796_v45 = vcombine.low %v1155_v24, %v1159_v36  ;;  %v1793_v60 = vrot.slane %v1776_v47, %v9829_v17  ;;  %v1195_v36 = vld [vmem:[#allocation7 + $0xdd8] sm:$0xff]  ;;  %v8828_v17 = vcombine.low %v1187_v52, %v1191_v55 }
 0x3b6   :  { %7787 = vmatprep.mubr.bf16.mxu0 %v9965_v28  ;;  %8100 = vmatpush1.bf16.msra.mxu1 %v8780_v10  ;;  %v1215_v47 = vld [vmem:[#allocation7 + $0xe78] sm:$0xff] }
 0x3b7   :  { %8131 = vmatprep.mubr.bf16.mxu1 %v9965_v28  ;;  %7757 = vmatprep.subr.bf16.mxu0 %v8787_v11  ;;  %v8802_v28 = vcombine.low %v1162_v42, %v1166_v19  ;;  %v8829_v11 = vcombine.high %v1187_v52, %v1191_v55  ;;  %v1219_v52 = vld [vmem:[#allocation7 + $0xe98] sm:$0xff] }
 0x3b8   :  { %8101 = vmatprep.subr.bf16.mxu1 %v8789_v33  ;;  %v1223_v55 = vld [vmem:[#allocation7 + $0xeb8] sm:$0xff] }
 0x3b9   :  { %7758 = vmatpush1.bf16.msra.mxu0 %v8786_v31  ;;  %v1199_v31 = vld [vmem:[#allocation7 + $0xdf8] sm:$0xff] }
 0x3ba   :  { %8102 = vmatpush1.bf16.msra.mxu1 %v8788_v32  ;;  %7759 = vmatprep.subr.bf16.mxu0 %v8795_v2  ;;  %v8837_v46 = vcombine.high %v1195_v36, %v1199_v31 }
 0x3bb   :  { %8103 = vmatprep.subr.bf16.mxu1 %v8797_v20  ;;  %v8826_v20 = vcombine.low %v1186_v41, %v1190_v48  ;;  %v1218_v48 = vld [vmem:[#allocation7 + $0xe90] sm:$0xff] }
 0x3bd   :  { %7760 = vmatpush1.bf16.msra.mxu0 %v8794_v44  ;;  %v8835_v44 = vcombine.high %v1194_v40, %v1198_v30 }
 0x3be   :  { %8104 = vmatpush1.bf16.msra.mxu1 %v8796_v45  ;;  %7761 = vmatprep.subr.bf16.mxu0 %v8803_v54 }
 0x3bf   :  { %8105 = vmatprep.subr.bf16.mxu1 %v8805_v3 }
 0x3c1   :  { %7762 = vmatpush1.bf16.msra.mxu0 %v8802_v28  ;;  %v1203_v28 = vld [vmem:[#allocation7 + $0xe18] sm:$0xff] }
 0x3c2   :  { %8106 = vmatpush1.bf16.msra.mxu1 %v8804_v7  ;;  %7763 = vmatprep.subr.bf16.mxu0 %v8811_v62  ;;  %v1207_v7 = vld [vmem:[#allocation7 + $0xe38] sm:$0xff]  ;;  %v8834_v62 = vcombine.low %v1194_v40, %v1198_v30  ;;  %v8860_v30 = vcombine.low %v1219_v52, %v1223_v55 }
 0x3c3   :  { %8107 = vmatprep.subr.bf16.mxu1 %v8813_v8  ;;  %v8836_v8 = vcombine.low %v1195_v36, %v1199_v31  ;;  %v8845_v12 = vcombine.high %v1203_v28, %v1207_v7  ;;  %v1238_v36 = vld [vmem:[#allocation7 + $0xf30] sm:$0xff]  ;;  %v1235_v31 = vld [vmem:[#allocation7 + $0xf18] sm:$0xff] }
 0x3c5   :  { %7764 = vmatpush1.bf16.msra.mxu0 %v8810_v9  ;;  %v1211_v9 = vld [vmem:[#allocation7 + $0xe58] sm:$0xff] }
 0x3c6   :  { %8108 = vmatpush1.bf16.msra.mxu1 %v8812_v38  ;;  %7765 = vmatprep.subr.bf16.mxu0 %v8819_v39  ;;  %v8842_v38 = vcombine.low %v1202_v14, %v1206_v63  ;;  %v8844_v39 = vcombine.low %v1203_v28, %v1207_v7  ;;  %v8853_v41 = vcombine.high %v1211_v9, %v1215_v47  ;;  %v1251_v14 = vld [vmem:[#allocation7 + $0xf98] sm:$0xff] }
 0x3c7   :  { %v7273_v10 = vpop.f32.mrb[16].mxu0  ;;  %8109 = vmatprep.subr.bf16.mxu1 %v8821_v18  ;;  %v8851_v18 = vcombine.high %v1210_v37, %v1214_v53  ;;  %v1255_v63 = vld [vmem:[#allocation7 + $0xfb8] sm:$0xff] }
 0x3c8   :  { %v9414_v13 = vadd.f32 %v7273_v10, %v1781_v49  ;;  %v7617_v33 = vpop.f32.mrb[16].mxu1  ;;  %v7275_v24 = vpop.f32.mrb[17].mxu0  ;;  %v1227_v10 = vld [vmem:[#allocation7 + $0xed8] sm:$0xff] }
 0x3c9   :  { %v9418_v16 = vadd.f32 %v7617_v33, %v1789_v57  ;;  %v9415_v32 = vadd.f32 %v7275_v24, %v1785_v56  ;;  %v7619_v15 = vpop.f32.mrb[17].mxu1  ;;  %v7277_v2 = vpop.f32.mrb[18].mxu0  ;;  %7766 = vmatpush1.bf16.msra.mxu0 %v8818_v59  ;;  %v1234_v24 = vld [vmem:[#allocation7 + $0xf10] sm:$0xff] }
 0x3ca   :  { %8314 = vst [vmem:[#allocation10] sm:$0xff] %v9414_v13  ;;  %v9419_v42 = vadd.f32 %v7619_v15, %v1793_v60  ;;  %v9416_v19 = vadd.f32 %v7277_v2, %v1781_v49  ;;  %v7621_v21 = vpop.f32.mrb[18].mxu1  ;;  %8110 = vmatpush1.bf16.msra.mxu1 %v8820_v61  ;;  %v7279_v43 = vpop.f32.mrb[19].mxu0  ;;  %7767 = vmatprep.subr.bf16.mxu0 %v8827_v1  ;;  %v1222_v49 = vld [vmem:[#allocation7 + $0xeb0] sm:$0xff] }
 0x3cb   :  { %8316 = vst [vmem:[#allocation10 + $0x10] sm:$0xff] %v9418_v16  ;;  %8315 = vst [vmem:[#allocation10 + $0x8] sm:$0xff] %v9415_v32  ;;  %v9420_v45 = vadd.f32 %v7621_v21, %v1789_v57  ;;  %v9417_v54 = vadd.f32 %v7279_v43, %v1785_v56  ;;  %v7623_v3 = vpop.f32.mrb[19].mxu1  ;;  %8111 = vmatprep.subr.bf16.mxu1 %v8829_v11  ;;  %v8850_v57 = vcombine.low %v1210_v37, %v1214_v53  ;;  %v1226_v61 = vld [vmem:[#allocation7 + $0xed0] sm:$0xff]  ;;  %v1231_v11 = vld [vmem:[#allocation7 + $0xef8] sm:$0xff] }
 0x3cc   :  { %8317 = vst [vmem:[#allocation10 + $0x18] sm:$0xff] %v9419_v42  ;;  %8322 = vst [vmem:[#allocation10 + $0x40] sm:$0xff] %v9416_v19  ;;  %v9421_v4 = vadd.f32 %v7623_v3, %v1793_v60  ;;  %v8852_v56 = vcombine.low %v1211_v9, %v1215_v47  ;;  %v8859_v59 = vcombine.high %v1218_v48, %v1222_v49  ;;  %v1230_v1 = vld [vmem:[#allocation7 + $0xef0] sm:$0xff]  ;;  %v1239_v16 = vld [vmem:[#allocation7 + $0xf38] sm:$0xff] }
 0x3cd   :  { %8324 = vst [vmem:[#allocation10 + $0x50] sm:$0xff] %v9420_v45  ;;  %8323 = vst [vmem:[#allocation10 + $0x48] sm:$0xff] %v9417_v54  ;;  %7768 = vmatpush1.bf16.msra.mxu0 %v8826_v20  ;;  %v8861_v60 = vcombine.high %v1219_v52, %v1223_v55  ;;  %v8858_v40 = vcombine.low %v1218_v48, %v1222_v49  ;;  %v8867_v13 = vcombine.high %v1226_v61, %v1230_v1  ;;  %v1246_v42 = vld [vmem:[#allocation7 + $0xf70] sm:$0xff]  ;;  %v1243_v19 = vld [vmem:[#allocation7 + $0xf58] sm:$0xff] }
 0x3ce   :  { %8325 = vst [vmem:[#allocation10 + $0x58] sm:$0xff] %v9421_v4  ;;  %8112 = vmatpush1.bf16.msra.mxu1 %v8828_v17  ;;  %7769 = vmatprep.subr.bf16.mxu0 %v8835_v44  ;;  %v8869_v33 = vcombine.high %v1227_v10, %v1231_v11  ;;  %v8866_v32 = vcombine.low %v1226_v61, %v1230_v1  ;;  %v1242_v17 = vld [vmem:[#allocation7 + $0xf50] sm:$0xff]  ;;  %v1247_v21 = vld [vmem:[#allocation7 + $0xf78] sm:$0xff] }
 0x3cf   :  { %8113 = vmatprep.subr.bf16.mxu1 %v8837_v46  ;;  %v8868_v15 = vcombine.low %v1227_v10, %v1231_v11  ;;  %v8875_v2 = vcombine.high %v1234_v24, %v1238_v36  ;;  %v8877_v20 = vcombine.high %v1235_v31, %v1239_v16  ;;  %v8874_v43 = vcombine.low %v1234_v24, %v1238_v36  ;;  %v1250_v3 = vld [vmem:[#allocation7 + $0xf90] sm:$0xff]  ;;  %v1263_v37 = vld [vmem:[#allocation7 + $0xff8] sm:$0xff] }
 0x3d0   :  { %v8876_v44 = vcombine.low %v1235_v31, %v1239_v16  ;;  %v8883_v45 = vcombine.high %v1242_v17, %v1246_v42  ;;  %v8885_v54 = vcombine.high %v1243_v19, %v1247_v21  ;;  %v1254_v46 = vld [vmem:[#allocation7 + $0xfb0] sm:$0xff]  ;;  %v8882_v4 = vcombine.low %v1242_v17, %v1246_v42  ;;  %v1271_v48 = vld [vmem:[#allocation7 + $0x1038] sm:$0xff] }
 0x3d1   :  { %7770 = vmatpush1.bf16.msra.mxu0 %v8834_v62  ;;  %v8884_v28 = vcombine.low %v1243_v19, %v1247_v21  ;;  %v8891_v7 = vcombine.high %v1250_v3, %v1254_v46  ;;  %v8893_v62 = vcombine.high %v1251_v14, %v1255_v63  ;;  %v8890_v53 = vcombine.low %v1250_v3, %v1254_v46  ;;  %v1275_v61 = vld [vmem:[#allocation7 + $0x1058] sm:$0xff] }
 0x3d2   :  { %8114 = vmatpush1.bf16.msra.mxu1 %v8836_v8  ;;  %7771 = vmatprep.subr.bf16.mxu0 %v8843_v51  ;;  %v1258_v8 = vld [vmem:[#allocation7 + $0xfd0] sm:$0xff]  ;;  %v8892_v9 = vcombine.low %v1251_v14, %v1255_v63  ;;  %v1279_v1 = vld [vmem:[#allocation7 + $0x1078] sm:$0xff] }
 0x3d3   :  { %8115 = vmatprep.subr.bf16.mxu1 %v8845_v12  ;;  %v1262_v51 = vld [vmem:[#allocation7 + $0xff0] sm:$0xff]  ;;  %v1259_v12 = vld [vmem:[#allocation7 + $0xfd8] sm:$0xff]  ;;  %v8916_v31 = vcombine.low %v1275_v61, %v1279_v1 }
 0x3d4   :  { %v8899_v47 = vcombine.high %v1258_v8, %v1262_v51  ;;  %v8898_v49 = vcombine.low %v1258_v8, %v1262_v51  ;;  %v8900_v52 = vcombine.low %v1259_v12, %v1263_v37  ;;  %v1287_v24 = vld [vmem:[#allocation7 + $0x10b8] sm:$0xff]  ;;  %v1306_v63 = vld [vmem:[#allocation7 + $0x1150] sm:$0xff] }
 0x3d5   :  { %7772 = vmatpush1.bf16.msra.mxu0 %v8842_v38  ;;  %v8901_v38 = vcombine.high %v1259_v12, %v1263_v37  ;;  %v1295_v17 = vld [vmem:[#allocation7 + $0x10f8] sm:$0xff]  ;;  %v1314_v37 = vld [vmem:[#allocation7 + $0x1190] sm:$0xff] }
 0x3d6   :  { %8116 = vmatpush1.bf16.msra.mxu1 %v8844_v39  ;;  %7773 = vmatprep.subr.bf16.mxu0 %v8851_v18  ;;  %v1266_v39 = vld [vmem:[#allocation7 + $0x1010] sm:$0xff] }
 0x3d7   :  { %8117 = vmatprep.subr.bf16.mxu1 %v8853_v41  ;;  %v1270_v18 = vld [vmem:[#allocation7 + $0x1030] sm:$0xff]  ;;  %v1267_v41 = vld [vmem:[#allocation7 + $0x1018] sm:$0xff] }
 0x3d8   :  { %v8907_v55 = vcombine.high %v1266_v39, %v1270_v18  ;;  %v8908_v10 = vcombine.low %v1267_v41, %v1271_v48 }
 0x3d9   :  { %7774 = vmatpush1.bf16.msra.mxu0 %v8850_v57  ;;  %v8909_v57 = vcombine.high %v1267_v41, %v1271_v48  ;;  %v1322_v48 = vld [vmem:[#allocation7 + $0x11d0] sm:$0xff] }
 0x3da   :  { %8118 = vmatpush1.bf16.msra.mxu1 %v8852_v56  ;;  %7775 = vmatprep.subr.bf16.mxu0 %v8859_v59  ;;  %v1274_v56 = vld [vmem:[#allocation7 + $0x1050] sm:$0xff] }
 0x3db   :  { %8119 = vmatprep.subr.bf16.mxu1 %v8861_v60  ;;  %v1278_v59 = vld [vmem:[#allocation7 + $0x1070] sm:$0xff]  ;;  %v8906_v60 = vcombine.low %v1266_v39, %v1270_v18 }
 0x3dc   :  { %v8915_v11 = vcombine.high %v1274_v56, %v1278_v59  ;;  %v8914_v36 = vcombine.low %v1274_v56, %v1278_v59 }
 0x3dd   :  { %7776 = vmatpush1.bf16.msra.mxu0 %v8858_v40  ;;  %v1282_v40 = vld [vmem:[#allocation7 + $0x1090] sm:$0xff] }
 0x3de   :  { %8120 = vmatpush1.bf16.msra.mxu1 %v8860_v30  ;;  %7777 = vmatprep.subr.bf16.mxu0 %v8867_v13  ;;  %v1286_v30 = vld [vmem:[#allocation7 + $0x10b0] sm:$0xff]  ;;  %v8917_v13 = vcombine.high %v1275_v61, %v1279_v1 }
 0x3df   :  { %8121 = vmatprep.subr.bf16.mxu1 %v8869_v33  ;;  %v1283_v33 = vld [vmem:[#allocation7 + $0x1098] sm:$0xff]  ;;  %v8923_v16 = vcombine.high %v1282_v40, %v1286_v30  ;;  %v8922_v42 = vcombine.low %v1282_v40, %v1286_v30  ;;  %v1330_v61 = vld [vmem:[#allocation7 + $0x1210] sm:$0xff] }
 0x3e0   :  { %v1334_v1 = vld [vmem:[#allocation7 + $0x1230] sm:$0xff] }
 0x3e1   :  { %7778 = vmatpush1.bf16.msra.mxu0 %v8866_v32  ;;  %v8925_v32 = vcombine.high %v1283_v33, %v1287_v24 }
 0x3e2   :  { %8122 = vmatpush1.bf16.msra.mxu1 %v8868_v15  ;;  %7779 = vmatprep.subr.bf16.mxu0 %v8875_v2  ;;  %v1290_v15 = vld [vmem:[#allocation7 + $0x10d0] sm:$0xff] }
 0x3e3   :  { %8123 = vmatprep.subr.bf16.mxu1 %v8877_v20  ;;  %v1294_v2 = vld [vmem:[#allocation7 + $0x10f0] sm:$0xff]  ;;  %v1291_v20 = vld [vmem:[#allocation7 + $0x10d8] sm:$0xff] }
 0x3e4   :  { %v8931_v19 = vcombine.high %v1290_v15, %v1294_v2  ;;  %v8933_v21 = vcombine.high %v1291_v20, %v1295_v17  ;;  %v8932_v3 = vcombine.low %v1291_v20, %v1295_v17  ;;  %v1346_v17 = vld [vmem:[#allocation7 + $0x1290] sm:$0xff] }
 0x3e5   :  { %7780 = vmatpush1.bf16.msra.mxu0 %v8874_v43  ;;  %v1298_v43 = vld [vmem:[#allocation7 + $0x1110] sm:$0xff] }
 0x3e6   :  { %8124 = vmatpush1.bf16.msra.mxu1 %v8876_v44  ;;  %7781 = vmatprep.subr.bf16.mxu0 %v8883_v45  ;;  %v1302_v44 = vld [vmem:[#allocation7 + $0x1130] sm:$0xff]  ;;  %v1299_v45 = vld [vmem:[#allocation7 + $0x1118] sm:$0xff] }
 0x3e7   :  { %8125 = vmatprep.subr.bf16.mxu1 %v8885_v54  ;;  %v1303_v54 = vld [vmem:[#allocation7 + $0x1138] sm:$0xff]  ;;  %v8939_v46 = vcombine.high %v1298_v43, %v1302_v44 }
 0x3e8   :  { %v8941_v14 = vcombine.high %v1299_v45, %v1303_v54  ;;  %v8940_v8 = vcombine.low %v1299_v45, %v1303_v54  ;;  %v1354_v54 = vld [vmem:[#allocation7 + $0x12d0] sm:$0xff] }
 0x3e9   :  { %7782 = vmatpush1.bf16.msra.mxu0 %v8882_v4  ;;  %v1310_v4 = vld [vmem:[#allocation7 + $0x1170] sm:$0xff] }
 0x3ea   :  { %8126 = vmatpush1.bf16.msra.mxu1 %v8884_v28  ;;  %7783 = vmatprep.subr.bf16.mxu0 %v8891_v7  ;;  %v1307_v28 = vld [vmem:[#allocation7 + $0x1158] sm:$0xff]  ;;  %v8947_v51 = vcombine.high %v1306_v63, %v1310_v4 }
 0x3eb   :  { %8127 = vmatprep.subr.bf16.mxu1 %v8893_v62  ;;  %v1311_v7 = vld [vmem:[#allocation7 + $0x1178] sm:$0xff]  ;;  %v8938_v62 = vcombine.low %v1298_v43, %v1302_v44 }
 0x3ec   :  { %v8949_v12 = vcombine.high %v1307_v28, %v1311_v7  ;;  %v8948_v39 = vcombine.low %v1307_v28, %v1311_v7  ;;  %v1362_v7 = vld [vmem:[#allocation7 + $0x1310] sm:$0xff] }
 0x3ed   :  { %7784 = vmatpush1.bf16.msra.mxu0 %v8890_v53  ;;  %v1318_v53 = vld [vmem:[#allocation7 + $0x11b0] sm:$0xff] }
 0x3ee   :  { %8128 = vmatpush1.bf16.msra.mxu1 %v8892_v9  ;;  %7785 = vmatprep.subr.bf16.mxu0 %v8899_v47  ;;  %v1315_v9 = vld [vmem:[#allocation7 + $0x1198] sm:$0xff]  ;;  %v8955_v18 = vcombine.high %v1314_v37, %v1318_v53 }
 0x3ef   :  { %8129 = vmatprep.subr.bf16.mxu1 %v8901_v38  ;;  %v1319_v47 = vld [vmem:[#allocation7 + $0x11b8] sm:$0xff]  ;;  %v8946_v38 = vcombine.low %v1306_v63, %v1310_v4 }
 0x3f0   :  { %v8957_v41 = vcombine.high %v1315_v9, %v1319_v47  ;;  %v8956_v56 = vcombine.low %v1315_v9, %v1319_v47  ;;  %v1370_v47 = vld [vmem:[#allocation7 + $0x1350] sm:$0xff] }
 0x3f1   :  { %7786 = vmatpush1.bf16.msra.mxu0 %v8898_v49  ;;  %v1326_v49 = vld [vmem:[#allocation7 + $0x11f0] sm:$0xff] }
 0x3f2   :  { %8130 = vmatpush1.bf16.msra.mxu1 %v8900_v52  ;;  %7798 = vmatprep.subr.bf16.mxu0 %v8907_v55  ;;  %v1323_v52 = vld [vmem:[#allocation7 + $0x11d8] sm:$0xff]  ;;  %v8963_v59 = vcombine.high %v1322_v48, %v1326_v49  ;;  %v8962_v40 = vcombine.low %v1322_v48, %v1326_v49 }
 0x3f3   :  { %8142 = vmatprep.subr.bf16.mxu1 %v8909_v57  ;;  %v1327_v55 = vld [vmem:[#allocation7 + $0x11f8] sm:$0xff]  ;;  %v8954_v57 = vcombine.low %v1314_v37, %v1318_v53 }
 0x3f4   :  { %7788 = vmatmul.mubr.bf16.vlgmr.msra.gmra.mrb[20].mxu0 %v9963_v27  ;;  %v8964_v30 = vcombine.low %v1323_v52, %v1327_v55 }
 0x3f5   :  { %8132 = vmatmul.mubr.bf16.vlgmr.msra.gmra.mrb[20].mxu1 %v9963_v27  ;;  %7799 = vmatpush1.bf16.msra.mxu0 %v8906_v60  ;;  %v8924_v27 = vcombine.low %v1283_v33, %v1287_v24  ;;  %v8965_v60 = vcombine.high %v1323_v52, %v1327_v55  ;;  %v1338_v24 = vld [vmem:[#allocation7 + $0x1250] sm:$0xff] }
 0x3f6   :  { %7830 = vmatprep.mubr.bf16.mxu0 %v9998_v26  ;;  %8143 = vmatpush1.bf16.msra.mxu1 %v8908_v10  ;;  %v1331_v10 = vld [vmem:[#allocation7 + $0x1218] sm:$0xff]  ;;  %v1378_v55 = vld [vmem:[#allocation7 + $0x1390] sm:$0xff] }
 0x3f7   :  { %8174 = vmatprep.mubr.bf16.mxu1 %v9998_v26  ;;  %7800 = vmatprep.subr.bf16.mxu0 %v8915_v11  ;;  %v8930_v26 = vcombine.low %v1290_v15, %v1294_v2  ;;  %v1335_v11 = vld [vmem:[#allocation7 + $0x1238] sm:$0xff] }
 0x3f8   :  { %8144 = vmatprep.subr.bf16.mxu1 %v8917_v13  ;;  %v8971_v13 = vcombine.high %v1330_v61, %v1334_v1  ;;  %v8973_v33 = vcombine.high %v1331_v10, %v1335_v11  ;;  %v8972_v15 = vcombine.low %v1331_v10, %v1335_v11  ;;  %v1386_v11 = vld [vmem:[#allocation7 + $0x13d0] sm:$0xff] }
 0x3f9   :  { %7801 = vmatpush1.bf16.msra.mxu0 %v8914_v36  ;;  %v1342_v36 = vld [vmem:[#allocation7 + $0x1270] sm:$0xff] }
 0x3fa   :  { %8145 = vmatpush1.bf16.msra.mxu1 %v8916_v31  ;;  %7802 = vmatprep.subr.bf16.mxu0 %v8923_v16  ;;  %v1339_v31 = vld [vmem:[#allocation7 + $0x1258] sm:$0xff]  ;;  %v8979_v2 = vcombine.high %v1338_v24, %v1342_v36 }
 0x3fb   :  { %8146 = vmatprep.subr.bf16.mxu1 %v8925_v32  ;;  %v1343_v16 = vld [vmem:[#allocation7 + $0x1278] sm:$0xff]  ;;  %v8970_v32 = vcombine.low %v1330_v61, %v1334_v1 }
 0x3fc   :  { %v8981_v20 = vcombine.high %v1339_v31, %v1343_v16  ;;  %v8980_v43 = vcombine.low %v1339_v31, %v1343_v16  ;;  %v1394_v16 = vld [vmem:[#allocation7 + $0x1410] sm:$0xff] }
 0x3fd   :  { %7803 = vmatpush1.bf16.msra.mxu0 %v8922_v42  ;;  %v1350_v42 = vld [vmem:[#allocation7 + $0x12b0] sm:$0xff] }
 0x3fe   :  { %8147 = vmatpush1.bf16.msra.mxu1 %v8924_v27  ;;  %7804 = vmatprep.subr.bf16.mxu0 %v8931_v19  ;;  %v1347_v27 = vld [vmem:[#allocation7 + $0x1298] sm:$0xff]  ;;  %v8987_v44 = vcombine.high %v1346_v17, %v1350_v42 }
 0x3ff   :  { %8148 = vmatprep.subr.bf16.mxu1 %v8933_v21  ;;  %v1351_v19 = vld [vmem:[#allocation7 + $0x12b8] sm:$0xff]  ;;  %v8978_v21 = vcombine.low %v1338_v24, %v1342_v36 }
 0x400   :  { %v8989_v45 = vcombine.high %v1347_v27, %v1351_v19  ;;  %v8988_v63 = vcombine.low %v1347_v27, %v1351_v19  ;;  %v1402_v19 = vld [vmem:[#allocation7 + $0x1450] sm:$0xff] }
 0x401   :  { %7805 = vmatpush1.bf16.msra.mxu0 %v8930_v26  ;;  %v1358_v26 = vld [vmem:[#allocation7 + $0x12f0] sm:$0xff] }
 0x402   :  { %8149 = vmatpush1.bf16.msra.mxu1 %v8932_v3  ;;  %7806 = vmatprep.subr.bf16.mxu0 %v8939_v46  ;;  %v1355_v3 = vld [vmem:[#allocation7 + $0x12d8] sm:$0xff]  ;;  %v8995_v4 = vcombine.high %v1354_v54, %v1358_v26 }
 0x403   :  { %8150 = vmatprep.subr.bf16.mxu1 %v8941_v14  ;;  %v1359_v46 = vld [vmem:[#allocation7 + $0x12f8] sm:$0xff]  ;;  %v8986_v14 = vcombine.low %v1346_v17, %v1350_v42 }
 0x404   :  { %v8997_v28 = vcombine.high %v1355_v3, %v1359_v46  ;;  %v8996_v37 = vcombine.low %v1355_v3, %v1359_v46  ;;  %v1410_v3 = vld [vmem:[#allocation7 + $0x1490] sm:$0xff] }
 0x405   :  { %7807 = vmatpush1.bf16.msra.mxu0 %v8938_v62  ;;  %v1366_v62 = vld [vmem:[#allocation7 + $0x1330] sm:$0xff] }
 0x406   :  { %8151 = vmatpush1.bf16.msra.mxu1 %v8940_v8  ;;  %7808 = vmatprep.subr.bf16.mxu0 %v8947_v51  ;;  %v1363_v8 = vld [vmem:[#allocation7 + $0x1318] sm:$0xff]  ;;  %v9003_v53 = vcombine.high %v1362_v7, %v1366_v62  ;;  %v1414_v46 = vld [vmem:[#allocation7 + $0x14b0] sm:$0xff] }
 0x407   :  { %8152 = vmatprep.subr.bf16.mxu1 %v8949_v12  ;;  %v1367_v51 = vld [vmem:[#allocation7 + $0x1338] sm:$0xff]  ;;  %v8994_v12 = vcombine.low %v1354_v54, %v1358_v26 }
 0x408   :  { %v9005_v9 = vcombine.high %v1363_v8, %v1367_v51  ;;  %v9004_v48 = vcombine.low %v1363_v8, %v1367_v51  ;;  %v1418_v51 = vld [vmem:[#allocation7 + $0x14d0] sm:$0xff] }
 0x409   :  { %7809 = vmatpush1.bf16.msra.mxu0 %v8946_v38  ;;  %v1374_v38 = vld [vmem:[#allocation7 + $0x1370] sm:$0xff] }
 0x40a   :  { %8153 = vmatpush1.bf16.msra.mxu1 %v8948_v39  ;;  %7810 = vmatprep.subr.bf16.mxu0 %v8955_v18  ;;  %v1371_v39 = vld [vmem:[#allocation7 + $0x1358] sm:$0xff]  ;;  %v9011_v49 = vcombine.high %v1370_v47, %v1374_v38 }
 0x40b   :  { %8154 = vmatprep.subr.bf16.mxu1 %v8957_v41  ;;  %v1375_v18 = vld [vmem:[#allocation7 + $0x1378] sm:$0xff]  ;;  %v9002_v41 = vcombine.low %v1362_v7, %v1366_v62  ;;  %v9051_v62 = vcombine.high %v1410_v3, %v1414_v46 }
 0x40c   :  { %v9013_v52 = vcombine.high %v1371_v39, %v1375_v18  ;;  %v9012_v61 = vcombine.low %v1371_v39, %v1375_v18  ;;  %v1426_v39 = vld [vmem:[#allocation7 + $0x1510] sm:$0xff] }
 0x40d   :  { %7811 = vmatpush1.bf16.msra.mxu0 %v8954_v57  ;;  %v1382_v57 = vld [vmem:[#allocation7 + $0x13b0] sm:$0xff] }
 0x40e   :  { %8155 = vmatpush1.bf16.msra.mxu1 %v8956_v56  ;;  %7812 = vmatprep.subr.bf16.mxu0 %v8963_v59  ;;  %v1379_v56 = vld [vmem:[#allocation7 + $0x1398] sm:$0xff]  ;;  %v9019_v1 = vcombine.high %v1378_v55, %v1382_v57  ;;  %v1430_v18 = vld [vmem:[#allocation7 + $0x1530] sm:$0xff] }
 0x40f   :  { %8156 = vmatprep.subr.bf16.mxu1 %v8965_v60  ;;  %v1383_v59 = vld [vmem:[#allocation7 + $0x13b8] sm:$0xff]  ;;  %v9010_v60 = vcombine.low %v1370_v47, %v1374_v38 }
 0x410   :  { %v9021_v10 = vcombine.high %v1379_v56, %v1383_v59  ;;  %v9020_v24 = vcombine.low %v1379_v56, %v1383_v59  ;;  %v1438_v56 = vld [vmem:[#allocation7 + $0x1570] sm:$0xff]  ;;  %v1435_v59 = vld [vmem:[#allocation7 + $0x1558] sm:$0xff] }
 0x411   :  { %7813 = vmatpush1.bf16.msra.mxu0 %v8962_v40  ;;  %v1390_v40 = vld [vmem:[#allocation7 + $0x13f0] sm:$0xff] }
 0x412   :  { %8157 = vmatpush1.bf16.msra.mxu1 %v8964_v30  ;;  %7814 = vmatprep.subr.bf16.mxu0 %v8971_v13  ;;  %v1387_v30 = vld [vmem:[#allocation7 + $0x13d8] sm:$0xff]  ;;  %v9027_v36 = vcombine.high %v1386_v11, %v1390_v40 }
 0x413   :  { %8158 = vmatprep.subr.bf16.mxu1 %v8973_v33  ;;  %v1391_v13 = vld [vmem:[#allocation7 + $0x13f8] sm:$0xff]  ;;  %v9018_v33 = vcombine.low %v1378_v55, %v1382_v57  ;;  %v1434_v57 = vld [vmem:[#allocation7 + $0x1550] sm:$0xff] }
 0x414   :  { %v9029_v31 = vcombine.high %v1387_v30, %v1391_v13  ;;  %v9028_v17 = vcombine.low %v1387_v30, %v1391_v13  ;;  %v1446_v30 = vld [vmem:[#allocation7 + $0x15b0] sm:$0xff]  ;;  %v1443_v13 = vld [vmem:[#allocation7 + $0x1598] sm:$0xff] }
 0x415   :  { %7815 = vmatpush1.bf16.msra.mxu0 %v8970_v32  ;;  %v1398_v32 = vld [vmem:[#allocation7 + $0x1430] sm:$0xff] }
 0x416   :  { %8159 = vmatpush1.bf16.msra.mxu1 %v8972_v15  ;;  %7816 = vmatprep.subr.bf16.mxu0 %v8979_v2  ;;  %v1395_v15 = vld [vmem:[#allocation7 + $0x1418] sm:$0xff]  ;;  %v9035_v42 = vcombine.high %v1394_v16, %v1398_v32 }
 0x417   :  { %8160 = vmatprep.subr.bf16.mxu1 %v8981_v20  ;;  %v1399_v2 = vld [vmem:[#allocation7 + $0x1438] sm:$0xff]  ;;  %v9026_v20 = vcombine.low %v1386_v11, %v1390_v40  ;;  %v1442_v40 = vld [vmem:[#allocation7 + $0x1590] sm:$0xff] }
 0x418   :  { %v9037_v27 = vcombine.high %v1395_v15, %v1399_v2  ;;  %v9036_v54 = vcombine.low %v1395_v15, %v1399_v2  ;;  %v1454_v15 = vld [vmem:[#allocation7 + $0x15f0] sm:$0xff]  ;;  %v1451_v2 = vld [vmem:[#allocation7 + $0x15d8] sm:$0xff] }
 0x419   :  { %7817 = vmatpush1.bf16.msra.mxu0 %v8978_v21  ;;  %v1406_v21 = vld [vmem:[#allocation7 + $0x1470] sm:$0xff] }
 0x41a   :  { %8161 = vmatpush1.bf16.msra.mxu1 %v8980_v43  ;;  %7818 = vmatprep.subr.bf16.mxu0 %v8987_v44  ;;  %v9034_v43 = vcombine.low %v1394_v16, %v1398_v32  ;;  %v1403_v44 = vld [vmem:[#allocation7 + $0x1458] sm:$0xff]  ;;  %v9043_v26 = vcombine.high %v1402_v19, %v1406_v21  ;;  %v1450_v32 = vld [vmem:[#allocation7 + $0x15d0] sm:$0xff] }
 0x41b   :  { %8162 = vmatprep.subr.bf16.mxu1 %v8989_v45  ;;  %v1407_v45 = vld [vmem:[#allocation7 + $0x1478] sm:$0xff] }
 0x41c   :  { %v9044_v7 = vcombine.low %v1403_v44, %v1407_v45 }
 0x41d   :  { %7819 = vmatpush1.bf16.msra.mxu0 %v8986_v14  ;;  %v9045_v14 = vcombine.high %v1403_v44, %v1407_v45  ;;  %v1459_v44 = vld [vmem:[#allocation7 + $0x1618] sm:$0xff] }
 0x41e   :  { %8163 = vmatpush1.bf16.msra.mxu1 %v8988_v63  ;;  %7820 = vmatprep.subr.bf16.mxu0 %v8995_v4  ;;  %v1411_v63 = vld [vmem:[#allocation7 + $0x1498] sm:$0xff] }
 0x41f   :  { %8164 = vmatprep.subr.bf16.mxu1 %v8997_v28  ;;  %v1415_v4 = vld [vmem:[#allocation7 + $0x14b8] sm:$0xff]  ;;  %v9042_v28 = vcombine.low %v1402_v19, %v1406_v21  ;;  %v1458_v21 = vld [vmem:[#allocation7 + $0x1610] sm:$0xff] }
 0x420   :  { %v9053_v8 = vcombine.high %v1411_v63, %v1415_v4  ;;  %v1463_v45 = vld [vmem:[#allocation7 + $0x1638] sm:$0xff] }
 0x421   :  { %7821 = vmatpush1.bf16.msra.mxu0 %v8994_v12  ;;  %v1422_v12 = vld [vmem:[#allocation7 + $0x14f0] sm:$0xff] }
 0x422   :  { %8165 = vmatpush1.bf16.msra.mxu1 %v8996_v37  ;;  %7822 = vmatprep.subr.bf16.mxu0 %v9003_v53  ;;  %v1419_v37 = vld [vmem:[#allocation7 + $0x14d8] sm:$0xff]  ;;  %v9059_v47 = vcombine.high %v1418_v51, %v1422_v12 }
 0x423   :  { %8166 = vmatprep.subr.bf16.mxu1 %v9005_v9  ;;  %v1423_v53 = vld [vmem:[#allocation7 + $0x14f8] sm:$0xff]  ;;  %v9050_v9 = vcombine.low %v1410_v3, %v1414_v46  ;;  %v9101_v46 = vcombine.high %v1459_v44, %v1463_v45 }
 0x424   :  { %v9061_v38 = vcombine.high %v1419_v37, %v1423_v53 }
 0x425   :  { %7823 = vmatpush1.bf16.msra.mxu0 %v9002_v41  ;;  %v1427_v41 = vld [vmem:[#allocation7 + $0x1518] sm:$0xff] }
 0x426   :  { %8167 = vmatpush1.bf16.msra.mxu1 %v9004_v48  ;;  %7824 = vmatprep.subr.bf16.mxu0 %v9011_v49  ;;  %v1431_v48 = vld [vmem:[#allocation7 + $0x1538] sm:$0xff]  ;;  %v9060_v49 = vcombine.low %v1419_v37, %v1423_v53  ;;  %v1478_v37 = vld [vmem:[#allocation7 + $0x16b0] sm:$0xff] }
 0x427   :  { %8168 = vmatprep.subr.bf16.mxu1 %v9013_v52  ;;  %v9067_v52 = vcombine.high %v1426_v39, %v1430_v18  ;;  %v9069_v55 = vcombine.high %v1427_v41, %v1431_v48  ;;  %v1475_v53 = vld [vmem:[#allocation7 + $0x1698] sm:$0xff] }
 0x429   :  { %7825 = vmatpush1.bf16.msra.mxu0 %v9010_v60  ;;  %v1439_v60 = vld [vmem:[#allocation7 + $0x1578] sm:$0xff] }
 0x42a   :  { %8169 = vmatpush1.bf16.msra.mxu1 %v9012_v61  ;;  %7826 = vmatprep.subr.bf16.mxu0 %v9019_v1  ;;  %v9066_v61 = vcombine.low %v1426_v39, %v1430_v18  ;;  %v9068_v1 = vcombine.low %v1427_v41, %v1431_v48  ;;  %v9077_v11 = vcombine.high %v1435_v59, %v1439_v60  ;;  %v1482_v18 = vld [vmem:[#allocation7 + $0x16d0] sm:$0xff]  ;;  %v1483_v48 = vld [vmem:[#allocation7 + $0x16d8] sm:$0xff] }
 0x42b   :  { %8170 = vmatprep.subr.bf16.mxu1 %v9021_v10  ;;  %v9075_v10 = vcombine.high %v1434_v57, %v1438_v56  ;;  %v1486_v41 = vld [vmem:[#allocation7 + $0x16f0] sm:$0xff] }
 0x42d   :  { %7827 = vmatpush1.bf16.msra.mxu0 %v9018_v33  ;;  %v1447_v33 = vld [vmem:[#allocation7 + $0x15b8] sm:$0xff] }
 0x42e   :  { %8171 = vmatpush1.bf16.msra.mxu1 %v9020_v24  ;;  %7828 = vmatprep.subr.bf16.mxu0 %v9027_v36  ;;  %v9074_v24 = vcombine.low %v1434_v57, %v1438_v56  ;;  %v9076_v36 = vcombine.low %v1435_v59, %v1439_v60  ;;  %v9085_v16 = vcombine.high %v1443_v13, %v1447_v33  ;;  %v1490_v56 = vld [vmem:[#allocation7 + $0x1710] sm:$0xff]  ;;  %v1491_v60 = vld [vmem:[#allocation7 + $0x1718] sm:$0xff] }
 0x42f   :  { %8172 = vmatprep.subr.bf16.mxu1 %v9029_v31  ;;  %v9083_v31 = vcombine.high %v1442_v40, %v1446_v30  ;;  %v1494_v59 = vld [vmem:[#allocation7 + $0x1730] sm:$0xff] }
 0x431   :  { %7829 = vmatpush1.bf16.msra.mxu0 %v9026_v20  ;;  %v1455_v20 = vld [vmem:[#allocation7 + $0x15f8] sm:$0xff] }
 0x432   :  { %8173 = vmatpush1.bf16.msra.mxu1 %v9028_v17  ;;  %7841 = vmatprep.subr.bf16.mxu0 %v9035_v42  ;;  %v9082_v17 = vcombine.low %v1442_v40, %v1446_v30  ;;  %v9084_v42 = vcombine.low %v1443_v13, %v1447_v33  ;;  %v9093_v19 = vcombine.high %v1451_v2, %v1455_v20  ;;  %v1498_v30 = vld [vmem:[#allocation7 + $0x1750] sm:$0xff]  ;;  %v1499_v33 = vld [vmem:[#allocation7 + $0x1758] sm:$0xff] }
 0x433   :  { %8185 = vmatprep.subr.bf16.mxu1 %v9037_v27  ;;  %v9091_v27 = vcombine.high %v1450_v32, %v1454_v15  ;;  %v1502_v13 = vld [vmem:[#allocation7 + $0x1770] sm:$0xff] }
 0x434   :  { %7831 = vmatmul.mubr.bf16.vlgmr.msra.gmra.mrb[20].mxu0 %v9986_v6 }
 0x435   :  { %8175 = vmatmul.mubr.bf16.vlgmr.msra.gmra.mrb[20].mxu1 %v9986_v6  ;;  %7842 = vmatpush1.bf16.msra.mxu0 %v9034_v43  ;;  %v9052_v6 = vcombine.low %v1411_v63, %v1415_v4  ;;  %v1462_v43 = vld [vmem:[#allocation7 + $0x1630] sm:$0xff]  ;;  %v1467_v4 = vld [vmem:[#allocation7 + $0x1658] sm:$0xff] }
 0x436   :  { %7873 = vmatprep.mubr.bf16.mxu0 %v10000_v29  ;;  %8186 = vmatpush1.bf16.msra.mxu1 %v9036_v54  ;;  %v9090_v54 = vcombine.low %v1450_v32, %v1454_v15  ;;  %v9099_v3 = vcombine.high %v1458_v21, %v1462_v43  ;;  %v1470_v63 = vld [vmem:[#allocation7 + $0x1670] sm:$0xff] }
 0x437   :  { %8217 = vmatprep.mubr.bf16.mxu1 %v10000_v29  ;;  %7843 = vmatprep.subr.bf16.mxu0 %v9043_v26  ;;  %v9058_v29 = vcombine.low %v1418_v51, %v1422_v12  ;;  %v9092_v26 = vcombine.low %v1451_v2, %v1455_v20  ;;  %v1474_v12 = vld [vmem:[#allocation7 + $0x1690] sm:$0xff]  ;;  %v1507_v20 = vld [vmem:[#allocation7 + $0x1798] sm:$0xff] }
 0x438   :  { %8187 = vmatprep.subr.bf16.mxu1 %v9045_v14  ;;  %v1466_v14 = vld [vmem:[#allocation7 + $0x1650] sm:$0xff] }
 0x439   :  { %7844 = vmatpush1.bf16.msra.mxu0 %v9042_v28  ;;  %v1471_v28 = vld [vmem:[#allocation7 + $0x1678] sm:$0xff]  ;;  %v1506_v15 = vld [vmem:[#allocation7 + $0x1790] sm:$0xff] }
 0x43a   :  { %8188 = vmatpush1.bf16.msra.mxu1 %v9044_v7  ;;  %7845 = vmatprep.subr.bf16.mxu0 %v9051_v62  ;;  %v9098_v7 = vcombine.low %v1458_v21, %v1462_v43  ;;  %v9100_v62 = vcombine.low %v1459_v44, %v1463_v45  ;;  %v9109_v51 = vcombine.high %v1467_v4, %v1471_v28  ;;  %v1510_v2 = vld [vmem:[#allocation7 + $0x17b0] sm:$0xff]  ;;  %v1515_v45 = vld [vmem:[#allocation7 + $0x17d8] sm:$0xff] }
 0x43b   :  { %8189 = vmatprep.subr.bf16.mxu1 %v9053_v8  ;;  %v9107_v8 = vcombine.high %v1466_v14, %v1470_v63  ;;  %v1514_v43 = vld [vmem:[#allocation7 + $0x17d0] sm:$0xff] }
 0x43c   :  { %v1518_v44 = vld [vmem:[#allocation7 + $0x17f0] sm:$0xff] }
 0x43d   :  { %7846 = vmatpush1.bf16.msra.mxu0 %v9050_v9  ;;  %v1479_v9 = vld [vmem:[#allocation7 + $0x16b8] sm:$0xff] }
 0x43e   :  { %8190 = vmatpush1.bf16.msra.mxu1 %v9052_v6  ;;  %7847 = vmatprep.subr.bf16.mxu0 %v9059_v47  ;;  %v9106_v6 = vcombine.low %v1466_v14, %v1470_v63  ;;  %v9108_v47 = vcombine.low %v1467_v4, %v1471_v28  ;;  %v9117_v39 = vcombine.high %v1475_v53, %v1479_v9  ;;  %v1522_v63 = vld [vmem:[#allocation7 + $0x1810] sm:$0xff]  ;;  %v1523_v28 = vld [vmem:[#allocation7 + $0x1818] sm:$0xff] }
 0x43f   :  { %8191 = vmatprep.subr.bf16.mxu1 %v9061_v38  ;;  %v9115_v38 = vcombine.high %v1474_v12, %v1478_v37  ;;  %v1526_v4 = vld [vmem:[#allocation7 + $0x1830] sm:$0xff] }
 0x441   :  { %7848 = vmatpush1.bf16.msra.mxu0 %v9058_v29  ;;  %v1487_v29 = vld [vmem:[#allocation7 + $0x16f8] sm:$0xff] }
 0x442   :  { %8192 = vmatpush1.bf16.msra.mxu1 %v9060_v49  ;;  %7849 = vmatprep.subr.bf16.mxu0 %v9067_v52  ;;  %v9114_v49 = vcombine.low %v1474_v12, %v1478_v37  ;;  %v9116_v52 = vcombine.low %v1475_v53, %v1479_v9  ;;  %v9125_v57 = vcombine.high %v1483_v48, %v1487_v29  ;;  %v1530_v37 = vld [vmem:[#allocation7 + $0x1850] sm:$0xff] }
 0x443   :  { %8193 = vmatprep.subr.bf16.mxu1 %v9069_v55  ;;  %v9123_v55 = vcombine.high %v1482_v18, %v1486_v41  ;;  %v1534_v53 = vld [vmem:[#allocation7 + $0x1870] sm:$0xff]  ;;  %v9162_v9 = vcombine.low %v1522_v63, %v1526_v4 }
 0x445   :  { %7850 = vmatpush1.bf16.msra.mxu0 %v9066_v61  ;;  %v1495_v61 = vld [vmem:[#allocation7 + $0x1738] sm:$0xff] }
 0x446   :  { %8194 = vmatpush1.bf16.msra.mxu1 %v9068_v1  ;;  %7851 = vmatprep.subr.bf16.mxu0 %v9075_v10  ;;  %v9122_v1 = vcombine.low %v1482_v18, %v1486_v41  ;;  %v9124_v10 = vcombine.low %v1483_v48, %v1487_v29  ;;  %v9133_v40 = vcombine.high %v1491_v60, %v1495_v61  ;;  %v1538_v18 = vld [vmem:[#allocation7 + $0x1890] sm:$0xff]  ;;  %v1539_v29 = vld [vmem:[#allocation7 + $0x1898] sm:$0xff] }
 0x447   :  { %8195 = vmatprep.subr.bf16.mxu1 %v9077_v11  ;;  %v9131_v11 = vcombine.high %v1490_v56, %v1494_v59  ;;  %v1542_v41 = vld [vmem:[#allocation7 + $0x18b0] sm:$0xff] }
 0x449   :  { %7852 = vmatpush1.bf16.msra.mxu0 %v9074_v24  ;;  %v1503_v24 = vld [vmem:[#allocation7 + $0x1778] sm:$0xff] }
 0x44a   :  { %8196 = vmatpush1.bf16.msra.mxu1 %v9076_v36  ;;  %7853 = vmatprep.subr.bf16.mxu0 %v9083_v31  ;;  %v9130_v36 = vcombine.low %v1490_v56, %v1494_v59  ;;  %v9132_v31 = vcombine.low %v1491_v60, %v1495_v61  ;;  %v9141_v32 = vcombine.high %v1499_v33, %v1503_v24  ;;  %v1546_v59 = vld [vmem:[#allocation7 + $0x18d0] sm:$0xff]  ;;  %v1547_v61 = vld [vmem:[#allocation7 + $0x18d8] sm:$0xff] }
 0x44b   :  { %8197 = vmatprep.subr.bf16.mxu1 %v9085_v16  ;;  %v9139_v16 = vcombine.high %v1498_v30, %v1502_v13  ;;  %v1550_v60 = vld [vmem:[#allocation7 + $0x18f0] sm:$0xff] }
 0x44d   :  { %7854 = vmatpush1.bf16.msra.mxu0 %v9082_v17  ;;  %v1511_v17 = vld [vmem:[#allocation7 + $0x17b8] sm:$0xff] }
 0x44e   :  { %8198 = vmatpush1.bf16.msra.mxu1 %v9084_v42  ;;  %7855 = vmatprep.subr.bf16.mxu0 %v9091_v27  ;;  %v9138_v42 = vcombine.low %v1498_v30, %v1502_v13  ;;  %v9140_v27 = vcombine.low %v1499_v33, %v1503_v24  ;;  %v9149_v21 = vcombine.high %v1507_v20, %v1511_v17  ;;  %v1554_v30 = vld [vmem:[#allocation7 + $0x1910] sm:$0xff]  ;;  %v1555_v33 = vld [vmem:[#allocation7 + $0x1918] sm:$0xff] }
 0x44f   :  { %8199 = vmatprep.subr.bf16.mxu1 %v9093_v19  ;;  %v9147_v19 = vcombine.high %v1506_v15, %v1510_v2  ;;  %v1558_v13 = vld [vmem:[#allocation7 + $0x1930] sm:$0xff]  ;;  %v1559_v24 = vld [vmem:[#allocation7 + $0x1938] sm:$0xff] }
 0x451   :  { %7856 = vmatpush1.bf16.msra.mxu0 %v9090_v54  ;;  %v1519_v54 = vld [vmem:[#allocation7 + $0x17f8] sm:$0xff] }
 0x452   :  { %8200 = vmatpush1.bf16.msra.mxu1 %v9092_v26  ;;  %7857 = vmatprep.subr.bf16.mxu0 %v9099_v3  ;;  %v9146_v26 = vcombine.low %v1506_v15, %v1510_v2  ;;  %v9148_v3 = vcombine.low %v1507_v20, %v1511_v17  ;;  %v9157_v14 = vcombine.high %v1515_v45, %v1519_v54  ;;  %v1566_v15 = vld [vmem:[#allocation7 + $0x1970] sm:$0xff]  ;;  %v1563_v2 = vld [vmem:[#allocation7 + $0x1958] sm:$0xff] }
 0x453   :  { %8201 = vmatprep.subr.bf16.mxu1 %v9101_v46  ;;  %v9155_v46 = vcombine.high %v1514_v43, %v1518_v44  ;;  %v1567_v20 = vld [vmem:[#allocation7 + $0x1978] sm:$0xff]  ;;  %v9194_v17 = vcombine.low %v1554_v30, %v1558_v13 }
 0x455   :  { %7858 = vmatpush1.bf16.msra.mxu0 %v9098_v7  ;;  %v1527_v7 = vld [vmem:[#allocation7 + $0x1838] sm:$0xff] }
 0x456   :  { %8202 = vmatpush1.bf16.msra.mxu1 %v9100_v62  ;;  %7859 = vmatprep.subr.bf16.mxu0 %v9107_v8  ;;  %v9154_v62 = vcombine.low %v1514_v43, %v1518_v44  ;;  %v9156_v8 = vcombine.low %v1515_v45, %v1519_v54  ;;  %v9165_v12 = vcombine.high %v1523_v28, %v1527_v7  ;;  %v1574_v43 = vld [vmem:[#allocation7 + $0x19b0] sm:$0xff]  ;;  %v1571_v44 = vld [vmem:[#allocation7 + $0x1998] sm:$0xff] }
 0x457   :  { %8203 = vmatprep.subr.bf16.mxu1 %v9109_v51  ;;  %v9163_v51 = vcombine.high %v1522_v63, %v1526_v4  ;;  %v1575_v45 = vld [vmem:[#allocation7 + $0x19b8] sm:$0xff]  ;;  %v1582_v63 = vld [vmem:[#allocation7 + $0x19f0] sm:$0xff] }
 0x458   :  { %v1579_v4 = vld [vmem:[#allocation7 + $0x19d8] sm:$0xff] }
 0x459   :  { %7860 = vmatpush1.bf16.msra.mxu0 %v9106_v6  ;;  %v1531_v6 = vld [vmem:[#allocation7 + $0x1858] sm:$0xff] }
 0x45a   :  { %8204 = vmatpush1.bf16.msra.mxu1 %v9108_v47  ;;  %7861 = vmatprep.subr.bf16.mxu0 %v9115_v38  ;;  %v1535_v47 = vld [vmem:[#allocation7 + $0x1878] sm:$0xff]  ;;  %v9164_v38 = vcombine.low %v1523_v28, %v1527_v7 }
 0x45b   :  { %8205 = vmatprep.subr.bf16.mxu1 %v9117_v39  ;;  %v9171_v39 = vcombine.high %v1530_v37, %v1534_v53  ;;  %v9173_v48 = vcombine.high %v1531_v6, %v1535_v47  ;;  %v1583_v28 = vld [vmem:[#allocation7 + $0x19f8] sm:$0xff] }
 0x45d   :  { %7862 = vmatpush1.bf16.msra.mxu0 %v9114_v49  ;;  %v1543_v49 = vld [vmem:[#allocation7 + $0x18b8] sm:$0xff] }
 0x45e   :  { %8206 = vmatpush1.bf16.msra.mxu1 %v9116_v52  ;;  %7863 = vmatprep.subr.bf16.mxu0 %v9123_v55  ;;  %v9170_v52 = vcombine.low %v1530_v37, %v1534_v53  ;;  %v9172_v55 = vcombine.low %v1531_v6, %v1535_v47  ;;  %v9181_v56 = vcombine.high %v1539_v29, %v1543_v49  ;;  %v1590_v37 = vld [vmem:[#allocation7 + $0x1a30] sm:$0xff]  ;;  %v1587_v53 = vld [vmem:[#allocation7 + $0x1a18] sm:$0xff] }
 0x45f   :  { %8207 = vmatprep.subr.bf16.mxu1 %v9125_v57  ;;  %v9179_v57 = vcombine.high %v1538_v18, %v1542_v41  ;;  %v9220_v47 = vcombine.low %v1579_v4, %v1583_v28 }
 0x461   :  { %7864 = vmatpush1.bf16.msra.mxu0 %v9122_v1  ;;  %v1551_v1 = vld [vmem:[#allocation7 + $0x18f8] sm:$0xff] }
 0x462   :  { %8208 = vmatpush1.bf16.msra.mxu1 %v9124_v10  ;;  %7865 = vmatprep.subr.bf16.mxu0 %v9131_v11  ;;  %v9178_v10 = vcombine.low %v1538_v18, %v1542_v41  ;;  %v9187_v11 = vcombine.high %v1546_v59, %v1550_v60  ;;  %v1594_v18 = vld [vmem:[#allocation7 + $0x1a50] sm:$0xff] }
 0x463   :  { %8209 = vmatprep.subr.bf16.mxu1 %v9133_v40  ;;  %v9189_v40 = vcombine.high %v1547_v61, %v1551_v1  ;;  %v1598_v41 = vld [vmem:[#allocation7 + $0x1a70] sm:$0xff] }
 0x465   :  { %7866 = vmatpush1.bf16.msra.mxu0 %v9130_v36  ;;  %v9188_v36 = vcombine.low %v1547_v61, %v1551_v1  ;;  %v1607_v61 = vld [vmem:[#allocation7 + $0x1ab8] sm:$0xff]  ;;  %v9234_v1 = vcombine.low %v1594_v18, %v1598_v41 }
 0x466   :  { %8210 = vmatpush1.bf16.msra.mxu1 %v9132_v31  ;;  %7867 = vmatprep.subr.bf16.mxu0 %v9139_v16  ;;  %v9195_v31 = vcombine.high %v1554_v30, %v1558_v13  ;;  %v9197_v16 = vcombine.high %v1555_v33, %v1559_v24  ;;  %v1614_v30 = vld [vmem:[#allocation7 + $0x1af0] sm:$0xff]  ;;  %v1611_v13 = vld [vmem:[#allocation7 + $0x1ad8] sm:$0xff] }
 0x467   :  { %8211 = vmatprep.subr.bf16.mxu1 %v9141_v32  ;;  %v1562_v32 = vld [vmem:[#allocation7 + $0x1950] sm:$0xff] }
 0x468   :  { %v9202_v54 = vcombine.low %v1562_v32, %v1566_v15 }
 0x469   :  { %7868 = vmatpush1.bf16.msra.mxu0 %v9138_v42  ;;  %v9196_v42 = vcombine.low %v1555_v33, %v1559_v24  ;;  %v1615_v33 = vld [vmem:[#allocation7 + $0x1af8] sm:$0xff] }
 0x46a   :  { %8212 = vmatpush1.bf16.msra.mxu1 %v9140_v27  ;;  %7869 = vmatprep.subr.bf16.mxu0 %v9147_v19  ;;  %v9203_v27 = vcombine.high %v1562_v32, %v1566_v15  ;;  %v9205_v19 = vcombine.high %v1563_v2, %v1567_v20  ;;  %v1622_v32 = vld [vmem:[#allocation7 + $0x1b30] sm:$0xff]  ;;  %v1619_v15 = vld [vmem:[#allocation7 + $0x1b18] sm:$0xff] }
 0x46b   :  { %8213 = vmatprep.subr.bf16.mxu1 %v9149_v21  ;;  %v1570_v21 = vld [vmem:[#allocation7 + $0x1990] sm:$0xff] }
 0x46c   :  { %v9210_v7 = vcombine.low %v1570_v21, %v1574_v43 }
 0x46d   :  { %7870 = vmatpush1.bf16.msra.mxu0 %v9146_v26  ;;  %v9204_v26 = vcombine.low %v1563_v2, %v1567_v20  ;;  %v1623_v2 = vld [vmem:[#allocation7 + $0x1b38] sm:$0xff] }
 0x46e   :  { %8214 = vmatpush1.bf16.msra.mxu1 %v9148_v3  ;;  %7871 = vmatprep.subr.bf16.mxu0 %v9155_v46  ;;  %v9211_v3 = vcombine.high %v1570_v21, %v1574_v43  ;;  %v9213_v46 = vcombine.high %v1571_v44, %v1575_v45  ;;  %v1630_v21 = vld [vmem:[#allocation7 + $0x1b70] sm:$0xff]  ;;  %v1627_v43 = vld [vmem:[#allocation7 + $0x1b58] sm:$0xff] }
 0x46f   :  { %8215 = vmatprep.subr.bf16.mxu1 %v9157_v14  ;;  %v1578_v14 = vld [vmem:[#allocation7 + $0x19d0] sm:$0xff] }
 0x470   :  { %v9218_v6 = vcombine.low %v1578_v14, %v1582_v63 }
 0x471   :  { %7872 = vmatpush1.bf16.msra.mxu0 %v9154_v62  ;;  %v9212_v62 = vcombine.low %v1571_v44, %v1575_v45  ;;  %v1631_v44 = vld [vmem:[#allocation7 + $0x1b78] sm:$0xff] }
 0x472   :  { %8216 = vmatpush1.bf16.msra.mxu1 %v9156_v8  ;;  %7884 = vmatprep.subr.bf16.mxu0 %v9163_v51  ;;  %v9219_v8 = vcombine.high %v1578_v14, %v1582_v63  ;;  %v9221_v51 = vcombine.high %v1579_v4, %v1583_v28  ;;  %v1638_v14 = vld [vmem:[#allocation7 + $0x1bb0] sm:$0xff]  ;;  %v1635_v63 = vld [vmem:[#allocation7 + $0x1b98] sm:$0xff] }
 0x473   :  { %8228 = vmatprep.subr.bf16.mxu1 %v9165_v12  ;;  %v1586_v12 = vld [vmem:[#allocation7 + $0x1a10] sm:$0xff]  ;;  %v1639_v4 = vld [vmem:[#allocation7 + $0x1bb8] sm:$0xff] }
 0x474   :  { %7874 = vmatmul.mubr.bf16.vlgmr.msra.gmra.mrb[20].mxu0 %v9996_v25 }
 0x475   :  { %8218 = vmatmul.mubr.bf16.vlgmr.msra.gmra.mrb[20].mxu1 %v9996_v25  ;;  %7885 = vmatpush1.bf16.msra.mxu0 %v9162_v9  ;;  %v9180_v25 = vcombine.low %v1539_v29, %v1543_v49  ;;  %v1591_v9 = vld [vmem:[#allocation7 + $0x1a38] sm:$0xff]  ;;  %v9226_v49 = vcombine.low %v1586_v12, %v1590_v37 }
 0x476   :  { %7916 = vmatprep.mubr.bf16.mxu0 %v10037_v50  ;;  %8229 = vmatpush1.bf16.msra.mxu1 %v9164_v38  ;;  %v9227_v38 = vcombine.high %v1586_v12, %v1590_v37  ;;  %v1599_v29 = vld [vmem:[#allocation7 + $0x1a78] sm:$0xff]  ;;  %v1646_v12 = vld [vmem:[#allocation7 + $0x1bf0] sm:$0xff] }
 0x477   :  { %8260 = vmatprep.mubr.bf16.mxu1 %v10037_v50  ;;  %7886 = vmatprep.subr.bf16.mxu0 %v9171_v39  ;;  %v9186_v50 = vcombine.low %v1546_v59, %v1550_v60  ;;  %v9229_v39 = vcombine.high %v1587_v53, %v1591_v9  ;;  %v1606_v59 = vld [vmem:[#allocation7 + $0x1ab0] sm:$0xff]  ;;  %v1603_v60 = vld [vmem:[#allocation7 + $0x1a98] sm:$0xff] }
 0x478   :  { %8230 = vmatprep.subr.bf16.mxu1 %v9173_v48  ;;  %v1595_v48 = vld [vmem:[#allocation7 + $0x1a58] sm:$0xff] }
 0x479   :  { %7887 = vmatpush1.bf16.msra.mxu0 %v9170_v52  ;;  %v9228_v52 = vcombine.low %v1587_v53, %v1591_v9  ;;  %v1643_v37 = vld [vmem:[#allocation7 + $0x1bd8] sm:$0xff] }
 0x47a   :  { %8231 = vmatpush1.bf16.msra.mxu1 %v9172_v55  ;;  %7888 = vmatprep.subr.bf16.mxu0 %v9179_v57  ;;  %v9235_v55 = vcombine.high %v1594_v18, %v1598_v41  ;;  %v9237_v57 = vcombine.high %v1595_v48, %v1599_v29  ;;  %v1647_v53 = vld [vmem:[#allocation7 + $0x1bf8] sm:$0xff]  ;;  %v1654_v18 = vld [vmem:[#allocation7 + $0x1c30] sm:$0xff] }
 0x47b   :  { %8232 = vmatprep.subr.bf16.mxu1 %v9181_v56  ;;  %v1602_v56 = vld [vmem:[#allocation7 + $0x1a90] sm:$0xff]  ;;  %v1651_v41 = vld [vmem:[#allocation7 + $0x1c18] sm:$0xff] }
 0x47c   :  { %v9242_v24 = vcombine.low %v1602_v56, %v1606_v59 }
 0x47d   :  { %7889 = vmatpush1.bf16.msra.mxu0 %v9178_v10  ;;  %v9236_v10 = vcombine.low %v1595_v48, %v1599_v29  ;;  %v1655_v48 = vld [vmem:[#allocation7 + $0x1c38] sm:$0xff] }
 0x47e   :  { %8233 = vmatpush1.bf16.msra.mxu1 %v9180_v25  ;;  %7890 = vmatprep.subr.bf16.mxu0 %v9187_v11  ;;  %v9243_v25 = vcombine.high %v1602_v56, %v1606_v59  ;;  %v9245_v11 = vcombine.high %v1603_v60, %v1607_v61  ;;  %v1662_v56 = vld [vmem:[#allocation7 + $0x1c70] sm:$0xff] }
 0x47f   :  { %8234 = vmatprep.subr.bf16.mxu1 %v9189_v40  ;;  %v1610_v40 = vld [vmem:[#allocation7 + $0x1ad0] sm:$0xff] }
 0x480   :  { %v9250_v20 = vcombine.low %v1610_v40, %v1614_v30 }
 0x481   :  { %7891 = vmatpush1.bf16.msra.mxu0 %v9186_v50  ;;  %v9244_v50 = vcombine.low %v1603_v60, %v1607_v61  ;;  %v1659_v60 = vld [vmem:[#allocation7 + $0x1c58] sm:$0xff] }
 0x482   :  { %8235 = vmatpush1.bf16.msra.mxu1 %v9188_v36  ;;  %7892 = vmatprep.subr.bf16.mxu0 %v9195_v31  ;;  %v9251_v36 = vcombine.high %v1610_v40, %v1614_v30  ;;  %v9253_v31 = vcombine.high %v1611_v13, %v1615_v33  ;;  %v1663_v61 = vld [vmem:[#allocation7 + $0x1c78] sm:$0xff] }
 0x483   :  { %8236 = vmatprep.subr.bf16.mxu1 %v9197_v16  ;;  %v1618_v16 = vld [vmem:[#allocation7 + $0x1b10] sm:$0xff]  ;;  %v9301_v40 = vcombine.high %v1659_v60, %v1663_v61  ;;  %v1667_v30 = vld [vmem:[#allocation7 + $0x1c98] sm:$0xff] }
 0x484   :  { %v9258_v45 = vcombine.low %v1618_v16, %v1622_v32 }
 0x485   :  { %7893 = vmatpush1.bf16.msra.mxu0 %v9194_v17  ;;  %v9252_v17 = vcombine.low %v1611_v13, %v1615_v33  ;;  %v1671_v13 = vld [vmem:[#allocation7 + $0x1cb8] sm:$0xff] }
 0x486   :  { %8237 = vmatpush1.bf16.msra.mxu1 %v9196_v42  ;;  %7894 = vmatprep.subr.bf16.mxu0 %v9203_v27  ;;  %v9259_v42 = vcombine.high %v1618_v16, %v1622_v32  ;;  %v9261_v27 = vcombine.high %v1619_v15, %v1623_v2  ;;  %v1678_v16 = vld [vmem:[#allocation7 + $0x1cf0] sm:$0xff]  ;;  %v1675_v32 = vld [vmem:[#allocation7 + $0x1cd8] sm:$0xff] }
 0x487   :  { %8238 = vmatprep.subr.bf16.mxu1 %v9205_v19  ;;  %v1626_v19 = vld [vmem:[#allocation7 + $0x1b50] sm:$0xff] }
 0x488   :  { %v9266_v28 = vcombine.low %v1626_v19, %v1630_v21 }
 0x489   :  { %7895 = vmatpush1.bf16.msra.mxu0 %v9202_v54  ;;  %v9260_v54 = vcombine.low %v1619_v15, %v1623_v2  ;;  %v1679_v15 = vld [vmem:[#allocation7 + $0x1cf8] sm:$0xff] }
 0x48a   :  { %8239 = vmatpush1.bf16.msra.mxu1 %v9204_v26  ;;  %7896 = vmatprep.subr.bf16.mxu0 %v9211_v3  ;;  %v9267_v26 = vcombine.high %v1626_v19, %v1630_v21  ;;  %v9269_v3 = vcombine.high %v1627_v43, %v1631_v44  ;;  %v1683_v19 = vld [vmem:[#allocation7 + $0x1d18] sm:$0xff] }
 0x48b   :  { %8240 = vmatprep.subr.bf16.mxu1 %v9213_v46  ;;  %v1634_v46 = vld [vmem:[#allocation7 + $0x1b90] sm:$0xff]  ;;  %v1687_v21 = vld [vmem:[#allocation7 + $0x1d38] sm:$0xff] }
 0x48c   :  { %v9274_v9 = vcombine.low %v1634_v46, %v1638_v14 }
 0x48d   :  { %7897 = vmatpush1.bf16.msra.mxu0 %v9210_v7  ;;  %v9268_v7 = vcombine.low %v1627_v43, %v1631_v44  ;;  %v9316_v43 = vcombine.low %v1675_v32, %v1679_v15 }
 0x48e   :  { %8241 = vmatpush1.bf16.msra.mxu1 %v9212_v62  ;;  %7898 = vmatprep.subr.bf16.mxu0 %v9219_v8  ;;  %v9275_v62 = vcombine.high %v1634_v46, %v1638_v14  ;;  %v9277_v8 = vcombine.high %v1635_v63, %v1639_v4  ;;  %v1695_v46 = vld [vmem:[#allocation7 + $0x1d78] sm:$0xff] }
 0x48f   :  { %8242 = vmatprep.subr.bf16.mxu1 %v9221_v51  ;;  %v1642_v51 = vld [vmem:[#allocation7 + $0x1bd0] sm:$0xff] }
 0x490   :  { %v9282_v29 = vcombine.low %v1642_v51, %v1646_v12 }
 0x491   :  { %7899 = vmatpush1.bf16.msra.mxu0 %v9218_v6  ;;  %v9276_v6 = vcombine.low %v1635_v63, %v1639_v4  ;;  %v9324_v63 = vcombine.low %v1683_v19, %v1687_v21 }
 0x492   :  { %8243 = vmatpush1.bf16.msra.mxu1 %v9220_v47  ;;  %7900 = vmatprep.subr.bf16.mxu0 %v9227_v38  ;;  %v9283_v47 = vcombine.high %v1642_v51, %v1646_v12  ;;  %v9285_v38 = vcombine.high %v1643_v37, %v1647_v53  ;;  %v1703_v51 = vld [vmem:[#allocation7 + $0x1db8] sm:$0xff] }
 0x493   :  { %8244 = vmatprep.subr.bf16.mxu1 %v9229_v39  ;;  %v1650_v39 = vld [vmem:[#allocation7 + $0x1c10] sm:$0xff] }
 0x494   :  { %v9290_v59 = vcombine.low %v1650_v39, %v1654_v18 }
 0x495   :  { %7901 = vmatpush1.bf16.msra.mxu0 %v9226_v49  ;;  %v9284_v49 = vcombine.low %v1643_v37, %v1647_v53 }
 0x496   :  { %8245 = vmatpush1.bf16.msra.mxu1 %v9228_v52  ;;  %7902 = vmatprep.subr.bf16.mxu0 %v9235_v55  ;;  %v9291_v52 = vcombine.high %v1650_v39, %v1654_v18  ;;  %v9293_v55 = vcombine.high %v1651_v41, %v1655_v48  ;;  %v1711_v39 = vld [vmem:[#allocation7 + $0x1df8] sm:$0xff] }
 0x497   :  { %8246 = vmatprep.subr.bf16.mxu1 %v9237_v57  ;;  %v1658_v57 = vld [vmem:[#allocation7 + $0x1c50] sm:$0xff] }
 0x498   :  { %v9298_v33 = vcombine.low %v1658_v57, %v1662_v56 }
 0x499   :  { %7903 = vmatpush1.bf16.msra.mxu0 %v9234_v1  ;;  %v9292_v1 = vcombine.low %v1651_v41, %v1655_v48 }
 0x49a   :  { %8247 = vmatpush1.bf16.msra.mxu1 %v9236_v10  ;;  %7904 = vmatprep.subr.bf16.mxu0 %v9243_v25  ;;  %v9299_v10 = vcombine.high %v1658_v57, %v1662_v56  ;;  %v1666_v25 = vld [vmem:[#allocation7 + $0x1c90] sm:$0xff]  ;;  %v1719_v57 = vld [vmem:[#allocation7 + $0x1e38] sm:$0xff] }
 0x49b   :  { %8248 = vmatprep.subr.bf16.mxu1 %v9245_v11  ;;  %v1670_v11 = vld [vmem:[#allocation7 + $0x1cb0] sm:$0xff] }
 0x49c   :  { %v9306_v2 = vcombine.low %v1666_v25, %v1670_v11 }
 0x49d   :  { %7905 = vmatpush1.bf16.msra.mxu0 %v9242_v24  ;;  %v9300_v24 = vcombine.low %v1659_v60, %v1663_v61 }
 0x49e   :  { %8249 = vmatpush1.bf16.msra.mxu1 %v9244_v50  ;;  %7906 = vmatprep.subr.bf16.mxu0 %v9251_v36  ;;  %v9307_v50 = vcombine.high %v1666_v25, %v1670_v11  ;;  %v9309_v36 = vcombine.high %v1667_v30, %v1671_v13  ;;  %v1723_v25 = vld [vmem:[#allocation7 + $0x1e58] sm:$0xff] }
 0x49f   :  { %8250 = vmatprep.subr.bf16.mxu1 %v9253_v31  ;;  %v1674_v31 = vld [vmem:[#allocation7 + $0x1cd0] sm:$0xff]  ;;  %v1727_v11 = vld [vmem:[#allocation7 + $0x1e78] sm:$0xff] }
 0x4a1   :  { %7907 = vmatpush1.bf16.msra.mxu0 %v9250_v20  ;;  %v9315_v20 = vcombine.high %v1674_v31, %v1678_v16 }
 0x4a2   :  { %8251 = vmatpush1.bf16.msra.mxu1 %v9252_v17  ;;  %7908 = vmatprep.subr.bf16.mxu0 %v9259_v42  ;;  %v9317_v17 = vcombine.high %v1675_v32, %v1679_v15  ;;  %v1682_v42 = vld [vmem:[#allocation7 + $0x1d10] sm:$0xff]  ;;  %v9364_v32 = vcombine.low %v1723_v25, %v1727_v11 }
 0x4a3   :  { %8252 = vmatprep.subr.bf16.mxu1 %v9261_v27  ;;  %v1686_v27 = vld [vmem:[#allocation7 + $0x1d30] sm:$0xff] }
 0x4a4   :  { %v9323_v44 = vcombine.high %v1682_v42, %v1686_v27  ;;  %v9322_v14 = vcombine.low %v1682_v42, %v1686_v27  ;;  %v1743_v42 = vld [vmem:[#allocation7 + $0x1ef8] sm:$0xff] }
 0x4a5   :  { %7909 = vmatpush1.bf16.msra.mxu0 %v9258_v45  ;;  %v9325_v45 = vcombine.high %v1683_v19, %v1687_v21 }
 0x4a6   :  { %8253 = vmatpush1.bf16.msra.mxu1 %v9260_v54  ;;  %7910 = vmatprep.subr.bf16.mxu0 %v9267_v26  ;;  %v1690_v54 = vld [vmem:[#allocation7 + $0x1d50] sm:$0xff] }
 0x4a7   :  { %8254 = vmatprep.subr.bf16.mxu1 %v9269_v3  ;;  %v1694_v26 = vld [vmem:[#allocation7 + $0x1d70] sm:$0xff]  ;;  %v1691_v3 = vld [vmem:[#allocation7 + $0x1d58] sm:$0xff] }
 0x4a8   :  { %v9331_v4 = vcombine.high %v1690_v54, %v1694_v26  ;;  %v9330_v12 = vcombine.low %v1690_v54, %v1694_v26  ;;  %v9332_v37 = vcombine.low %v1691_v3, %v1695_v46  ;;  %v1751_v54 = vld [vmem:[#allocation7 + $0x1f38] sm:$0xff] }
 0x4a9   :  { %7911 = vmatpush1.bf16.msra.mxu0 %v9266_v28  ;;  %v9333_v28 = vcombine.high %v1691_v3, %v1695_v46 }
 0x4aa   :  { %8255 = vmatpush1.bf16.msra.mxu1 %v9268_v7  ;;  %7912 = vmatprep.subr.bf16.mxu0 %v9275_v62  ;;  %v1698_v7 = vld [vmem:[#allocation7 + $0x1d90] sm:$0xff] }
 0x4ab   :  { %8256 = vmatprep.subr.bf16.mxu1 %v9277_v8  ;;  %v1702_v62 = vld [vmem:[#allocation7 + $0x1db0] sm:$0xff]  ;;  %v1699_v8 = vld [vmem:[#allocation7 + $0x1d98] sm:$0xff] }
 0x4ac   :  { %v9339_v53 = vcombine.high %v1698_v7, %v1702_v62  ;;  %v9338_v18 = vcombine.low %v1698_v7, %v1702_v62  ;;  %v9340_v41 = vcombine.low %v1699_v8, %v1703_v51  ;;  %v1759_v7 = vld [vmem:[#allocation7 + $0x1f78] sm:$0xff] }
 0x4ad   :  { %7913 = vmatpush1.bf16.msra.mxu0 %v9274_v9  ;;  %v9341_v9 = vcombine.high %v1699_v8, %v1703_v51 }
 0x4ae   :  { %8257 = vmatpush1.bf16.msra.mxu1 %v9276_v6  ;;  %7914 = vmatprep.subr.bf16.mxu0 %v9283_v47  ;;  %v1706_v6 = vld [vmem:[#allocation7 + $0x1dd0] sm:$0xff] }
 0x4af   :  { %8258 = vmatprep.subr.bf16.mxu1 %v9285_v38  ;;  %v1710_v47 = vld [vmem:[#allocation7 + $0x1df0] sm:$0xff]  ;;  %v1707_v38 = vld [vmem:[#allocation7 + $0x1dd8] sm:$0xff] }
 0x4b0   :  { %v9347_v48 = vcombine.high %v1706_v6, %v1710_v47  ;;  %v9346_v56 = vcombine.low %v1706_v6, %v1710_v47  ;;  %v1767_v6 = vld [vmem:[#allocation7 + $0x1fb8] sm:$0xff] }
 0x4b1   :  { %7915 = vmatpush1.bf16.msra.mxu0 %v9282_v29  ;;  %v9349_v29 = vcombine.high %v1707_v38, %v1711_v39 }
 0x4b2   :  { %8259 = vmatpush1.bf16.msra.mxu1 %v9284_v49  ;;  %7927 = vmatprep.subr.bf16.mxu0 %v9291_v52  ;;  %v1714_v49 = vld [vmem:[#allocation7 + $0x1e10] sm:$0xff] }
 0x4b3   :  { %8271 = vmatprep.subr.bf16.mxu1 %v9293_v55  ;;  %v1718_v52 = vld [vmem:[#allocation7 + $0x1e30] sm:$0xff]  ;;  %v1715_v55 = vld [vmem:[#allocation7 + $0x1e18] sm:$0xff] }
 0x4b4   :  { %7917 = vmatmul.mubr.bf16.vlgmr.msra.gmra.mrb[20].mxu0 %v10031_v5  ;;  %v9355_v60 = vcombine.high %v1714_v49, %v1718_v52  ;;  %v9357_v61 = vcombine.high %v1715_v55, %v1719_v57 }
 0x4b5   :  { %8261 = vmatmul.mubr.bf16.vlgmr.msra.gmra.mrb[20].mxu1 %v10031_v5  ;;  %7928 = vmatpush1.bf16.msra.mxu0 %v9290_v59  ;;  %v9308_v5 = vcombine.low %v1667_v30, %v1671_v13  ;;  %v9348_v59 = vcombine.low %v1707_v38, %v1711_v39  ;;  %v9356_v30 = vcombine.low %v1715_v55, %v1719_v57 }
 0x4b6   :  { %7959 = vmatprep.mubr.bf16.mxu0 %v10039_v58  ;;  %8272 = vmatpush1.bf16.msra.mxu1 %v9292_v1  ;;  %v1722_v1 = vld [vmem:[#allocation7 + $0x1e50] sm:$0xff] }
 0x4b7   :  { %8303 = vmatprep.mubr.bf16.mxu1 %v10039_v58  ;;  %7929 = vmatprep.subr.bf16.mxu0 %v9299_v10  ;;  %v9314_v58 = vcombine.low %v1674_v31, %v1678_v16  ;;  %v1726_v10 = vld [vmem:[#allocation7 + $0x1e70] sm:$0xff]  ;;  %v1735_v31 = vld [vmem:[#allocation7 + $0x1eb8] sm:$0xff] }
 0x4b8   :  { %8273 = vmatprep.subr.bf16.mxu1 %v9301_v40  ;;  %v9354_v40 = vcombine.low %v1714_v49, %v1718_v52  ;;  %v9363_v13 = vcombine.high %v1722_v1, %v1726_v10  ;;  %v9362_v16 = vcombine.low %v1722_v1, %v1726_v10  ;;  %v1775_v49 = vld [vmem:[#allocation7 + $0x1ff8] sm:$0xff] }
 0x4b9   :  { %7930 = vmatpush1.bf16.msra.mxu0 %v9298_v33  ;;  %v9365_v33 = vcombine.high %v1723_v25, %v1727_v11 }
 0x4ba   :  { %8274 = vmatpush1.bf16.msra.mxu1 %v9300_v24  ;;  %7931 = vmatprep.subr.bf16.mxu0 %v9307_v50  ;;  %v1730_v24 = vld [vmem:[#allocation7 + $0x1e90] sm:$0xff] }
 0x4bb   :  { %8275 = vmatprep.subr.bf16.mxu1 %v9309_v36  ;;  %v1734_v50 = vld [vmem:[#allocation7 + $0x1eb0] sm:$0xff]  ;;  %v1731_v36 = vld [vmem:[#allocation7 + $0x1e98] sm:$0xff] }
 0x4bc   :  { %v9371_v15 = vcombine.high %v1730_v24, %v1734_v50  ;;  %v9370_v27 = vcombine.low %v1730_v24, %v1734_v50  ;;  %v9372_v19 = vcombine.low %v1731_v36, %v1735_v31 }
 0x4bd   :  { %7932 = vmatpush1.bf16.msra.mxu0 %v9306_v2  ;;  %v9373_v2 = vcombine.high %v1731_v36, %v1735_v31 }
 0x4be   :  { %8276 = vmatpush1.bf16.msra.mxu1 %v9308_v5  ;;  %7933 = vmatprep.subr.bf16.mxu0 %v9315_v20  ;;  %v1738_v5 = vld [vmem:[#allocation7 + $0x1ed0] sm:$0xff] }
 0x4bf   :  { %8277 = vmatprep.subr.bf16.mxu1 %v9317_v17  ;;  %v1742_v20 = vld [vmem:[#allocation7 + $0x1ef0] sm:$0xff]  ;;  %v1739_v17 = vld [vmem:[#allocation7 + $0x1ed8] sm:$0xff] }
 0x4c0   :  { %v9379_v21 = vcombine.high %v1738_v5, %v1742_v20  ;;  %v9378_v26 = vcombine.low %v1738_v5, %v1742_v20  ;;  %v9380_v3 = vcombine.low %v1739_v17, %v1743_v42 }
 0x4c1   :  { %7934 = vmatpush1.bf16.msra.mxu0 %v9314_v58  ;;  %v9381_v58 = vcombine.high %v1739_v17, %v1743_v42 }
 0x4c2   :  { %8278 = vmatpush1.bf16.msra.mxu1 %v9316_v43  ;;  %7935 = vmatprep.subr.bf16.mxu0 %v9323_v44  ;;  %v1746_v43 = vld [vmem:[#allocation7 + $0x1f10] sm:$0xff] }
 0x4c3   :  { %8279 = vmatprep.subr.bf16.mxu1 %v9325_v45  ;;  %v1750_v44 = vld [vmem:[#allocation7 + $0x1f30] sm:$0xff]  ;;  %v1747_v45 = vld [vmem:[#allocation7 + $0x1f18] sm:$0xff] }
 0x4c4   :  { %v9387_v46 = vcombine.high %v1746_v43, %v1750_v44  ;;  %v9386_v62 = vcombine.low %v1746_v43, %v1750_v44  ;;  %v9388_v8 = vcombine.low %v1747_v45, %v1751_v54 }
 0x4c5   :  { %7936 = vmatpush1.bf16.msra.mxu0 %v9322_v14  ;;  %v9389_v14 = vcombine.high %v1747_v45, %v1751_v54 }
 0x4c6   :  { %8280 = vmatpush1.bf16.msra.mxu1 %v9324_v63  ;;  %7937 = vmatprep.subr.bf16.mxu0 %v9331_v4  ;;  %v1754_v63 = vld [vmem:[#allocation7 + $0x1f50] sm:$0xff] }
 0x4c7   :  { %8281 = vmatprep.subr.bf16.mxu1 %v9333_v28  ;;  %v1758_v4 = vld [vmem:[#allocation7 + $0x1f70] sm:$0xff]  ;;  %v1755_v28 = vld [vmem:[#allocation7 + $0x1f58] sm:$0xff] }
 0x4c8   :  { %v9395_v51 = vcombine.high %v1754_v63, %v1758_v4  ;;  %v9394_v47 = vcombine.low %v1754_v63, %v1758_v4  ;;  %v9396_v38 = vcombine.low %v1755_v28, %v1759_v7 }
 0x4c9   :  { %7938 = vmatpush1.bf16.msra.mxu0 %v9330_v12  ;;  %v9397_v12 = vcombine.high %v1755_v28, %v1759_v7 }
 0x4ca   :  { %8282 = vmatpush1.bf16.msra.mxu1 %v9332_v37  ;;  %7939 = vmatprep.subr.bf16.mxu0 %v9339_v53  ;;  %v1762_v37 = vld [vmem:[#allocation7 + $0x1f90] sm:$0xff] }
 0x4cb   :  { %8283 = vmatprep.subr.bf16.mxu1 %v9341_v9  ;;  %v1766_v53 = vld [vmem:[#allocation7 + $0x1fb0] sm:$0xff]  ;;  %v1763_v9 = vld [vmem:[#allocation7 + $0x1f98] sm:$0xff] }
 0x4cc   :  { %v9403_v39 = vcombine.high %v1762_v37, %v1766_v53  ;;  %v9402_v52 = vcombine.low %v1762_v37, %v1766_v53  ;;  %v9404_v55 = vcombine.low %v1763_v9, %v1767_v6 }
 0x4cd   :  { %7940 = vmatpush1.bf16.msra.mxu0 %v9338_v18  ;;  %v9405_v18 = vcombine.high %v1763_v9, %v1767_v6 }
 0x4ce   :  { %8284 = vmatpush1.bf16.msra.mxu1 %v9340_v41  ;;  %7941 = vmatprep.subr.bf16.mxu0 %v9347_v48  ;;  %v1770_v41 = vld [vmem:[#allocation7 + $0x1fd0] sm:$0xff] }
 0x4cf   :  { %8285 = vmatprep.subr.bf16.mxu1 %v9349_v29  ;;  %v1774_v48 = vld [vmem:[#allocation7 + $0x1ff0] sm:$0xff]  ;;  %v1771_v29 = vld [vmem:[#allocation7 + $0x1fd8] sm:$0xff] }
 0x4d0   :  { %v9411_v57 = vcombine.high %v1770_v41, %v1774_v48 }
 0x4d1   :  { %7942 = vmatpush1.bf16.msra.mxu0 %v9346_v56  ;;  %v9413_v56 = vcombine.high %v1771_v29, %v1775_v49 }
 0x4d2   :  { %8286 = vmatpush1.bf16.msra.mxu1 %v9348_v59  ;;  %7943 = vmatprep.subr.bf16.mxu0 %v9355_v60  ;;  %v9410_v59 = vcombine.low %v1770_v41, %v1774_v48  ;;  %v9412_v60 = vcombine.low %v1771_v29, %v1775_v49 }
 0x4d3   :  { %8287 = vmatprep.subr.bf16.mxu1 %v9357_v61  ;;  %v9553_v61 = vld [vmem:[#allocation8] sm:$0xff] }
 0x4d4   :  { %v1797_v1 = vrot.slane %v9553_v61, %v9840_v22  ;;  %v1805_v10 = vrot.slane %v9553_v61, %v9908_v34  ;;  %v1801_v25 = vrot.slane %v9553_v61, %v9843_v23  ;;  %v1809_v11 = vrot.slane %v9553_v61, %v9911_v35 }
 0x4d5   :  { %7944 = vmatpush1.bf16.msra.mxu0 %v9354_v40 }
 0x4d6   :  { %8288 = vmatpush1.bf16.msra.mxu1 %v9356_v30  ;;  %7945 = vmatprep.subr.bf16.mxu0 %v9363_v13 }
 0x4d7   :  { %8289 = vmatprep.subr.bf16.mxu1 %v9365_v33 }
 0x4d9   :  { %7946 = vmatpush1.bf16.msra.mxu0 %v9362_v16 }
 0x4da   :  { %8290 = vmatpush1.bf16.msra.mxu1 %v9364_v32  ;;  %7947 = vmatprep.subr.bf16.mxu0 %v9371_v15 }
 0x4db   :  { %8291 = vmatprep.subr.bf16.mxu1 %v9373_v2 }
 0x4dd   :  { %7948 = vmatpush1.bf16.msra.mxu0 %v9370_v27 }
 0x4de   :  { %8292 = vmatpush1.bf16.msra.mxu1 %v9372_v19  ;;  %7949 = vmatprep.subr.bf16.mxu0 %v9379_v21 }
 0x4df   :  { %8293 = vmatprep.subr.bf16.mxu1 %v9381_v58 }
 0x4e1   :  { %7950 = vmatpush1.bf16.msra.mxu0 %v9378_v26 }
 0x4e2   :  { %8294 = vmatpush1.bf16.msra.mxu1 %v9380_v3  ;;  %7951 = vmatprep.subr.bf16.mxu0 %v9387_v46 }
 0x4e3   :  { %8295 = vmatprep.subr.bf16.mxu1 %v9389_v14 }
 0x4e5   :  { %7952 = vmatpush1.bf16.msra.mxu0 %v9386_v62 }
 0x4e6   :  { %8296 = vmatpush1.bf16.msra.mxu1 %v9388_v8  ;;  %7953 = vmatprep.subr.bf16.mxu0 %v9395_v51 }
 0x4e7   :  { %8297 = vmatprep.subr.bf16.mxu1 %v9397_v12 }
 0x4e9   :  { %7954 = vmatpush1.bf16.msra.mxu0 %v9394_v47 }
 0x4ea   :  { %8298 = vmatpush1.bf16.msra.mxu1 %v9396_v38  ;;  %7955 = vmatprep.subr.bf16.mxu0 %v9403_v39 }
 0x4eb   :  { %8299 = vmatprep.subr.bf16.mxu1 %v9405_v18 }
 0x4ed   :  { %7956 = vmatpush1.bf16.msra.mxu0 %v9402_v52 }
 0x4ee   :  { %8300 = vmatpush1.bf16.msra.mxu1 %v9404_v55  ;;  %7957 = vmatprep.subr.bf16.mxu0 %v9411_v57 }
 0x4ef   :  { %8301 = vmatprep.subr.bf16.mxu1 %v9413_v56 }
 0x4f1   :  { %7958 = vmatpush1.bf16.msra.mxu0 %v9410_v59 }
 0x4f2   :  { %8302 = vmatpush1.bf16.msra.mxu1 %v9412_v60 }
 0x4f4   :  { %7960 = vmatmul.mubr.bf16.vlgmr.msra.gmra.mrb[20].mxu0 %v10035_v0 }
 0x4f5   :  { %8304 = vmatmul.mubr.bf16.vlgmr.msra.gmra.mrb[20].mxu1 %v10035_v0 }
 0x5c7   :  { %v7961_v40 = vpop.f32.mrb[20].mxu0 }
 0x5c8   :  { %v9422_v30 = vadd.f32 %v7961_v40, %v1797_v1  ;;  %v8305_v13 = vpop.f32.mrb[20].mxu1  ;;  %v7963_v33 = vpop.f32.mrb[21].mxu0 }
 0x5c9   :  { %v9426_v24 = vadd.f32 %v8305_v13, %v1805_v10  ;;  %v9423_v50 = vadd.f32 %v7963_v33, %v1801_v25  ;;  %v8307_v36 = vpop.f32.mrb[21].mxu1  ;;  %v7965_v31 = vpop.f32.mrb[22].mxu0 }
 0x5ca   :  { %8318 = vst [vmem:[#allocation10 + $0x20] sm:$0xff] %v9422_v30  ;;  %v9427_v0 = vadd.f32 %v8307_v36, %v1809_v11  ;;  %v9424_v16 = vadd.f32 %v7965_v31, %v1797_v1  ;;  %v8309_v22 = vpop.f32.mrb[22].mxu1  ;;  %v7967_v32 = vpop.f32.mrb[23].mxu0 }
 0x5cb   :  { %8320 = vst [vmem:[#allocation10 + $0x30] sm:$0xff] %v9426_v24  ;;  %8319 = vst [vmem:[#allocation10 + $0x28] sm:$0xff] %v9423_v50  ;;  %v9428_v23 = vadd.f32 %v8309_v22, %v1805_v10  ;;  %v9425_v34 = vadd.f32 %v7967_v32, %v1801_v25  ;;  %v8311_v35 = vpop.f32.mrb[23].mxu1 }
 0x5cc   :  { %8321 = vst [vmem:[#allocation10 + $0x38] sm:$0xff] %v9427_v0  ;;  %8326 = vst [vmem:[#allocation10 + $0x60] sm:$0xff] %v9424_v16  ;;  %v9429_v15 = vadd.f32 %v8311_v35, %v1809_v11 }
 0x5cd   :  { %8328 = vst [vmem:[#allocation10 + $0x70] sm:$0xff] %v9428_v23  ;;  %8327 = vst [vmem:[#allocation10 + $0x68] sm:$0xff] %v9425_v34 }
 0x5ce   :  { %8329 = vst [vmem:[#allocation10 + $0x78] sm:$0xff] %v9429_v15 }
 0x5cf   :  { %9653 = shalt.err (!%p9650_p8)
}
 0x5d0   :  { %s9654_s24 = scalar_lea.hbm %s10127_s5, 2048 }
 0x5d1   :  { %p9655_p9 = scmp.ne.s32.totalorder %s10127_s5, %s9654_s24  ;;  %p9658_p10 = scmp.lt.u32.totalorder %s9654_s24, %s10127_s5 }
 0x5d3   :  { %p9660_p11 = pnand %p9658_p10, %p9655_p9 }
 0x5d5   :  { %9663 = shalt.err (!%p9660_p11)
}
 0x5d6   :  { %8341 = dma.vmem_to_hbm [thread:$0]  %s8336_s19, 2048, %s10127_s5, [#allocation4], %s9674_s2, %s9674_s2, %s9675_s15  }
 0x5d7   :  { %9670 = dma.done.wait [#allocation4], 2048  }
 0x5d8   :  { %9671 = vsyncadd [#allocation4], 4294965248 }
 0x5d9   :  { %8345 = vsyncpa [#allocation3], 1 }
 0x5da   :  { %8346 = vsyncpa [#allocation6], 1 }
 0x5db   :  { %8347 = vsyncpa [#allocation9], 1 }
 0x5dc   :  { %8348 = vsyncpa [#allocation4], 1 }

</bundles_post_ra>
